<compile_context>
chip_gen: v7x
topology: tpu7x:2x2x1
jax: 0.10.0
libtpu: 0.0.40
codegen_flags: <defaults>
</compile_context>

<pallas_src>
import numpy as np

import jax
import jax.numpy as jnp
from jax.experimental import pallas as pl
from jax.experimental.pallas import tpu as pltpu


def _round_up(n, m):
    return (n + m - 1) // m * m


# ---------------------------------------------------------------------------
# Fused forward kernel: one grid step == one batch tile of Bt samples.
#   x_ref   : (Bt, 784)  f32   image, lane index = 28*row + col
#   cb1_ref : (140, 256) bf16  conv1 banded weights, K = 5 taps x 28 cols merged
#   cb2_ref : (640, 256) bf16  conv2 banded weights, K = 5 taps x 128 lanes merged
#   w1_ref  : (512, 128) bf16  fc1 (NCHW flatten permutation folded in)
#   w2_ref  : (128, 128) bf16  fc2
#   w3_ref  : (128, 128) bf16  fc3
#   b*_ref  : (1, 128)   f32   biases (per-channel, replicated over spatial lanes)
#   o_ref   : (Bt, 128)  f32   logits in lanes [0, 10)
# ---------------------------------------------------------------------------
def _lenet_kernel(x_ref, cb1_ref, cb2_ref, w1_ref, w2_ref, w3_ref,
                  bc1_ref, bc2_ref, bf1_ref, bf2_ref, bf3_ref, o_ref):
    f32 = jnp.float32
    bf16 = jnp.bfloat16

    xf = x_ref[...]                       # (Bt, 784) f32
    cb1 = cb1_ref[...]                    # (140, 256) bf16
    cb2 = cb2_ref[...]                    # (640, 256) bf16
    bc1 = bc1_ref[...]                    # (1, 128) f32
    bc2 = bc2_ref[...]                    # (1, 128) f32

    # ---- conv1 (+bias, ReLU) fused with 2x2 max-pool -----------------------
    # Output row j uses input rows j..j+4 == contiguous lane slice [28j, 28j+140).
    # Result lane col = parity*128 + v*6 + c  (v = pooled column, c = channel).
    def conv1_row(j):
        lhs = xf[:, j * 28:j * 28 + 140].astype(bf16)            # (Bt, 140)
        return jnp.dot(lhs, cb1, preferred_element_type=f32)     # (Bt, 256)

    p1_rows = []
    for m in range(12):                                          # pooled row m
        r = jnp.maximum(conv1_row(2 * m), conv1_row(2 * m + 1))  # pool rows
        r = jnp.maximum(r[:, :128], r[:, 128:])                  # pool cols
        p1_rows.append(jnp.maximum(r + bc1, 0.0).astype(bf16))   # bias + ReLU
    # p1 lane index = 128*m + 6*v + ic  (pooled conv1 activations)
    p1 = jnp.concatenate(p1_rows, axis=1)                        # (Bt, 1536) bf16

    # ---- conv2 (+bias, ReLU) fused with 2x2 max-pool -----------------------
    # Output row j2 uses pooled-conv1 rows j2..j2+4 == lane slice [128*j2, 128*j2+640).
    # Result lane col = parity*128 + v2*16 + oc.
    def conv2_row(j2):
        lhs = p1[:, j2 * 128:j2 * 128 + 640]                     # (Bt, 640) bf16
        return jnp.dot(lhs, cb2, preferred_element_type=f32)     # (Bt, 256)

    p2_rows = []
    for u in range(4):                                           # pooled row u
        s = jnp.maximum(conv2_row(2 * u), conv2_row(2 * u + 1))  # pool rows
        s = jnp.maximum(s[:, :128], s[:, 128:])                  # pool cols
        p2_rows.append(jnp.maximum(s + bc2, 0.0).astype(bf16))   # bias + ReLU
    # p2 lane index = 128*u + 16*v2 + oc
    p2 = jnp.concatenate(p2_rows, axis=1)                        # (Bt, 512) bf16

    # ---- fc1 -> ReLU -> fc2 -> ReLU -> fc3 ----------------------------------
    h = jnp.dot(p2, w1_ref[...], preferred_element_type=f32) + bf1_ref[...]
    h = jnp.maximum(h, 0.0).astype(bf16)                         # (Bt, 128)
    h = jnp.dot(h, w2_ref[...], preferred_element_type=f32) + bf2_ref[...]
    h = jnp.maximum(h, 0.0).astype(bf16)                         # (Bt, 128)
    out = jnp.dot(h, w3_ref[...], preferred_element_type=f32) + bf3_ref[...]
    o_ref[...] = out.astype(o_ref.dtype)                         # (Bt, 128), dense store


# ---------------------------------------------------------------------------
# One-time host-side weight preparation: banded (merged-tap) conv matrices,
# flatten permutation folded into fc1, lane padding, bf16 matmul weights.
# ---------------------------------------------------------------------------
def prepare_params(params):
    w1 = np.asarray(params["conv1_w"], np.float32)    # (6, 1, 5, 5)
    b1 = np.asarray(params["conv1_b"], np.float32)    # (6,)
    w2 = np.asarray(params["conv2_w"], np.float32)    # (16, 6, 5, 5)
    b2 = np.asarray(params["conv2_b"], np.float32)    # (16,)
    f1w = np.asarray(params["fc1_w"], np.float32)     # (120, 256)
    f1b = np.asarray(params["fc1_b"], np.float32)
    f2w = np.asarray(params["fc2_w"], np.float32)     # (80, 120)
    f2b = np.asarray(params["fc2_b"], np.float32)
    f3w = np.asarray(params["fc3_w"], np.float32)     # (10, 80)
    f3b = np.asarray(params["fc3_b"], np.float32)

    # conv1 banded weights, 5 row-taps merged along K:
    #   cb1[ki*28 + ci, p*128 + v*6 + c] = w1[c, 0, ki, ci - (2v+p)]  (if 0 <= . < 5)
    cb1 = np.zeros((140, 256), np.float32)
    for ki in range(5):
        for p in range(2):
            for v in range(12):
                col0 = p * 128 + v * 6
                for kj in range(5):
                    ci = 2 * v + p + kj
                    cb1[ki * 28 + ci, col0:col0 + 6] = w1[:, 0, ki, kj]

    # conv2 banded weights, 5 row-taps merged along K:
    #   cb2[ki*128 + v*6 + ic, p2*128 + v2*16 + oc] = w2[oc, ic, ki, v - (2*v2+p2)]
    cb2 = np.zeros((640, 256), np.float32)
    for ki in range(5):
        for p2 in range(2):
            for v2 in range(4):
                col0 = p2 * 128 + v2 * 16
                for kj in range(5):
                    v = 2 * v2 + p2 + kj
                    for ic in range(6):
                        cb2[ki * 128 + v * 6 + ic, col0:col0 + 16] = w2[:, ic, ki, kj]

    # fc1 with the NCHW flatten permutation folded in:
    #   w1m[u*128 + v2*16 + oc, j] = fc1_w[j, oc*16 + u*4 + v2]
    w1m = np.zeros((512, 128), np.float32)
    for u in range(4):
        for v2 in range(4):
            for oc in range(16):
                w1m[u * 128 + v2 * 16 + oc, :120] = f1w[:, oc * 16 + u * 4 + v2]

    w2m = np.zeros((128, 128), np.float32)
    w2m[:120, :80] = f2w.T
    w3m = np.zeros((128, 128), np.float32)
    w3m[:80, :10] = f3w.T

    bc1 = np.zeros((1, 128), np.float32); bc1[0, :72] = np.tile(b1, 12)
    bc2 = np.zeros((1, 128), np.float32); bc2[0, :64] = np.tile(b2, 4)
    bf1 = np.zeros((1, 128), np.float32); bf1[0, :120] = f1b
    bf2 = np.zeros((1, 128), np.float32); bf2[0, :80] = f2b
    bf3 = np.zeros((1, 128), np.float32); bf3[0, :10] = f3b

    mats = dict(cb1=cb1, cb2=cb2, w1m=w1m, w2m=w2m, w3m=w3m)
    vecs = dict(bc1=bc1, bc2=bc2, bf1=bf1, bf2=bf2, bf3=bf3)
    prep = {k: jnp.asarray(v, jnp.bfloat16) for k, v in mats.items()}   # bf16 matmul weights
    prep.update({k: jnp.asarray(v) for k, v in vecs.items()})           # f32 biases
    return prep


# ---------------------------------------------------------------------------
# Forward pass: single fused pallas_call, batch-tiled "parallel" grid.
# ---------------------------------------------------------------------------
def net_forward(x_nchw, prep, batch_tile=None):
    B = x_nchw.shape[0]
    assert x_nchw.shape[1:] == (1, 28, 28)
    x2d = x_nchw.reshape(B, 784)                      # free reshape, no relayout

    if batch_tile is None:
        Bt = min(256, _round_up(B, 8))                # batch tile (matmul M dim)
    else:
        Bt = max(8, _round_up(int(batch_tile), 8))
    Bpad = _round_up(B, Bt)
    if Bpad != B:
        x2d = jnp.pad(x2d, ((0, Bpad - B), (0, 0)))

    out = pl.pallas_call(
        _lenet_kernel,
        out_shape=jax.ShapeDtypeStruct((Bpad, 128), jnp.float32),
        grid=(Bpad // Bt,),
        in_specs=[
            pl.BlockSpec((Bt, 784), lambda i: (i, 0)),       # image batch tile
            pl.BlockSpec((140, 256), lambda i: (0, 0)),      # conv1 banded weights
            pl.BlockSpec((640, 256), lambda i: (0, 0)),      # conv2 banded weights
            pl.BlockSpec((512, 128), lambda i: (0, 0)),      # fc1 (flatten folded in)
            pl.BlockSpec((128, 128), lambda i: (0, 0)),      # fc2
            pl.BlockSpec((128, 128), lambda i: (0, 0)),      # fc3
            pl.BlockSpec((1, 128), lambda i: (0, 0)),        # conv1 bias
            pl.BlockSpec((1, 128), lambda i: (0, 0)),        # conv2 bias
            pl.BlockSpec((1, 128), lambda i: (0, 0)),        # fc1 bias
            pl.BlockSpec((1, 128), lambda i: (0, 0)),        # fc2 bias
            pl.BlockSpec((1, 128), lambda i: (0, 0)),        # fc3 bias
        ],
        out_specs=pl.BlockSpec((Bt, 128), lambda i: (i, 0)),  # dense (Bt,128) store
        compiler_params=pltpu.CompilerParams(
            dimension_semantics=("parallel",),
            vmem_limit_bytes=32 * 1024 * 1024),
    )(x2d, prep["cb1"], prep["cb2"], prep["w1m"], prep["w2m"], prep["w3m"],
      prep["bc1"], prep["bc2"], prep["bf1"], prep["bf2"], prep["bf3"])

    return out[:B, :10]                               # (B, 10) logits


# ---------------------------------------------------------------------------
# Plain-JAX reference of the PyTorch Net (for the built-in correctness check).
# ---------------------------------------------------------------------------
def net_reference(x, params):
    hi = jax.lax.Precision.HIGHEST
    y = jax.lax.conv(x, params["conv1_w"], (1, 1), "VALID", precision=hi)
    y = jnp.maximum(y + params["conv1_b"][None, :, None, None], 0.0)
    y = y.reshape(y.shape[0], 6, 12, 2, 12, 2).max(axis=(3, 5))
    y = jax.lax.conv(y, params["conv2_w"], (1, 1), "VALID", precision=hi)
    y = jnp.maximum(y + params["conv2_b"][None, :, None, None], 0.0)
    y = y.reshape(y.shape[0], 16, 4, 2, 4, 2).max(axis=(3, 5))
    flat = y.reshape(y.shape[0], 256)
    h = jnp.maximum(jnp.dot(flat, params["fc1_w"].T, precision=hi) + params["fc1_b"], 0.0)
    h = jnp.maximum(jnp.dot(h, params["fc2_w"].T, precision=hi) + params["fc2_b"], 0.0)
    return jnp.dot(h, params["fc3_w"].T, precision=hi) + params["fc3_b"]


# ---------------------------------------------------------------------------
# Deterministic parameter init (synthetic; shapes from Net.__init__)
# ---------------------------------------------------------------------------
def init_params(key):
    keys = jax.random.split(key, 10)
    scale = 0.1
    n = lambda k, shape: scale * jax.random.normal(k, shape, dtype=jnp.float32)
    return {
        "conv1_w": n(keys[0], (6, 1, 5, 5)),
        "conv1_b": n(keys[1], (6,)),
        "conv2_w": n(keys[2], (16, 6, 5, 5)),
        "conv2_b": n(keys[3], (16,)),
        "fc1_w": n(keys[4], (120, 256)),
        "fc1_b": n(keys[5], (120,)),
        "fc2_w": n(keys[6], (80, 120)),
        "fc2_b": n(keys[7], (80,)),
        "fc3_w": n(keys[8], (10, 80)),
        "fc3_b": n(keys[9], (10,)),
    }


if __name__ == "__main__":
    key = jax.random.PRNGKey(0)
    k_params, k_x1, k_x2 = jax.random.split(key, 3)
    params = init_params(k_params)
    prep = prepare_params(params)          # hoisted one-time weight prep

    fwd = jax.jit(net_forward, static_argnames=("batch_tile",))
    ref_fn = jax.jit(net_reference)

    # MNIST-shaped input implied by the forward pass: (B, 1, 28, 28), batch = 2.
    x = jax.random.normal(k_x1, (2, 1, 28, 28), dtype=jnp.float32)
    logits = jax.block_until_ready(fwd(x, prep))
    assert logits.shape == (2, 10)
    ref = jax.block_until_ready(ref_fn(x, params))
    np.testing.assert_allclose(np.asarray(logits), np.asarray(ref), rtol=3e-2, atol=3e-2)

    # Exercise the multi-step batch-tiled grid path (grid = 2) at a small shape.
    x16 = jax.random.normal(k_x2, (16, 1, 28, 28), dtype=jnp.float32)
    logits16 = jax.block_until_ready(fwd(x16, prep, batch_tile=8))
    ref16 = jax.block_until_ready(ref_fn(x16, params))
    np.testing.assert_allclose(np.asarray(logits16), np.asarray(ref16), rtol=3e-2, atol=3e-2)

    print("KERNEL_OK")
</pallas_src>

<mosaic_0001>
module attributes {stable_mosaic.version = 11 : i64} {
  func.func @_lenet_kernel(%arg0: i32, %arg1: memref<8x784xf32, #tpu.memory_space<vmem>>, %arg2: memref<140x256xbf16, #tpu.memory_space<vmem>>, %arg3: memref<640x256xbf16, #tpu.memory_space<vmem>>, %arg4: memref<512x128xbf16, #tpu.memory_space<vmem>>, %arg5: memref<128x128xbf16, #tpu.memory_space<vmem>>, %arg6: memref<128x128xbf16, #tpu.memory_space<vmem>>, %arg7: memref<1x128xf32, #tpu.memory_space<vmem>>, %arg8: memref<1x128xf32, #tpu.memory_space<vmem>>, %arg9: memref<1x128xf32, #tpu.memory_space<vmem>>, %arg10: memref<1x128xf32, #tpu.memory_space<vmem>>, %arg11: memref<1x128xf32, #tpu.memory_space<vmem>>, %arg12: memref<8x128xf32, #tpu.memory_space<vmem>>) attributes {dimension_semantics = [#tpu.dimension_semantics<parallel>], iteration_bounds = array<i64: 1>, scalar_prefetch = 0 : i64, scratch_operands = 0 : i64, tpu.core_type = #tpu.core_type<tc>, window_params = [{transform_indices = @transform_0, window_bounds = array<i64: 8, 784>}, {pipeline_mode = #tpu.pipeline_mode<synchronous>, transform_indices = @transform_1, window_bounds = array<i64: 140, 256>}, {pipeline_mode = #tpu.pipeline_mode<synchronous>, transform_indices = @transform_2, window_bounds = array<i64: 640, 256>}, {pipeline_mode = #tpu.pipeline_mode<synchronous>, transform_indices = @transform_3, window_bounds = array<i64: 512, 128>}, {pipeline_mode = #tpu.pipeline_mode<synchronous>, transform_indices = @transform_4, window_bounds = array<i64: 128, 128>}, {pipeline_mode = #tpu.pipeline_mode<synchronous>, transform_indices = @transform_5, window_bounds = array<i64: 128, 128>}, {pipeline_mode = #tpu.pipeline_mode<synchronous>, transform_indices = @transform_6, window_bounds = array<i64: 1, 128>}, {pipeline_mode = #tpu.pipeline_mode<synchronous>, transform_indices = @transform_7, window_bounds = array<i64: 1, 128>}, {pipeline_mode = #tpu.pipeline_mode<synchronous>, transform_indices = @transform_8, window_bounds = array<i64: 1, 128>}, {pipeline_mode = #tpu.pipeline_mode<synchronous>, transform_indices = @transform_9, window_bounds = array<i64: 1, 128>}, {pipeline_mode = #tpu.pipeline_mode<synchronous>, transform_indices = @transform_10, window_bounds = array<i64: 1, 128>}, {transform_indices = @transform_11, window_bounds = array<i64: 8, 128>}]} {
    %c0 = arith.constant 0 : index
    %c0_0 = arith.constant 0 : index
    %0 = vector.load %arg1[%c0, %c0_0] : memref<8x784xf32, #tpu.memory_space<vmem>>, vector<8x784xf32>
    %c0_1 = arith.constant 0 : index
    %c0_2 = arith.constant 0 : index
    %1 = vector.load %arg2[%c0_1, %c0_2] : memref<140x256xbf16, #tpu.memory_space<vmem>>, vector<140x256xbf16>
    %c0_3 = arith.constant 0 : index
    %c0_4 = arith.constant 0 : index
    %2 = vector.load %arg3[%c0_3, %c0_4] : memref<640x256xbf16, #tpu.memory_space<vmem>>, vector<640x256xbf16>
    %c0_5 = arith.constant 0 : index
    %c0_6 = arith.constant 0 : index
    %3 = vector.load %arg7[%c0_5, %c0_6] : memref<1x128xf32, #tpu.memory_space<vmem>>, vector<1x128xf32>
    %c0_7 = arith.constant 0 : index
    %c0_8 = arith.constant 0 : index
    %4 = vector.load %arg8[%c0_7, %c0_8] : memref<1x128xf32, #tpu.memory_space<vmem>>, vector<1x128xf32>
    %5 = vector.extract_strided_slice %0 {offsets = [0, 0], sizes = [8, 140], strides = [1, 1]} : vector<8x784xf32> to vector<8x140xf32>
    %6 = arith.truncf %5 : vector<8x140xf32> to vector<8x140xbf16>
    %cst = arith.constant dense<0.000000e+00> : vector<8x256xf32>
    %7 = tpu.matmul %6, %1, %cst {dimension_numbers = #tpu.dot_dimension_numbers<[1], [0], [0], [1], [0, 0, 1, 1], [], []>} : vector<8x140xbf16>, vector<140x256xbf16>, vector<8x256xf32> -> vector<8x256xf32>
    %8 = vector.extract_strided_slice %0 {offsets = [0, 28], sizes = [8, 140], strides = [1, 1]} : vector<8x784xf32> to vector<8x140xf32>
    %9 = arith.truncf %8 : vector<8x140xf32> to vector<8x140xbf16>
    %cst_9 = arith.constant dense<0.000000e+00> : vector<8x256xf32>
    %10 = tpu.matmul %9, %1, %cst_9 {dimension_numbers = #tpu.dot_dimension_numbers<[1], [0], [0], [1], [0, 0, 1, 1], [], []>} : vector<8x140xbf16>, vector<140x256xbf16>, vector<8x256xf32> -> vector<8x256xf32>
    %11 = arith.maximumf %7, %10 : vector<8x256xf32>
    %12 = vector.extract_strided_slice %11 {offsets = [0, 0], sizes = [8, 128], strides = [1, 1]} : vector<8x256xf32> to vector<8x128xf32>
    %13 = vector.extract_strided_slice %11 {offsets = [0, 128], sizes = [8, 128], strides = [1, 1]} : vector<8x256xf32> to vector<8x128xf32>
    %14 = arith.maximumf %12, %13 : vector<8x128xf32>
    %15 = vector.broadcast %3 : vector<1x128xf32> to vector<8x128xf32>
    %16 = arith.addf %14, %15 : vector<8x128xf32>
    %cst_10 = arith.constant 0.000000e+00 : f32
    %17 = vector.broadcast %cst_10 : f32 to vector<8x128xf32>
    %18 = arith.maximumf %16, %17 : vector<8x128xf32>
    %19 = arith.truncf %18 : vector<8x128xf32> to vector<8x128xbf16>
    %20 = vector.extract_strided_slice %0 {offsets = [0, 56], sizes = [8, 140], strides = [1, 1]} : vector<8x784xf32> to vector<8x140xf32>
    %21 = arith.truncf %20 : vector<8x140xf32> to vector<8x140xbf16>
    %cst_11 = arith.constant dense<0.000000e+00> : vector<8x256xf32>
    %22 = tpu.matmul %21, %1, %cst_11 {dimension_numbers = #tpu.dot_dimension_numbers<[1], [0], [0], [1], [0, 0, 1, 1], [], []>} : vector<8x140xbf16>, vector<140x256xbf16>, vector<8x256xf32> -> vector<8x256xf32>
    %23 = vector.extract_strided_slice %0 {offsets = [0, 84], sizes = [8, 140], strides = [1, 1]} : vector<8x784xf32> to vector<8x140xf32>
    %24 = arith.truncf %23 : vector<8x140xf32> to vector<8x140xbf16>
    %cst_12 = arith.constant dense<0.000000e+00> : vector<8x256xf32>
    %25 = tpu.matmul %24, %1, %cst_12 {dimension_numbers = #tpu.dot_dimension_numbers<[1], [0], [0], [1], [0, 0, 1, 1], [], []>} : vector<8x140xbf16>, vector<140x256xbf16>, vector<8x256xf32> -> vector<8x256xf32>
    %26 = arith.maximumf %22, %25 : vector<8x256xf32>
    %27 = vector.extract_strided_slice %26 {offsets = [0, 0], sizes = [8, 128], strides = [1, 1]} : vector<8x256xf32> to vector<8x128xf32>
    %28 = vector.extract_strided_slice %26 {offsets = [0, 128], sizes = [8, 128], strides = [1, 1]} : vector<8x256xf32> to vector<8x128xf32>
    %29 = arith.maximumf %27, %28 : vector<8x128xf32>
    %30 = vector.broadcast %3 : vector<1x128xf32> to vector<8x128xf32>
    %31 = arith.addf %29, %30 : vector<8x128xf32>
    %cst_13 = arith.constant 0.000000e+00 : f32
    %32 = vector.broadcast %cst_13 : f32 to vector<8x128xf32>
    %33 = arith.maximumf %31, %32 : vector<8x128xf32>
    %34 = arith.truncf %33 : vector<8x128xf32> to vector<8x128xbf16>
    %35 = vector.extract_strided_slice %0 {offsets = [0, 112], sizes = [8, 140], strides = [1, 1]} : vector<8x784xf32> to vector<8x140xf32>
    %36 = arith.truncf %35 : vector<8x140xf32> to vector<8x140xbf16>
    %cst_14 = arith.constant dense<0.000000e+00> : vector<8x256xf32>
    %37 = tpu.matmul %36, %1, %cst_14 {dimension_numbers = #tpu.dot_dimension_numbers<[1], [0], [0], [1], [0, 0, 1, 1], [], []>} : vector<8x140xbf16>, vector<140x256xbf16>, vector<8x256xf32> -> vector<8x256xf32>
    %38 = vector.extract_strided_slice %0 {offsets = [0, 140], sizes = [8, 140], strides = [1, 1]} : vector<8x784xf32> to vector<8x140xf32>
    %39 = arith.truncf %38 : vector<8x140xf32> to vector<8x140xbf16>
    %cst_15 = arith.constant dense<0.000000e+00> : vector<8x256xf32>
    %40 = tpu.matmul %39, %1, %cst_15 {dimension_numbers = #tpu.dot_dimension_numbers<[1], [0], [0], [1], [0, 0, 1, 1], [], []>} : vector<8x140xbf16>, vector<140x256xbf16>, vector<8x256xf32> -> vector<8x256xf32>
    %41 = arith.maximumf %37, %40 : vector<8x256xf32>
    %42 = vector.extract_strided_slice %41 {offsets = [0, 0], sizes = [8, 128], strides = [1, 1]} : vector<8x256xf32> to vector<8x128xf32>
    %43 = vector.extract_strided_slice %41 {offsets = [0, 128], sizes = [8, 128], strides = [1, 1]} : vector<8x256xf32> to vector<8x128xf32>
    %44 = arith.maximumf %42, %43 : vector<8x128xf32>
    %45 = vector.broadcast %3 : vector<1x128xf32> to vector<8x128xf32>
    %46 = arith.addf %44, %45 : vector<8x128xf32>
    %cst_16 = arith.constant 0.000000e+00 : f32
    %47 = vector.broadcast %cst_16 : f32 to vector<8x128xf32>
    %48 = arith.maximumf %46, %47 : vector<8x128xf32>
    %49 = arith.truncf %48 : vector<8x128xf32> to vector<8x128xbf16>
    %50 = vector.extract_strided_slice %0 {offsets = [0, 168], sizes = [8, 140], strides = [1, 1]} : vector<8x784xf32> to vector<8x140xf32>
    %51 = arith.truncf %50 : vector<8x140xf32> to vector<8x140xbf16>
    %cst_17 = arith.constant dense<0.000000e+00> : vector<8x256xf32>
    %52 = tpu.matmul %51, %1, %cst_17 {dimension_numbers = #tpu.dot_dimension_numbers<[1], [0], [0], [1], [0, 0, 1, 1], [], []>} : vector<8x140xbf16>, vector<140x256xbf16>, vector<8x256xf32> -> vector<8x256xf32>
    %53 = vector.extract_strided_slice %0 {offsets = [0, 196], sizes = [8, 140], strides = [1, 1]} : vector<8x784xf32> to vector<8x140xf32>
    %54 = arith.truncf %53 : vector<8x140xf32> to vector<8x140xbf16>
    %cst_18 = arith.constant dense<0.000000e+00> : vector<8x256xf32>
    %55 = tpu.matmul %54, %1, %cst_18 {dimension_numbers = #tpu.dot_dimension_numbers<[1], [0], [0], [1], [0, 0, 1, 1], [], []>} : vector<8x140xbf16>, vector<140x256xbf16>, vector<8x256xf32> -> vector<8x256xf32>
    %56 = arith.maximumf %52, %55 : vector<8x256xf32>
    %57 = vector.extract_strided_slice %56 {offsets = [0, 0], sizes = [8, 128], strides = [1, 1]} : vector<8x256xf32> to vector<8x128xf32>
    %58 = vector.extract_strided_slice %56 {offsets = [0, 128], sizes = [8, 128], strides = [1, 1]} : vector<8x256xf32> to vector<8x128xf32>
    %59 = arith.maximumf %57, %58 : vector<8x128xf32>
    %60 = vector.broadcast %3 : vector<1x128xf32> to vector<8x128xf32>
    %61 = arith.addf %59, %60 : vector<8x128xf32>
    %cst_19 = arith.constant 0.000000e+00 : f32
    %62 = vector.broadcast %cst_19 : f32 to vector<8x128xf32>
    %63 = arith.maximumf %61, %62 : vector<8x128xf32>
    %64 = arith.truncf %63 : vector<8x128xf32> to vector<8x128xbf16>
    %65 = vector.extract_strided_slice %0 {offsets = [0, 224], sizes = [8, 140], strides = [1, 1]} : vector<8x784xf32> to vector<8x140xf32>
    %66 = arith.truncf %65 : vector<8x140xf32> to vector<8x140xbf16>
    %cst_20 = arith.constant dense<0.000000e+00> : vector<8x256xf32>
    %67 = tpu.matmul %66, %1, %cst_20 {dimension_numbers = #tpu.dot_dimension_numbers<[1], [0], [0], [1], [0, 0, 1, 1], [], []>} : vector<8x140xbf16>, vector<140x256xbf16>, vector<8x256xf32> -> vector<8x256xf32>
    %68 = vector.extract_strided_slice %0 {offsets = [0, 252], sizes = [8, 140], strides = [1, 1]} : vector<8x784xf32> to vector<8x140xf32>
    %69 = arith.truncf %68 : vector<8x140xf32> to vector<8x140xbf16>
    %cst_21 = arith.constant dense<0.000000e+00> : vector<8x256xf32>
    %70 = tpu.matmul %69, %1, %cst_21 {dimension_numbers = #tpu.dot_dimension_numbers<[1], [0], [0], [1], [0, 0, 1, 1], [], []>} : vector<8x140xbf16>, vector<140x256xbf16>, vector<8x256xf32> -> vector<8x256xf32>
    %71 = arith.maximumf %67, %70 : vector<8x256xf32>
    %72 = vector.extract_strided_slice %71 {offsets = [0, 0], sizes = [8, 128], strides = [1, 1]} : vector<8x256xf32> to vector<8x128xf32>
    %73 = vector.extract_strided_slice %71 {offsets = [0, 128], sizes = [8, 128], strides = [1, 1]} : vector<8x256xf32> to vector<8x128xf32>
    %74 = arith.maximumf %72, %73 : vector<8x128xf32>
    %75 = vector.broadcast %3 : vector<1x128xf32> to vector<8x128xf32>
    %76 = arith.addf %74, %75 : vector<8x128xf32>
    %cst_22 = arith.constant 0.000000e+00 : f32
    %77 = vector.broadcast %cst_22 : f32 to vector<8x128xf32>
    %78 = arith.maximumf %76, %77 : vector<8x128xf32>
    %79 = arith.truncf %78 : vector<8x128xf32> to vector<8x128xbf16>
    %80 = vector.extract_strided_slice %0 {offsets = [0, 280], sizes = [8, 140], strides = [1, 1]} : vector<8x784xf32> to vector<8x140xf32>
    %81 = arith.truncf %80 : vector<8x140xf32> to vector<8x140xbf16>
    %cst_23 = arith.constant dense<0.000000e+00> : vector<8x256xf32>
    %82 = tpu.matmul %81, %1, %cst_23 {dimension_numbers = #tpu.dot_dimension_numbers<[1], [0], [0], [1], [0, 0, 1, 1], [], []>} : vector<8x140xbf16>, vector<140x256xbf16>, vector<8x256xf32> -> vector<8x256xf32>
    %83 = vector.extract_strided_slice %0 {offsets = [0, 308], sizes = [8, 140], strides = [1, 1]} : vector<8x784xf32> to vector<8x140xf32>
    %84 = arith.truncf %83 : vector<8x140xf32> to vector<8x140xbf16>
    %cst_24 = arith.constant dense<0.000000e+00> : vector<8x256xf32>
    %85 = tpu.matmul %84, %1, %cst_24 {dimension_numbers = #tpu.dot_dimension_numbers<[1], [0], [0], [1], [0, 0, 1, 1], [], []>} : vector<8x140xbf16>, vector<140x256xbf16>, vector<8x256xf32> -> vector<8x256xf32>
    %86 = arith.maximumf %82, %85 : vector<8x256xf32>
    %87 = vector.extract_strided_slice %86 {offsets = [0, 0], sizes = [8, 128], strides = [1, 1]} : vector<8x256xf32> to vector<8x128xf32>
    %88 = vector.extract_strided_slice %86 {offsets = [0, 128], sizes = [8, 128], strides = [1, 1]} : vector<8x256xf32> to vector<8x128xf32>
    %89 = arith.maximumf %87, %88 : vector<8x128xf32>
    %90 = vector.broadcast %3 : vector<1x128xf32> to vector<8x128xf32>
    %91 = arith.addf %89, %90 : vector<8x128xf32>
    %cst_25 = arith.constant 0.000000e+00 : f32
    %92 = vector.broadcast %cst_25 : f32 to vector<8x128xf32>
    %93 = arith.maximumf %91, %92 : vector<8x128xf32>
    %94 = arith.truncf %93 : vector<8x128xf32> to vector<8x128xbf16>
    %95 = vector.extract_strided_slice %0 {offsets = [0, 336], sizes = [8, 140], strides = [1, 1]} : vector<8x784xf32> to vector<8x140xf32>
    %96 = arith.truncf %95 : vector<8x140xf32> to vector<8x140xbf16>
    %cst_26 = arith.constant dense<0.000000e+00> : vector<8x256xf32>
    %97 = tpu.matmul %96, %1, %cst_26 {dimension_numbers = #tpu.dot_dimension_numbers<[1], [0], [0], [1], [0, 0, 1, 1], [], []>} : vector<8x140xbf16>, vector<140x256xbf16>, vector<8x256xf32> -> vector<8x256xf32>
    %98 = vector.extract_strided_slice %0 {offsets = [0, 364], sizes = [8, 140], strides = [1, 1]} : vector<8x784xf32> to vector<8x140xf32>
    %99 = arith.truncf %98 : vector<8x140xf32> to vector<8x140xbf16>
    %cst_27 = arith.constant dense<0.000000e+00> : vector<8x256xf32>
    %100 = tpu.matmul %99, %1, %cst_27 {dimension_numbers = #tpu.dot_dimension_numbers<[1], [0], [0], [1], [0, 0, 1, 1], [], []>} : vector<8x140xbf16>, vector<140x256xbf16>, vector<8x256xf32> -> vector<8x256xf32>
    %101 = arith.maximumf %97, %100 : vector<8x256xf32>
    %102 = vector.extract_strided_slice %101 {offsets = [0, 0], sizes = [8, 128], strides = [1, 1]} : vector<8x256xf32> to vector<8x128xf32>
    %103 = vector.extract_strided_slice %101 {offsets = [0, 128], sizes = [8, 128], strides = [1, 1]} : vector<8x256xf32> to vector<8x128xf32>
    %104 = arith.maximumf %102, %103 : vector<8x128xf32>
    %105 = vector.broadcast %3 : vector<1x128xf32> to vector<8x128xf32>
    %106 = arith.addf %104, %105 : vector<8x128xf32>
    %cst_28 = arith.constant 0.000000e+00 : f32
    %107 = vector.broadcast %cst_28 : f32 to vector<8x128xf32>
    %108 = arith.maximumf %106, %107 : vector<8x128xf32>
    %109 = arith.truncf %108 : vector<8x128xf32> to vector<8x128xbf16>
    %110 = vector.extract_strided_slice %0 {offsets = [0, 392], sizes = [8, 140], strides = [1, 1]} : vector<8x784xf32> to vector<8x140xf32>
    %111 = arith.truncf %110 : vector<8x140xf32> to vector<8x140xbf16>
    %cst_29 = arith.constant dense<0.000000e+00> : vector<8x256xf32>
    %112 = tpu.matmul %111, %1, %cst_29 {dimension_numbers = #tpu.dot_dimension_numbers<[1], [0], [0], [1], [0, 0, 1, 1], [], []>} : vector<8x140xbf16>, vector<140x256xbf16>, vector<8x256xf32> -> vector<8x256xf32>
    %113 = vector.extract_strided_slice %0 {offsets = [0, 420], sizes = [8, 140], strides = [1, 1]} : vector<8x784xf32> to vector<8x140xf32>
    %114 = arith.truncf %113 : vector<8x140xf32> to vector<8x140xbf16>
    %cst_30 = arith.constant dense<0.000000e+00> : vector<8x256xf32>
    %115 = tpu.matmul %114, %1, %cst_30 {dimension_numbers = #tpu.dot_dimension_numbers<[1], [0], [0], [1], [0, 0, 1, 1], [], []>} : vector<8x140xbf16>, vector<140x256xbf16>, vector<8x256xf32> -> vector<8x256xf32>
    %116 = arith.maximumf %112, %115 : vector<8x256xf32>
    %117 = vector.extract_strided_slice %116 {offsets = [0, 0], sizes = [8, 128], strides = [1, 1]} : vector<8x256xf32> to vector<8x128xf32>
    %118 = vector.extract_strided_slice %116 {offsets = [0, 128], sizes = [8, 128], strides = [1, 1]} : vector<8x256xf32> to vector<8x128xf32>
    %119 = arith.maximumf %117, %118 : vector<8x128xf32>
    %120 = vector.broadcast %3 : vector<1x128xf32> to vector<8x128xf32>
    %121 = arith.addf %119, %120 : vector<8x128xf32>
    %cst_31 = arith.constant 0.000000e+00 : f32
    %122 = vector.broadcast %cst_31 : f32 to vector<8x128xf32>
    %123 = arith.maximumf %121, %122 : vector<8x128xf32>
    %124 = arith.truncf %123 : vector<8x128xf32> to vector<8x128xbf16>
    %125 = vector.extract_strided_slice %0 {offsets = [0, 448], sizes = [8, 140], strides = [1, 1]} : vector<8x784xf32> to vector<8x140xf32>
    %126 = arith.truncf %125 : vector<8x140xf32> to vector<8x140xbf16>
    %cst_32 = arith.constant dense<0.000000e+00> : vector<8x256xf32>
    %127 = tpu.matmul %126, %1, %cst_32 {dimension_numbers = #tpu.dot_dimension_numbers<[1], [0], [0], [1], [0, 0, 1, 1], [], []>} : vector<8x140xbf16>, vector<140x256xbf16>, vector<8x256xf32> -> vector<8x256xf32>
    %128 = vector.extract_strided_slice %0 {offsets = [0, 476], sizes = [8, 140], strides = [1, 1]} : vector<8x784xf32> to vector<8x140xf32>
    %129 = arith.truncf %128 : vector<8x140xf32> to vector<8x140xbf16>
    %cst_33 = arith.constant dense<0.000000e+00> : vector<8x256xf32>
    %130 = tpu.matmul %129, %1, %cst_33 {dimension_numbers = #tpu.dot_dimension_numbers<[1], [0], [0], [1], [0, 0, 1, 1], [], []>} : vector<8x140xbf16>, vector<140x256xbf16>, vector<8x256xf32> -> vector<8x256xf32>
    %131 = arith.maximumf %127, %130 : vector<8x256xf32>
    %132 = vector.extract_strided_slice %131 {offsets = [0, 0], sizes = [8, 128], strides = [1, 1]} : vector<8x256xf32> to vector<8x128xf32>
    %133 = vector.extract_strided_slice %131 {offsets = [0, 128], sizes = [8, 128], strides = [1, 1]} : vector<8x256xf32> to vector<8x128xf32>
    %134 = arith.maximumf %132, %133 : vector<8x128xf32>
    %135 = vector.broadcast %3 : vector<1x128xf32> to vector<8x128xf32>
    %136 = arith.addf %134, %135 : vector<8x128xf32>
    %cst_34 = arith.constant 0.000000e+00 : f32
    %137 = vector.broadcast %cst_34 : f32 to vector<8x128xf32>
    %138 = arith.maximumf %136, %137 : vector<8x128xf32>
    %139 = arith.truncf %138 : vector<8x128xf32> to vector<8x128xbf16>
    %140 = vector.extract_strided_slice %0 {offsets = [0, 504], sizes = [8, 140], strides = [1, 1]} : vector<8x784xf32> to vector<8x140xf32>
    %141 = arith.truncf %140 : vector<8x140xf32> to vector<8x140xbf16>
    %cst_35 = arith.constant dense<0.000000e+00> : vector<8x256xf32>
    %142 = tpu.matmul %141, %1, %cst_35 {dimension_numbers = #tpu.dot_dimension_numbers<[1], [0], [0], [1], [0, 0, 1, 1], [], []>} : vector<8x140xbf16>, vector<140x256xbf16>, vector<8x256xf32> -> vector<8x256xf32>
    %143 = vector.extract_strided_slice %0 {offsets = [0, 532], sizes = [8, 140], strides = [1, 1]} : vector<8x784xf32> to vector<8x140xf32>
    %144 = arith.truncf %143 : vector<8x140xf32> to vector<8x140xbf16>
    %cst_36 = arith.constant dense<0.000000e+00> : vector<8x256xf32>
    %145 = tpu.matmul %144, %1, %cst_36 {dimension_numbers = #tpu.dot_dimension_numbers<[1], [0], [0], [1], [0, 0, 1, 1], [], []>} : vector<8x140xbf16>, vector<140x256xbf16>, vector<8x256xf32> -> vector<8x256xf32>
    %146 = arith.maximumf %142, %145 : vector<8x256xf32>
    %147 = vector.extract_strided_slice %146 {offsets = [0, 0], sizes = [8, 128], strides = [1, 1]} : vector<8x256xf32> to vector<8x128xf32>
    %148 = vector.extract_strided_slice %146 {offsets = [0, 128], sizes = [8, 128], strides = [1, 1]} : vector<8x256xf32> to vector<8x128xf32>
    %149 = arith.maximumf %147, %148 : vector<8x128xf32>
    %150 = vector.broadcast %3 : vector<1x128xf32> to vector<8x128xf32>
    %151 = arith.addf %149, %150 : vector<8x128xf32>
    %cst_37 = arith.constant 0.000000e+00 : f32
    %152 = vector.broadcast %cst_37 : f32 to vector<8x128xf32>
    %153 = arith.maximumf %151, %152 : vector<8x128xf32>
    %154 = arith.truncf %153 : vector<8x128xf32> to vector<8x128xbf16>
    %155 = vector.extract_strided_slice %0 {offsets = [0, 560], sizes = [8, 140], strides = [1, 1]} : vector<8x784xf32> to vector<8x140xf32>
    %156 = arith.truncf %155 : vector<8x140xf32> to vector<8x140xbf16>
    %cst_38 = arith.constant dense<0.000000e+00> : vector<8x256xf32>
    %157 = tpu.matmul %156, %1, %cst_38 {dimension_numbers = #tpu.dot_dimension_numbers<[1], [0], [0], [1], [0, 0, 1, 1], [], []>} : vector<8x140xbf16>, vector<140x256xbf16>, vector<8x256xf32> -> vector<8x256xf32>
    %158 = vector.extract_strided_slice %0 {offsets = [0, 588], sizes = [8, 140], strides = [1, 1]} : vector<8x784xf32> to vector<8x140xf32>
    %159 = arith.truncf %158 : vector<8x140xf32> to vector<8x140xbf16>
    %cst_39 = arith.constant dense<0.000000e+00> : vector<8x256xf32>
    %160 = tpu.matmul %159, %1, %cst_39 {dimension_numbers = #tpu.dot_dimension_numbers<[1], [0], [0], [1], [0, 0, 1, 1], [], []>} : vector<8x140xbf16>, vector<140x256xbf16>, vector<8x256xf32> -> vector<8x256xf32>
    %161 = arith.maximumf %157, %160 : vector<8x256xf32>
    %162 = vector.extract_strided_slice %161 {offsets = [0, 0], sizes = [8, 128], strides = [1, 1]} : vector<8x256xf32> to vector<8x128xf32>
    %163 = vector.extract_strided_slice %161 {offsets = [0, 128], sizes = [8, 128], strides = [1, 1]} : vector<8x256xf32> to vector<8x128xf32>
    %164 = arith.maximumf %162, %163 : vector<8x128xf32>
    %165 = vector.broadcast %3 : vector<1x128xf32> to vector<8x128xf32>
    %166 = arith.addf %164, %165 : vector<8x128xf32>
    %cst_40 = arith.constant 0.000000e+00 : f32
    %167 = vector.broadcast %cst_40 : f32 to vector<8x128xf32>
    %168 = arith.maximumf %166, %167 : vector<8x128xf32>
    %169 = arith.truncf %168 : vector<8x128xf32> to vector<8x128xbf16>
    %170 = vector.extract_strided_slice %0 {offsets = [0, 616], sizes = [8, 140], strides = [1, 1]} : vector<8x784xf32> to vector<8x140xf32>
    %171 = arith.truncf %170 : vector<8x140xf32> to vector<8x140xbf16>
    %cst_41 = arith.constant dense<0.000000e+00> : vector<8x256xf32>
    %172 = tpu.matmul %171, %1, %cst_41 {dimension_numbers = #tpu.dot_dimension_numbers<[1], [0], [0], [1], [0, 0, 1, 1], [], []>} : vector<8x140xbf16>, vector<140x256xbf16>, vector<8x256xf32> -> vector<8x256xf32>
    %173 = vector.extract_strided_slice %0 {offsets = [0, 644], sizes = [8, 140], strides = [1, 1]} : vector<8x784xf32> to vector<8x140xf32>
    %174 = arith.truncf %173 : vector<8x140xf32> to vector<8x140xbf16>
    %cst_42 = arith.constant dense<0.000000e+00> : vector<8x256xf32>
    %175 = tpu.matmul %174, %1, %cst_42 {dimension_numbers = #tpu.dot_dimension_numbers<[1], [0], [0], [1], [0, 0, 1, 1], [], []>} : vector<8x140xbf16>, vector<140x256xbf16>, vector<8x256xf32> -> vector<8x256xf32>
    %176 = arith.maximumf %172, %175 : vector<8x256xf32>
    %177 = vector.extract_strided_slice %176 {offsets = [0, 0], sizes = [8, 128], strides = [1, 1]} : vector<8x256xf32> to vector<8x128xf32>
    %178 = vector.extract_strided_slice %176 {offsets = [0, 128], sizes = [8, 128], strides = [1, 1]} : vector<8x256xf32> to vector<8x128xf32>
    %179 = arith.maximumf %177, %178 : vector<8x128xf32>
    %180 = vector.broadcast %3 : vector<1x128xf32> to vector<8x128xf32>
    %181 = arith.addf %179, %180 : vector<8x128xf32>
    %cst_43 = arith.constant 0.000000e+00 : f32
    %182 = vector.broadcast %cst_43 : f32 to vector<8x128xf32>
    %183 = arith.maximumf %181, %182 : vector<8x128xf32>
    %184 = arith.truncf %183 : vector<8x128xf32> to vector<8x128xbf16>
    %185 = tpu.concatenate %19, %34, %49, %64, %79, %94, %109, %124, %139, %154, %169, %184 in 1 : vector<8x128xbf16>, vector<8x128xbf16>, vector<8x128xbf16>, vector<8x128xbf16>, vector<8x128xbf16>, vector<8x128xbf16>, vector<8x128xbf16>, vector<8x128xbf16>, vector<8x128xbf16>, vector<8x128xbf16>, vector<8x128xbf16>, vector<8x128xbf16> -> vector<8x1536xbf16>
    %186 = vector.extract_strided_slice %185 {offsets = [0, 0], sizes = [8, 640], strides = [1, 1]} : vector<8x1536xbf16> to vector<8x640xbf16>
    %cst_44 = arith.constant dense<0.000000e+00> : vector<8x256xf32>
    %187 = tpu.matmul %186, %2, %cst_44 {dimension_numbers = #tpu.dot_dimension_numbers<[1], [0], [0], [1], [0, 0, 1, 1], [], []>} : vector<8x640xbf16>, vector<640x256xbf16>, vector<8x256xf32> -> vector<8x256xf32>
    %188 = vector.extract_strided_slice %185 {offsets = [0, 128], sizes = [8, 640], strides = [1, 1]} : vector<8x1536xbf16> to vector<8x640xbf16>
    %cst_45 = arith.constant dense<0.000000e+00> : vector<8x256xf32>
    %189 = tpu.matmul %188, %2, %cst_45 {dimension_numbers = #tpu.dot_dimension_numbers<[1], [0], [0], [1], [0, 0, 1, 1], [], []>} : vector<8x640xbf16>, vector<640x256xbf16>, vector<8x256xf32> -> vector<8x256xf32>
    %190 = arith.maximumf %187, %189 : vector<8x256xf32>
    %191 = vector.extract_strided_slice %190 {offsets = [0, 0], sizes = [8, 128], strides = [1, 1]} : vector<8x256xf32> to vector<8x128xf32>
    %192 = vector.extract_strided_slice %190 {offsets = [0, 128], sizes = [8, 128], strides = [1, 1]} : vector<8x256xf32> to vector<8x128xf32>
    %193 = arith.maximumf %191, %192 : vector<8x128xf32>
    %194 = vector.broadcast %4 : vector<1x128xf32> to vector<8x128xf32>
    %195 = arith.addf %193, %194 : vector<8x128xf32>
    %cst_46 = arith.constant 0.000000e+00 : f32
    %196 = vector.broadcast %cst_46 : f32 to vector<8x128xf32>
    %197 = arith.maximumf %195, %196 : vector<8x128xf32>
    %198 = arith.truncf %197 : vector<8x128xf32> to vector<8x128xbf16>
    %199 = vector.extract_strided_slice %185 {offsets = [0, 256], sizes = [8, 640], strides = [1, 1]} : vector<8x1536xbf16> to vector<8x640xbf16>
    %cst_47 = arith.constant dense<0.000000e+00> : vector<8x256xf32>
    %200 = tpu.matmul %199, %2, %cst_47 {dimension_numbers = #tpu.dot_dimension_numbers<[1], [0], [0], [1], [0, 0, 1, 1], [], []>} : vector<8x640xbf16>, vector<640x256xbf16>, vector<8x256xf32> -> vector<8x256xf32>
    %201 = vector.extract_strided_slice %185 {offsets = [0, 384], sizes = [8, 640], strides = [1, 1]} : vector<8x1536xbf16> to vector<8x640xbf16>
    %cst_48 = arith.constant dense<0.000000e+00> : vector<8x256xf32>
    %202 = tpu.matmul %201, %2, %cst_48 {dimension_numbers = #tpu.dot_dimension_numbers<[1], [0], [0], [1], [0, 0, 1, 1], [], []>} : vector<8x640xbf16>, vector<640x256xbf16>, vector<8x256xf32> -> vector<8x256xf32>
    %203 = arith.maximumf %200, %202 : vector<8x256xf32>
    %204 = vector.extract_strided_slice %203 {offsets = [0, 0], sizes = [8, 128], strides = [1, 1]} : vector<8x256xf32> to vector<8x128xf32>
    %205 = vector.extract_strided_slice %203 {offsets = [0, 128], sizes = [8, 128], strides = [1, 1]} : vector<8x256xf32> to vector<8x128xf32>
    %206 = arith.maximumf %204, %205 : vector<8x128xf32>
    %207 = vector.broadcast %4 : vector<1x128xf32> to vector<8x128xf32>
    %208 = arith.addf %206, %207 : vector<8x128xf32>
    %cst_49 = arith.constant 0.000000e+00 : f32
    %209 = vector.broadcast %cst_49 : f32 to vector<8x128xf32>
    %210 = arith.maximumf %208, %209 : vector<8x128xf32>
    %211 = arith.truncf %210 : vector<8x128xf32> to vector<8x128xbf16>
    %212 = vector.extract_strided_slice %185 {offsets = [0, 512], sizes = [8, 640], strides = [1, 1]} : vector<8x1536xbf16> to vector<8x640xbf16>
    %cst_50 = arith.constant dense<0.000000e+00> : vector<8x256xf32>
    %213 = tpu.matmul %212, %2, %cst_50 {dimension_numbers = #tpu.dot_dimension_numbers<[1], [0], [0], [1], [0, 0, 1, 1], [], []>} : vector<8x640xbf16>, vector<640x256xbf16>, vector<8x256xf32> -> vector<8x256xf32>
    %214 = vector.extract_strided_slice %185 {offsets = [0, 640], sizes = [8, 640], strides = [1, 1]} : vector<8x1536xbf16> to vector<8x640xbf16>
    %cst_51 = arith.constant dense<0.000000e+00> : vector<8x256xf32>
    %215 = tpu.matmul %214, %2, %cst_51 {dimension_numbers = #tpu.dot_dimension_numbers<[1], [0], [0], [1], [0, 0, 1, 1], [], []>} : vector<8x640xbf16>, vector<640x256xbf16>, vector<8x256xf32> -> vector<8x256xf32>
    %216 = arith.maximumf %213, %215 : vector<8x256xf32>
    %217 = vector.extract_strided_slice %216 {offsets = [0, 0], sizes = [8, 128], strides = [1, 1]} : vector<8x256xf32> to vector<8x128xf32>
    %218 = vector.extract_strided_slice %216 {offsets = [0, 128], sizes = [8, 128], strides = [1, 1]} : vector<8x256xf32> to vector<8x128xf32>
    %219 = arith.maximumf %217, %218 : vector<8x128xf32>
    %220 = vector.broadcast %4 : vector<1x128xf32> to vector<8x128xf32>
    %221 = arith.addf %219, %220 : vector<8x128xf32>
    %cst_52 = arith.constant 0.000000e+00 : f32
    %222 = vector.broadcast %cst_52 : f32 to vector<8x128xf32>
    %223 = arith.maximumf %221, %222 : vector<8x128xf32>
    %224 = arith.truncf %223 : vector<8x128xf32> to vector<8x128xbf16>
    %225 = vector.extract_strided_slice %185 {offsets = [0, 768], sizes = [8, 640], strides = [1, 1]} : vector<8x1536xbf16> to vector<8x640xbf16>
    %cst_53 = arith.constant dense<0.000000e+00> : vector<8x256xf32>
    %226 = tpu.matmul %225, %2, %cst_53 {dimension_numbers = #tpu.dot_dimension_numbers<[1], [0], [0], [1], [0, 0, 1, 1], [], []>} : vector<8x640xbf16>, vector<640x256xbf16>, vector<8x256xf32> -> vector<8x256xf32>
    %227 = vector.extract_strided_slice %185 {offsets = [0, 896], sizes = [8, 640], strides = [1, 1]} : vector<8x1536xbf16> to vector<8x640xbf16>
    %cst_54 = arith.constant dense<0.000000e+00> : vector<8x256xf32>
    %228 = tpu.matmul %227, %2, %cst_54 {dimension_numbers = #tpu.dot_dimension_numbers<[1], [0], [0], [1], [0, 0, 1, 1], [], []>} : vector<8x640xbf16>, vector<640x256xbf16>, vector<8x256xf32> -> vector<8x256xf32>
    %229 = arith.maximumf %226, %228 : vector<8x256xf32>
    %230 = vector.extract_strided_slice %229 {offsets = [0, 0], sizes = [8, 128], strides = [1, 1]} : vector<8x256xf32> to vector<8x128xf32>
    %231 = vector.extract_strided_slice %229 {offsets = [0, 128], sizes = [8, 128], strides = [1, 1]} : vector<8x256xf32> to vector<8x128xf32>
    %232 = arith.maximumf %230, %231 : vector<8x128xf32>
    %233 = vector.broadcast %4 : vector<1x128xf32> to vector<8x128xf32>
    %234 = arith.addf %232, %233 : vector<8x128xf32>
    %cst_55 = arith.constant 0.000000e+00 : f32
    %235 = vector.broadcast %cst_55 : f32 to vector<8x128xf32>
    %236 = arith.maximumf %234, %235 : vector<8x128xf32>
    %237 = arith.truncf %236 : vector<8x128xf32> to vector<8x128xbf16>
    %238 = tpu.concatenate %198, %211, %224, %237 in 1 : vector<8x128xbf16>, vector<8x128xbf16>, vector<8x128xbf16>, vector<8x128xbf16> -> vector<8x512xbf16>
    %c0_56 = arith.constant 0 : index
    %c0_57 = arith.constant 0 : index
    %239 = vector.load %arg4[%c0_56, %c0_57] : memref<512x128xbf16, #tpu.memory_space<vmem>>, vector<512x128xbf16>
    %cst_58 = arith.constant dense<0.000000e+00> : vector<8x128xf32>
    %240 = tpu.matmul %238, %239, %cst_58 {dimension_numbers = #tpu.dot_dimension_numbers<[1], [0], [0], [1], [0, 0, 1, 1], [], []>} : vector<8x512xbf16>, vector<512x128xbf16>, vector<8x128xf32> -> vector<8x128xf32>
    %c0_59 = arith.constant 0 : index
    %c0_60 = arith.constant 0 : index
    %241 = vector.load %arg9[%c0_59, %c0_60] : memref<1x128xf32, #tpu.memory_space<vmem>>, vector<1x128xf32>
    %242 = vector.broadcast %241 : vector<1x128xf32> to vector<8x128xf32>
    %243 = arith.addf %240, %242 : vector<8x128xf32>
    %cst_61 = arith.constant 0.000000e+00 : f32
    %244 = vector.broadcast %cst_61 : f32 to vector<8x128xf32>
    %245 = arith.maximumf %243, %244 : vector<8x128xf32>
    %246 = arith.truncf %245 : vector<8x128xf32> to vector<8x128xbf16>
    %c0_62 = arith.constant 0 : index
    %c0_63 = arith.constant 0 : index
    %247 = vector.load %arg5[%c0_62, %c0_63] : memref<128x128xbf16, #tpu.memory_space<vmem>>, vector<128x128xbf16>
    %cst_64 = arith.constant dense<0.000000e+00> : vector<8x128xf32>
    %248 = tpu.matmul %246, %247, %cst_64 {dimension_numbers = #tpu.dot_dimension_numbers<[1], [0], [0], [1], [0, 0, 1, 1], [], []>} : vector<8x128xbf16>, vector<128x128xbf16>, vector<8x128xf32> -> vector<8x128xf32>
    %c0_65 = arith.constant 0 : index
    %c0_66 = arith.constant 0 : index
    %249 = vector.load %arg10[%c0_65, %c0_66] : memref<1x128xf32, #tpu.memory_space<vmem>>, vector<1x128xf32>
    %250 = vector.broadcast %249 : vector<1x128xf32> to vector<8x128xf32>
    %251 = arith.addf %248, %250 : vector<8x128xf32>
    %cst_67 = arith.constant 0.000000e+00 : f32
    %252 = vector.broadcast %cst_67 : f32 to vector<8x128xf32>
    %253 = arith.maximumf %251, %252 : vector<8x128xf32>
    %254 = arith.truncf %253 : vector<8x128xf32> to vector<8x128xbf16>
    %c0_68 = arith.constant 0 : index
    %c0_69 = arith.constant 0 : index
    %255 = vector.load %arg6[%c0_68, %c0_69] : memref<128x128xbf16, #tpu.memory_space<vmem>>, vector<128x128xbf16>
    %cst_70 = arith.constant dense<0.000000e+00> : vector<8x128xf32>
    %256 = tpu.matmul %254, %255, %cst_70 {dimension_numbers = #tpu.dot_dimension_numbers<[1], [0], [0], [1], [0, 0, 1, 1], [], []>} : vector<8x128xbf16>, vector<128x128xbf16>, vector<8x128xf32> -> vector<8x128xf32>
    %c0_71 = arith.constant 0 : index
    %c0_72 = arith.constant 0 : index
    %257 = vector.load %arg11[%c0_71, %c0_72] : memref<1x128xf32, #tpu.memory_space<vmem>>, vector<1x128xf32>
    %258 = vector.broadcast %257 : vector<1x128xf32> to vector<8x128xf32>
    %259 = arith.addf %256, %258 : vector<8x128xf32>
    %c0_73 = arith.constant 0 : index
    %c0_74 = arith.constant 0 : index
    %260 = vector.load %arg12[%c0_73, %c0_74] : memref<8x128xf32, #tpu.memory_space<vmem>>, vector<8x128xf32>
    tpu.vector_store %arg12[%c0_73, %c0_74], %259 {strides = array<i32>} : memref<8x128xf32, #tpu.memory_space<vmem>>, vector<8x128xf32>,
    return
  }
  func.func @transform_0(%arg0: i32) -> (i32, i32) {
    %c0_i32 = arith.constant 0 : i32
    %c0_i32_0 = arith.constant 0 : i32
    return %arg0, %c0_i32 : i32, i32
  }
  func.func @transform_1(%arg0: i32) -> (i32, i32) {
    %c0_i32 = arith.constant 0 : i32
    %c0_i32_0 = arith.constant 0 : i32
    %c0_i32_1 = arith.constant 0 : i32
    return %c0_i32, %c0_i32_0 : i32, i32
  }
  func.func @transform_2(%arg0: i32) -> (i32, i32) {
    %c0_i32 = arith.constant 0 : i32
    %c0_i32_0 = arith.constant 0 : i32
    %c0_i32_1 = arith.constant 0 : i32
    return %c0_i32, %c0_i32_0 : i32, i32
  }
  func.func @transform_3(%arg0: i32) -> (i32, i32) {
    %c0_i32 = arith.constant 0 : i32
    %c0_i32_0 = arith.constant 0 : i32
    %c0_i32_1 = arith.constant 0 : i32
    return %c0_i32, %c0_i32_0 : i32, i32
  }
  func.func @transform_4(%arg0: i32) -> (i32, i32) {
    %c0_i32 = arith.constant 0 : i32
    %c0_i32_0 = arith.constant 0 : i32
    %c0_i32_1 = arith.constant 0 : i32
    return %c0_i32, %c0_i32_0 : i32, i32
  }
  func.func @transform_5(%arg0: i32) -> (i32, i32) {
    %c0_i32 = arith.constant 0 : i32
    %c0_i32_0 = arith.constant 0 : i32
    %c0_i32_1 = arith.constant 0 : i32
    return %c0_i32, %c0_i32_0 : i32, i32
  }
  func.func @transform_6(%arg0: i32) -> (i32, i32) {
    %c0_i32 = arith.constant 0 : i32
    %c0_i32_0 = arith.constant 0 : i32
    %c0_i32_1 = arith.constant 0 : i32
    return %c0_i32, %c0_i32_0 : i32, i32
  }
  func.func @transform_7(%arg0: i32) -> (i32, i32) {
    %c0_i32 = arith.constant 0 : i32
    %c0_i32_0 = arith.constant 0 : i32
    %c0_i32_1 = arith.constant 0 : i32
    return %c0_i32, %c0_i32_0 : i32, i32
  }
  func.func @transform_8(%arg0: i32) -> (i32, i32) {
    %c0_i32 = arith.constant 0 : i32
    %c0_i32_0 = arith.constant 0 : i32
    %c0_i32_1 = arith.constant 0 : i32
    return %c0_i32, %c0_i32_0 : i32, i32
  }
  func.func @transform_9(%arg0: i32) -> (i32, i32) {
    %c0_i32 = arith.constant 0 : i32
    %c0_i32_0 = arith.constant 0 : i32
    %c0_i32_1 = arith.constant 0 : i32
    return %c0_i32, %c0_i32_0 : i32, i32
  }
  func.func @transform_10(%arg0: i32) -> (i32, i32) {
    %c0_i32 = arith.constant 0 : i32
    %c0_i32_0 = arith.constant 0 : i32
    %c0_i32_1 = arith.constant 0 : i32
    return %c0_i32, %c0_i32_0 : i32, i32
  }
  func.func @transform_11(%arg0: i32) -> (i32, i32) {
    %c0_i32 = arith.constant 0 : i32
    %c0_i32_0 = arith.constant 0 : i32
    return %arg0, %c0_i32 : i32, i32
  }
}

</mosaic_0001>

<bundles_post_ra>
// kernel: net_forward.1
= control target key start
LH: loop header
LB: loop body
LE: loop exit
PB: predicated region body
PF: predicated region fallthrough
CT: control target
= control target key end

     0   :  { %16 = vsyncpa [#allocation3], 0  ;;  %s6454_s0 = inlined_call_operand.vmem [shape: f32[8,784], index: 0, kind: input, shape index: {}]   ;;  %s6455_s1 = inlined_call_operand.hbm [shape: bf16[140,256], index: 1, kind: input, shape index: {}]   ;;  %s6456_s2 = inlined_call_operand.hbm [shape: bf16[640,256], index: 2, kind: input, shape index: {}]   ;;  %s6457_s3 = inlined_call_operand.vmem [shape: bf16[512,128], index: 3, kind: input, shape index: {}]   ;;  %s6458_s4 = inlined_call_operand.hbm [shape: bf16[128,128], index: 4, kind: input, shape index: {}]   ;;  %s6459_s5 = inlined_call_operand.hbm [shape: bf16[128,128], index: 5, kind: input, shape index: {}]   ;;  %s6460_s6 = inlined_call_operand.vmem [shape: f32[1,128], index: 6, kind: input, shape index: {}]   ;;  %s6461_s7 = inlined_call_operand.vmem [shape: f32[1,128], index: 7, kind: input, shape index: {}]   ;;  %s6462_s8 = inlined_call_operand.vmem [shape: f32[1,128], index: 8, kind: input, shape index: {}]   ;;  %s6463_s9 = inlined_call_operand.vmem [shape: f32[1,128], index: 9, kind: input, shape index: {}]   ;;  %s6464_s10 = inlined_call_operand.vmem [shape: f32[1,128], index: 10, kind: input, shape index: {}]   ;;  %s6465_s11 = inlined_call_operand.vmem [shape: f32[8,128], index: 11, kind: output, shape index: {}]  }
   0x1   :  { %17 = vsyncpa [#allocation5], 0 }
   0x2   :  { %18 = vsyncpa [#allocation8], 0  ;;  %s4386_s17 = smov [#allocation4]   ;;  %s4387_s19 = smov [#allocation2]  }
   0x3   :  { %s38_s18 = sshll.u32 %s4386_s17, 4  ;;  %s26_s20 = sshll.u32 %s4387_s19, 4  ;;  %s39_s18 = int_to_ptr.vmem [resolvable:$true] %s38_s18  ;;  %s4477_s20 = int_to_ptr.vmem [resolvable:$true] %s26_s20 }
   0x4   :  { %s4292_s23 = scalar_lea.hbm %s6456_s2, 10240 }
   0x5   :  { %p4293_p0 = scmp.ne.s32.totalorder %s6456_s2, %s4292_s23  ;;  %p4296_p1 = scmp.lt.u32.totalorder %s4292_s23, %s6456_s2 }
   0x7   :  { %p4298_p2 = pnand %p4296_p1, %p4293_p0 }
   0x9   :  { %4301 = shalt.err (!%p4298_p2)
}
   0xa   :  { %s4302_s28 = scalar_lea.vmem %s39_s18, 10240  ;;  %p4307_p4 = scmp.lt.s32.totalorder %s39_s18, %s39_s18 }
   0xb   :  { %p4303_p3 = scmp.ne.s32.totalorder %s39_s18, %s4302_s28  ;;  %p4308_p5 = scmp.lt.s32.totalorder %s4302_s28, %s4302_s28 }
   0xd   :  { %p4309_p6 = por %p4308_p5, %p4307_p4 }
   0xf   :  { %p4310_p7 = pnand %p4309_p6, %p4303_p3 }
  0x11   :  { %4313 = shalt.err (!%p4310_p7)
}
  0x12   :  { %s4388_s29 = smov 128   ;;  %s4389_s30 = smov 8  }
  0x13   :  { %44 = dma.hbm_to_vmem [thread:$0]  %s6456_s2, 10240, %s39_s18, [#allocation5], %s4388_s29, %s4388_s29, %s4389_s30  }
  0x14   :  { %s4314_s16 = scalar_lea.hbm %s6455_s1, 2304 }
  0x15   :  { %p4315_p8 = scmp.ne.s32.totalorder %s6455_s1, %s4314_s16  ;;  %p4318_p9 = scmp.lt.u32.totalorder %s4314_s16, %s6455_s1 }
  0x17   :  { %p4320_p10 = pnand %p4318_p9, %p4315_p8 }
  0x19   :  { %4323 = shalt.err (!%p4320_p10)
}
  0x1a   :  { %s4324_s23 = scalar_lea.vmem %s4477_s20, 2304  ;;  %p4329_p12 = scmp.lt.s32.totalorder %s4477_s20, %s4477_s20 }
  0x1b   :  { %p4325_p11 = scmp.ne.s32.totalorder %s4477_s20, %s4324_s23  ;;  %p4330_p13 = scmp.lt.s32.totalorder %s4324_s23, %s4324_s23 }
  0x1d   :  { %p4331_p0 = por %p4330_p13, %p4329_p12 }
  0x1f   :  { %p4332_p1 = pnand %p4331_p0, %p4325_p11 }
  0x21   :  { %4335 = shalt.err (!%p4332_p1)
}
  0x22   :  { %32 = dma.hbm_to_vmem [thread:$0]  %s6455_s1, 2304, %s4477_s20, [#allocation3], %s4388_s29, %s4388_s29, %s4389_s30  }
  0x23   :  { %s4390_s24 = smov [#allocation6]   ;;  %s4336_s28 = scalar_lea.hbm %s6458_s4, 1024 }
  0x24   :  { %s52_s25 = sshll.u32 %s4390_s24, 4  ;;  %p4337_p2 = scmp.ne.s32.totalorder %s6458_s4, %s4336_s28  ;;  %s53_s25 = int_to_ptr.vmem [resolvable:$true] %s52_s25 }
  0x25   :  { %p4340_p3 = scmp.lt.u32.totalorder %s4336_s28, %s6458_s4 }
  0x27   :  { %p4342_p4 = pnand %p4340_p3, %p4337_p2 }
  0x29   :  { %4345 = shalt.err (!%p4342_p4)
}
  0x2a   :  { %s4346_s16 = scalar_lea.vmem %s53_s25, 1024  ;;  %p4351_p6 = scmp.lt.s32.totalorder %s53_s25, %s53_s25 }
  0x2b   :  { %p4347_p5 = scmp.ne.s32.totalorder %s53_s25, %s4346_s16  ;;  %p4352_p7 = scmp.lt.s32.totalorder %s4346_s16, %s4346_s16 }
  0x2d   :  { %p4353_p8 = por %p4352_p7, %p4351_p6 }
  0x2f   :  { %p4354_p9 = pnand %p4353_p8, %p4347_p5 }
  0x31   :  { %4357 = shalt.err (!%p4354_p9)
}
  0x32   :  { %s4391_s1 = smov 64   ;;  %s4392_s20 = smov 4  }
  0x33   :  { %58 = dma.hbm_to_vmem [thread:$0]  %s6458_s4, 1024, %s53_s25, [#allocation5], %s4391_s1, %s4391_s1, %s4392_s20  }
  0x34   :  { %s4393_s19 = smov [#allocation7]   ;;  %s4358_s2 = scalar_lea.hbm %s6459_s5, 1024 }
  0x35   :  { %s64_s21 = sshll.u32 %s4393_s19, 4  ;;  %p4359_p10 = scmp.ne.s32.totalorder %s6459_s5, %s4358_s2  ;;  %s65_s21 = int_to_ptr.vmem [resolvable:$true] %s64_s21 }
  0x36   :  { %p4362_p11 = scmp.lt.u32.totalorder %s4358_s2, %s6459_s5 }
  0x38   :  { %p4364_p12 = pnand %p4362_p11, %p4359_p10 }
  0x3a   :  { %4367 = shalt.err (!%p4364_p12)
}
  0x3b   :  { %s4368_s28 = scalar_lea.vmem %s65_s21, 1024  ;;  %p4373_p0 = scmp.lt.s32.totalorder %s65_s21, %s65_s21 }
  0x3c   :  { %p4369_p13 = scmp.ne.s32.totalorder %s65_s21, %s4368_s28  ;;  %p4374_p1 = scmp.lt.s32.totalorder %s4368_s28, %s4368_s28 }
  0x3e   :  { %p4375_p2 = por %p4374_p1, %p4373_p0 }
  0x40   :  { %p4376_p3 = pnand %p4375_p2, %p4369_p13 }
  0x42   :  { %4379 = shalt.err (!%p4376_p3)
}
  0x43   :  { %70 = dma.hbm_to_vmem [thread:$0]  %s6459_s5, 1024, %s65_s21, [#allocation8], %s4391_s1, %s4391_s1, %s4392_s20  }
  0x44   :  { %4380 = dma.done.wait [#allocation3], 2304  }
  0x45   :  { %4381 = vsyncadd [#allocation3], 4294964992 }
  0x46   :  { %4382 = dma.done.wait [#allocation5], 11264  }
  0x47   :  { %4383 = vsyncadd [#allocation5], 4294956032 }
  0x48   :  { %4384 = dma.done.wait [#allocation8], 1024  }
  0x49   :  { %4385 = vsyncadd [#allocation8], 4294966272  ;;  %v94_v0 = vld [vmem:[%s6454_s0] sm:$0xff]  ;;  %v95_v1 = vld [vmem:[%s6454_s0 + $0x8] sm:$0xff]  ;;  %vm291_vm0 = vcmask 97280   ;;  %s4394_s5 = smov 72  }
  0x4a   :  { %v4546_v2 = vpack.c.bf16 %v94_v0, %v94_v0  ;;  %v4548_v3 = vld [vmem:[#allocation2 + $0x4] ss:$8 sps:$4 sm:$0xff]   ;;  %v4550_v4 = vld [vmem:[#allocation2] ss:$8 sps:$4 sm:$0xff]   ;;  %v4552_v5 = vpack.c.bf16 %v95_v1, %v95_v1  ;;  %v4554_v6 = vld [vmem:[#allocation2 + $0x14] ss:$8 sps:$4 sm:$0xff]  }
  0x4b   :  { %s4395_s16 = smov 100   ;;  %302 = vmatprep.subr.bf16.mxu0 %v4548_v3  ;;  %v4562_v7 = vld [vmem:[#allocation2 + $0x10] ss:$8 sps:$4 sm:$0xff]   ;;  %355 = vmatprep.subr.bf16.mxu1 %v4548_v3  ;;  %v4566_v8 = vld [vmem:[#allocation2 + $0x24] ss:$8 sps:$4 sm:$0xff]   ;;  %s4396_s29 = smov 44  }
  0x4c   :  { %408 = vrot.lane.b32.xlu1 %v4546_v2, %s4394_s5  ;;  %345 = vrot.lane.b32.xlu0 %v4546_v2, %s4395_s16  ;;  %v4573_v9 = vld [vmem:[#allocation2 + $0x20] ss:$8 sps:$4 sm:$0xff]   ;;  %v4576_v10 = vld [vmem:[#allocation2 + $0x34] ss:$8 sps:$4 sm:$0xff]   ;;  %v4581_v11 = vld [vmem:[#allocation2 + $0x30] ss:$8 sps:$4 sm:$0xff]  }
  0x4d   :  { %3622 = vmatprep.mubr.msk.bf16.mxu0 %vm291_vm0, %v4552_v5  ;;  %303 = vmatpush1.bf16.msra.mxu0 %v4550_v4  ;;  %v96_v12 = vld [vmem:[%s6454_s0 + $0x10] sm:$0xff]  ;;  %v4588_v13 = vld [vmem:[#allocation2 + $0x44] ss:$8 sps:$4 sm:$0xff]   ;;  %s4397_s21 = smov 16   ;;  %v4594_v14 = vld [vmem:[#allocation2 + $0x40] ss:$8 sps:$4 sm:$0xff]  }
  0x4e   :  { %304 = vmatprep.subr.bf16.mxu0 %v4554_v6  ;;  %356 = vmatpush1.bf16.msra.mxu1 %v4550_v4  ;;  %v4596_v15 = vpack.c.bf16 %v96_v12, %v96_v12  ;;  %v4598_v16 = vld [vmem:[#allocation2 + $0x54] ss:$8 sps:$4 sm:$0xff]   ;;  %v4604_v17 = vld [vmem:[#allocation2 + $0x50] ss:$8 sps:$4 sm:$0xff]   ;;  %s4398_s22 = smov 116   ;;  %s4399_s18 = smov 88  }
  0x4f   :  { %357 = vmatprep.subr.bf16.mxu1 %v4554_v6  ;;  %v4608_v18 = vld [vmem:[#allocation2 + $0x64] ss:$8 sps:$4 sm:$0xff]   ;;  %v97_v19 = vld [vmem:[%s6454_s0 + $0x18] sm:$0xff]  ;;  %v4617_v20 = vld [vmem:[#allocation2 + $0x60] ss:$8 sps:$4 sm:$0xff]   ;;  %s4400_s24 = smov 60  }
  0x50   :  { %410 = vrot.lane.b32.xlu1 %v4552_v5, %s4394_s5  ;;  %347 = vrot.lane.b32.xlu0 %v4552_v5, %s4395_s16  ;;  %v4621_v21 = vld [vmem:[#allocation2 + $0x74] ss:$8 sps:$4 sm:$0xff]   ;;  %v4627_v22 = vld [vmem:[#allocation2 + $0x70] ss:$8 sps:$4 sm:$0xff]   ;;  %v4631_v23 = vpack.c.bf16 %v97_v19, %v97_v19  ;;  %vm295_vm1 = vcmask 1045504   ;;  %s4401_s26 = smov 32  }
  0x51   :  { %305 = vmatpush1.bf16.msra.mxu0 %v4562_v7  ;;  %v4633_v24 = vld [vmem:[#allocation2 + $0x84] ss:$8 sps:$4 sm:$0x3f]   ;;  %v4025_v25 = vld [vmem:[#allocation2 + $0x80] ss:$8 sps:$4 sm:$0x3f]  }
  0x52   :  { %306 = vmatprep.subr.bf16.mxu0 %v4566_v8  ;;  %358 = vmatpush1.bf16.msra.mxu1 %v4562_v7  ;;  %v4648_v26 = vsel %vm295_vm1, %v4025_v25, 0  ;;  %s4402_s27 = smov 104   ;;  %s4404_s28 = smov 48   ;;  %v98_v27 = vld [vmem:[%s6454_s0 + $0x20] sm:$0xff]  ;;  %vm412_vm2 = vcmask 588800   ;;  %vm349_vm3 = vcmask 818176  }
  0x53   :  { %359 = vmatprep.subr.bf16.mxu1 %v4566_v8  ;;  %s4405_s4 = smov 20   ;;  %s4406_s13 = smov 120   ;;  %v4693_v28 = vpack.c.bf16 %v98_v27, %v98_v27  ;;  %vm463_vm4 = vcmask 359424   ;;  %vm520_vm5 = vcmask 130048   ;;  %v99_v43 = vld [vmem:[%s6454_s0 + $0x28] sm:$0xff]  ;;  %vm573_vm6 = vcmask 949248  }
  0x54   :  { %461 = vrot.lane.b32.xlu1 %v4552_v5, %s4396_s29  ;;  %459 = vrot.lane.b32.xlu0 %v4546_v2, %s4396_s29  ;;  %s4407_s14 = smov 92   ;;  %v4761_v44 = vpack.c.bf16 %v99_v43, %v99_v43  ;;  %vm630_vm7 = vcmask 719872   ;;  %s4410_s16 = smov 80   ;;  %vm681_vm8 = vcmask 490496   ;;  %vm738_vm9 = vcmask 261120  }
  0x55   :  { %307 = vmatpush1.bf16.msra.mxu0 %v4573_v9  ;;  %vm793_vm10 = vcmask 31744   ;;  %s4411_s29 = smov 52   ;;  %s4412_s17 = smov 24   ;;  %vm851_vm11 = vcmask 850944   ;;  %v4932_v12 = vld [vmem:[#allocation2 + $0x20] ss:$8 sps:$4 sm:$0xff]  }
  0x56   :  { %308 = vmatprep.subr.bf16.mxu0 %v4576_v10  ;;  %360 = vmatpush1.bf16.msra.mxu1 %v4573_v9  ;;  %v4952_v19 = vld [vmem:[#allocation2 + $0x54] ss:$8 sps:$4 sm:$0xff]   ;;  %vm902_vm12 = vcmask 621568   ;;  %vm959_vm13 = vcmask 392192   ;;  %v5001_v25 = vld [vmem:[#allocation2 + $0x64] ss:$8 sps:$4 sm:$0xff]  }
  0x57   :  { %361 = vmatprep.subr.bf16.mxu1 %v4576_v10  ;;  %vm1010_vm14 = vcmask 162816   ;;  %vm1069_vm15 = vcmask 982016  }
  0x58   :  { %518 = vrot.lane.b32.xlu1 %v4552_v5, %s4397_s21  ;;  %516 = vrot.lane.b32.xlu0 %v4546_v2, %s4397_s21 }
  0x59   :  { %309 = vmatpush1.bf16.msra.mxu0 %v4581_v11 }
  0x5a   :  { %310 = vmatprep.subr.bf16.mxu0 %v4588_v13  ;;  %362 = vmatpush1.bf16.msra.mxu1 %v4581_v11 }
  0x5b   :  { %363 = vmatprep.subr.bf16.mxu1 %v4588_v13 }
  0x5c   :  { %571 = vrot.lane.b32.xlu1 %v4596_v15, %s4398_s22  ;;  %569 = vrot.lane.b32.xlu0 %v4552_v5, %s4398_s22  ;;  %s4413_s22 = smov 124  }
  0x5d   :  { %311 = vmatpush1.bf16.msra.mxu0 %v4594_v14 }
  0x5e   :  { %312 = vmatprep.subr.bf16.mxu0 %v4598_v16  ;;  %364 = vmatpush1.bf16.msra.mxu1 %v4594_v14 }
  0x5f   :  { %365 = vmatprep.subr.bf16.mxu1 %v4598_v16 }
  0x60   :  { %628 = vrot.lane.b32.xlu1 %v4596_v15, %s4399_s18  ;;  %626 = vrot.lane.b32.xlu0 %v4552_v5, %s4399_s18 }
  0x61   :  { %313 = vmatpush1.bf16.msra.mxu0 %v4604_v17 }
  0x62   :  { %314 = vmatprep.subr.bf16.mxu0 %v4608_v18  ;;  %366 = vmatpush1.bf16.msra.mxu1 %v4604_v17 }
  0x63   :  { %367 = vmatprep.subr.bf16.mxu1 %v4608_v18 }
  0x64   :  { %679 = vrot.lane.b32.xlu1 %v4596_v15, %s4400_s24  ;;  %677 = vrot.lane.b32.xlu0 %v4552_v5, %s4400_s24 }
  0x65   :  { %315 = vmatpush1.bf16.msra.mxu0 %v4617_v20 }
  0x66   :  { %316 = vmatprep.subr.bf16.mxu0 %v4621_v21  ;;  %368 = vmatpush1.bf16.msra.mxu1 %v4617_v20 }
  0x67   :  { %369 = vmatprep.subr.bf16.mxu1 %v4621_v21 }
  0x68   :  { %791 = vrot.lane.b32.xlu1 %v4631_v23, %s4392_s20  ;;  %789 = vrot.lane.b32.xlu0 %v4596_v15, %s4392_s20 }
  0x69   :  { %317 = vmatpush1.bf16.msra.mxu0 %v4627_v22 }
  0x6a   :  { %3621 = vmatprep.subr.msk.bf16.mxu0 %vm295_vm1, %v4633_v24  ;;  %370 = vmatpush1.bf16.msra.mxu1 %v4627_v22 }
  0x6b   :  { %3623 = vmatprep.subr.msk.bf16.mxu1 %vm295_vm1, %v4633_v24 }
  0x6c   :  { %736 = vrot.lane.b32.xlu1 %v4596_v15, %s4401_s26  ;;  %734 = vrot.lane.b32.xlu0 %v4552_v5, %s4401_s26 }
  0x6d   :  { %319 = vmatpush1.bf16.msra.mxu0 %v4648_v26 }
  0x6e   :  { %418 = vmatprep.subr.bf16.mxu0 %v4548_v3  ;;  %372 = vmatpush1.bf16.msra.mxu1 %v4648_v26 }
  0x6f   :  { %469 = vmatprep.subr.bf16.mxu1 %v4548_v3 }
  0x70   :  { %787 = vrot.lane.b32.xlu0 %v4552_v5, %s4392_s20  ;;  %335 = vmatmul.mubr.bf16.vlgmr.msra.gmra.mrb[0].mxu0 %v4546_v2  ;;  %s4403_s20 = smov 76  }
  0x71   :  { %847 = vrot.lane.b32.xlu1 %v4596_v15, %s4402_s27  ;;  %419 = vmatpush1.bf16.msra.mxu0 %v4550_v4 }
  0x72   :  { %420 = vmatprep.subr.bf16.mxu0 %v4554_v6 }
  0x74   :  { %849 = vrot.lane.b32.xlu0 %v4631_v23, %s4402_s27 }
  0x75   :  { %421 = vmatpush1.bf16.msra.mxu0 %v4562_v7  ;;  %898 = vrot.lane.b32.xlu1 %v4596_v15, %s4403_s20 }
  0x76   :  { %422 = vmatprep.subr.bf16.mxu0 %v4566_v8 }
  0x78   :  { %900 = vrot.lane.b32.xlu0 %v4631_v23, %s4403_s20 }
  0x79   :  { %423 = vmatpush1.bf16.msra.mxu0 %v4573_v9  ;;  %955 = vrot.lane.b32.xlu1 %v4596_v15, %s4404_s28 }
  0x7a   :  { %424 = vmatprep.subr.bf16.mxu0 %v4576_v10 }
  0x7c   :  { %957 = vrot.lane.b32.xlu0 %v4631_v23, %s4404_s28 }
  0x7d   :  { %425 = vmatpush1.bf16.msra.mxu0 %v4581_v11  ;;  %1006 = vrot.lane.b32.xlu1 %v4596_v15, %s4405_s4  ;;  %v4944_v15 = vld [vmem:[#allocation2 + $0x44] ss:$8 sps:$4 sm:$0xff]  }
  0x7e   :  { %426 = vmatprep.subr.bf16.mxu0 %v4588_v13 }
  0x80   :  { %1008 = vrot.lane.b32.xlu0 %v4631_v23, %s4405_s4 }
  0x81   :  { %427 = vmatpush1.bf16.msra.mxu0 %v4594_v14  ;;  %1065 = vrot.lane.b32.xlu1 %v4631_v23, %s4406_s13 }
  0x82   :  { %428 = vmatprep.subr.bf16.mxu0 %v4598_v16 }
  0x84   :  { %1067 = vrot.lane.b32.xlu0 %v4693_v28, %s4406_s13 }
  0x85   :  { %429 = vmatpush1.bf16.msra.mxu0 %v4604_v17  ;;  %1116 = vrot.lane.b32.xlu1 %v4631_v23, %s4407_s14 }
  0x86   :  { %430 = vmatprep.subr.bf16.mxu0 %v4608_v18 }
  0x88   :  { %1118 = vrot.lane.b32.xlu0 %v4693_v28, %s4407_s14 }
  0x89   :  { %431 = vmatpush1.bf16.msra.mxu0 %v4617_v20  ;;  %1173 = vrot.lane.b32.xlu1 %v4631_v23, %s4391_s1 }
  0x8a   :  { %432 = vmatprep.subr.bf16.mxu0 %v4621_v21 }
  0x8c   :  { %1175 = vrot.lane.b32.xlu0 %v4693_v28, %s4391_s1  ;;  %s4408_s1 = smov 36  }
  0x8d   :  { %433 = vmatpush1.bf16.msra.mxu0 %v4627_v22  ;;  %1224 = vrot.lane.b32.xlu1 %v4631_v23, %s4408_s1 }
  0x8e   :  { %3626 = vmatprep.subr.msk.bf16.mxu0 %vm295_vm1, %v4633_v24 }
  0x90   :  { %1226 = vrot.lane.b32.xlu0 %v4693_v28, %s4408_s1 }
  0x91   :  { %435 = vmatpush1.bf16.msra.mxu0 %v4648_v26  ;;  %1285 = vrot.lane.b32.xlu1 %v4693_v28, %s4389_s30 }
  0x92   :  { %526 = vmatprep.subr.bf16.mxu0 %v4548_v3 }
  0x94   :  { %1287 = vrot.lane.b32.xlu0 %v4761_v44, %s4389_s30 }
  0x95   :  { %1283 = vrot.lane.b32.xlu1 %v4631_v23, %s4389_s30  ;;  %s4409_s30 = smov 108  }
  0x98   :  { %1337 = vrot.lane.b32.xlu0 %v4693_v28, %s4409_s30 }
  0x99   :  { %1339 = vrot.lane.b32.xlu1 %v4761_v44, %s4409_s30 }
  0x9c   :  { %1394 = vrot.lane.b32.xlu0 %v4693_v28, %s4410_s16 }
  0x9d   :  { %1396 = vrot.lane.b32.xlu1 %v4761_v44, %s4410_s16 }
  0xa0   :  { %1445 = vrot.lane.b32.xlu0 %v4693_v28, %s4411_s29 }
  0xa1   :  { %1447 = vrot.lane.b32.xlu1 %v4761_v44, %s4411_s29 }
  0xa4   :  { %1502 = vrot.lane.b32.xlu0 %v4693_v28, %s4412_s17  ;;  %v5005_v28 = vld [vmem:[#allocation2 + $0x60] ss:$8 sps:$4 sm:$0xff]  }
  0xa5   :  { %1504 = vrot.lane.b32.xlu1 %v4761_v44, %s4412_s17 }
  0xa8   :  { %1555 = vrot.lane.b32.xlu0 %v4761_v44, %s4413_s22 }
  0xbe   :  { %v409_v29 = vpop.permute.xlu1 %408  ;;  %v346_v30 = vpop.permute.xlu0 %345 }
  0xc2   :  { %v411_v31 = vpop.permute.xlu1 %410  ;;  %v348_v32 = vpop.permute.xlu0 %347 }
  0xc3   :  { %v413_v33 = vsel %vm412_vm2, %v409_v29, %v411_v31  ;;  %3624 = vmatprep.mubr.msk.bf16.mxu1 %vm291_vm0, %v348_v32  ;;  %3627 = vmatprep.mubr.msk.bf16.mxu0 %vm291_vm0, %v411_v31  ;;  %v350_v34 = vsel %vm349_vm3, %v346_v30, %v348_v32  ;;  %v5009_v29 = vld [vmem:[#allocation2 + $0x74] ss:$8 sps:$4 sm:$0xff]   ;;  %v5013_v30 = vld [vmem:[#allocation2 + $0x70] ss:$8 sps:$4 sm:$0xff]   ;;  %vm1120_vm2 = vcmask 752640   ;;  %vm1177_vm3 = vcmask 523264  }
  0xc4   :  { %388 = vmatmul.mubr.bf16.vlgmr.msra.gmra.mrb[0].mxu1 %v350_v34  ;;  %451 = vmatmul.mubr.bf16.vlgmr.msra.gmra.mrb[4].mxu0 %v413_v33  ;;  %v5017_v31 = vld [vmem:[#allocation2 + $0x84] ss:$8 sps:$4 sm:$0x3f]  }
  0xc5   :  { %470 = vmatpush1.bf16.msra.mxu1 %v4550_v4  ;;  %527 = vmatpush1.bf16.msra.mxu0 %v4550_v4 }
  0xc6   :  { %471 = vmatprep.subr.bf16.mxu1 %v4554_v6  ;;  %528 = vmatprep.subr.bf16.mxu0 %v4554_v6  ;;  %v462_v35 = vpop.permute.xlu1 %461  ;;  %v460_v37 = vpop.permute.xlu0 %459 }
  0xc7   :  { %3629 = vmatprep.mubr.msk.bf16.mxu1 %vm291_vm0, %v462_v35  ;;  %v464_v40 = vsel %vm463_vm4, %v460_v37, %v462_v35  ;;  %vm1289_vm4 = vcmask 64512  }
  0xc9   :  { %472 = vmatpush1.bf16.msra.mxu1 %v4562_v7  ;;  %529 = vmatpush1.bf16.msra.mxu0 %v4562_v7 }
  0xca   :  { %473 = vmatprep.subr.bf16.mxu1 %v4566_v8  ;;  %530 = vmatprep.subr.bf16.mxu0 %v4566_v8  ;;  %v519_v36 = vpop.permute.xlu1 %518  ;;  %v517_v38 = vpop.permute.xlu0 %516 }
  0xcb   :  { %3631 = vmatprep.mubr.msk.bf16.mxu0 %vm291_vm0, %v519_v36  ;;  %v521_v41 = vsel %vm520_vm5, %v517_v38, %v519_v36  ;;  %vm1228_vm5 = vcmask 293888  }
  0xcd   :  { %474 = vmatpush1.bf16.msra.mxu1 %v4573_v9  ;;  %531 = vmatpush1.bf16.msra.mxu0 %v4573_v9 }
  0xce   :  { %475 = vmatprep.subr.bf16.mxu1 %v4576_v10  ;;  %532 = vmatprep.subr.bf16.mxu0 %v4576_v10  ;;  %v572_v39 = vpop.permute.xlu1 %571  ;;  %v570_v45 = vpop.permute.xlu0 %569 }
  0xcf   :  { %v574_v49 = vsel %vm573_vm6, %v570_v45, %v572_v39  ;;  %vm1341_vm6 = vcmask 883712  }
  0xd1   :  { %476 = vmatpush1.bf16.msra.mxu1 %v4581_v11  ;;  %533 = vmatpush1.bf16.msra.mxu0 %v4581_v11 }
  0xd2   :  { %477 = vmatprep.subr.bf16.mxu1 %v4588_v13  ;;  %534 = vmatprep.subr.bf16.mxu0 %v4588_v13  ;;  %v629_v42 = vpop.permute.xlu1 %628  ;;  %v627_v47 = vpop.permute.xlu0 %626 }
  0xd3   :  { %v631_v50 = vsel %vm630_vm7, %v627_v47, %v629_v42  ;;  %vm1398_vm7 = vcmask 654336  }
  0xd5   :  { %478 = vmatpush1.bf16.msra.mxu1 %v4594_v14  ;;  %535 = vmatpush1.bf16.msra.mxu0 %v4594_v14 }
  0xd6   :  { %479 = vmatprep.subr.bf16.mxu1 %v4598_v16  ;;  %536 = vmatprep.subr.bf16.mxu0 %v4598_v16  ;;  %v4783_v46 = vpop.permute.xlu1 %679  ;;  %v678_v52 = vpop.permute.xlu0 %677 }
  0xd7   :  { %v682_v56 = vsel %vm681_vm8, %v678_v52, %v4783_v46  ;;  %vm1449_vm8 = vcmask 424960  }
  0xd9   :  { %480 = vmatpush1.bf16.msra.mxu1 %v4604_v17  ;;  %537 = vmatpush1.bf16.msra.mxu0 %v4604_v17 }
  0xda   :  { %481 = vmatprep.subr.bf16.mxu1 %v4608_v18  ;;  %538 = vmatprep.subr.bf16.mxu0 %v4608_v18  ;;  %v4795_v48 = vpop.permute.xlu1 %791  ;;  %v4832_v53 = vpop.permute.xlu0 %789 }
  0xdb   :  { %v795_v58 = vsel %vm793_vm10, %v4832_v53, %v4795_v48 }
  0xdd   :  { %482 = vmatpush1.bf16.msra.mxu1 %v4617_v20  ;;  %539 = vmatpush1.bf16.msra.mxu0 %v4617_v20 }
  0xde   :  { %483 = vmatprep.subr.bf16.mxu1 %v4621_v21  ;;  %540 = vmatprep.subr.bf16.mxu0 %v4621_v21  ;;  %v737_v51 = vpop.permute.xlu1 %736  ;;  %v735_v54 = vpop.permute.xlu0 %734 }
  0xdf   :  { %v739_v57 = vsel %vm738_vm9, %v735_v54, %v737_v51  ;;  %vm1506_vm9 = vcmask 195584  }
  0xe1   :  { %484 = vmatpush1.bf16.msra.mxu1 %v4627_v22  ;;  %541 = vmatpush1.bf16.msra.mxu0 %v4627_v22 }
  0xe2   :  { %3628 = vmatprep.subr.msk.bf16.mxu1 %vm295_vm1, %v4633_v24  ;;  %3630 = vmatprep.subr.msk.bf16.mxu0 %vm295_vm1, %v4633_v24  ;;  %v4844_v55 = vpop.permute.xlu0 %787 }
  0xe3   :  { %v848_v0 = vpop.permute.xlu1 %847 }
  0xe5   :  { %486 = vmatpush1.bf16.msra.mxu1 %v4648_v26  ;;  %543 = vmatpush1.bf16.msra.mxu0 %v4648_v26 }
  0xe6   :  { %579 = vmatprep.subr.bf16.mxu1 %v4548_v3  ;;  %636 = vmatprep.subr.bf16.mxu0 %v4548_v3  ;;  %v850_v59 = vpop.permute.xlu0 %849 }
  0xe7   :  { %v852_v2 = vsel %vm851_vm11, %v848_v0, %v850_v59  ;;  %v899_v23 = vpop.permute.xlu1 %898 }
  0xe8   :  { %502 = vmatmul.mubr.bf16.vlgmr.msra.gmra.mrb[4].mxu1 %v464_v40  ;;  %559 = vmatmul.mubr.bf16.vlgmr.msra.gmra.mrb[8].mxu0 %v521_v41 }
  0xe9   :  { %580 = vmatpush1.bf16.msra.mxu1 %v4550_v4  ;;  %637 = vmatpush1.bf16.msra.mxu0 %v4550_v4 }
  0xea   :  { %581 = vmatprep.subr.bf16.mxu1 %v4554_v6  ;;  %638 = vmatprep.subr.bf16.mxu0 %v4554_v6  ;;  %v4898_v1 = vpop.permute.xlu0 %900 }
  0xeb   :  { %3633 = vmatprep.mubr.msk.bf16.mxu1 %vm291_vm0, %v572_v39  ;;  %3635 = vmatprep.mubr.msk.bf16.mxu0 %vm291_vm0, %v629_v42 }
  0xed   :  { %582 = vmatpush1.bf16.msra.mxu1 %v4562_v7  ;;  %639 = vmatpush1.bf16.msra.mxu0 %v4562_v7 }
  0xee   :  { %583 = vmatprep.subr.bf16.mxu1 %v4566_v8  ;;  %640 = vmatprep.subr.bf16.mxu0 %v4566_v8  ;;  %v958_v5 = vpop.permute.xlu0 %957 }
  0xf1   :  { %584 = vmatpush1.bf16.msra.mxu1 %v4573_v9  ;;  %641 = vmatpush1.bf16.msra.mxu0 %v4573_v9 }
  0xf2   :  { %585 = vmatprep.subr.bf16.mxu1 %v4576_v10  ;;  %642 = vmatprep.subr.bf16.mxu0 %v4576_v10 }
  0xf5   :  { %586 = vmatpush1.bf16.msra.mxu1 %v4581_v11  ;;  %643 = vmatpush1.bf16.msra.mxu0 %v4581_v11 }
  0xf6   :  { %587 = vmatprep.subr.bf16.mxu1 %v4588_v13  ;;  %644 = vmatprep.subr.bf16.mxu0 %v4588_v13 }
  0xf9   :  { %588 = vmatpush1.bf16.msra.mxu1 %v4594_v14  ;;  %645 = vmatpush1.bf16.msra.mxu0 %v4594_v14 }
  0xfa   :  { %589 = vmatprep.subr.bf16.mxu1 %v4598_v16  ;;  %646 = vmatprep.subr.bf16.mxu0 %v4598_v16 }
  0xfd   :  { %590 = vmatpush1.bf16.msra.mxu1 %v4604_v17  ;;  %647 = vmatpush1.bf16.msra.mxu0 %v4604_v17 }
  0xfe   :  { %591 = vmatprep.subr.bf16.mxu1 %v4608_v18  ;;  %648 = vmatprep.subr.bf16.mxu0 %v4608_v18 }
 0x101   :  { %592 = vmatpush1.bf16.msra.mxu1 %v4617_v20  ;;  %649 = vmatpush1.bf16.msra.mxu0 %v4617_v20 }
 0x102   :  { %593 = vmatprep.subr.bf16.mxu1 %v4621_v21  ;;  %650 = vmatprep.subr.bf16.mxu0 %v4621_v21 }
 0x105   :  { %594 = vmatpush1.bf16.msra.mxu1 %v4627_v22  ;;  %651 = vmatpush1.bf16.msra.mxu0 %v4627_v22 }
 0x106   :  { %3632 = vmatprep.subr.msk.bf16.mxu1 %vm295_vm1, %v4633_v24  ;;  %3634 = vmatprep.subr.msk.bf16.mxu0 %vm295_vm1, %v4633_v24 }
 0x109   :  { %596 = vmatpush1.bf16.msra.mxu1 %v4648_v26  ;;  %653 = vmatpush1.bf16.msra.mxu0 %v4648_v26 }
 0x10a   :  { %687 = vmatprep.subr.bf16.mxu1 %v4548_v3  ;;  %744 = vmatprep.subr.bf16.mxu0 %v4548_v3 }
 0x10c   :  { %612 = vmatmul.mubr.bf16.vlgmr.msra.gmra.mrb[8].mxu1 %v574_v49  ;;  %669 = vmatmul.mubr.bf16.vlgmr.msra.gmra.mrb[12].mxu0 %v631_v50 }
 0x10d   :  { %688 = vmatpush1.bf16.msra.mxu1 %v4550_v4  ;;  %745 = vmatpush1.bf16.msra.mxu0 %v4550_v4 }
 0x10e   :  { %689 = vmatprep.subr.bf16.mxu1 %v4554_v6  ;;  %746 = vmatprep.subr.bf16.mxu0 %v4554_v6 }
 0x10f   :  { %3637 = vmatprep.mubr.msk.bf16.mxu1 %vm291_vm0, %v4783_v46  ;;  %3639 = vmatprep.mubr.msk.bf16.mxu0 %vm291_vm0, %v737_v51 }
 0x111   :  { %690 = vmatpush1.bf16.msra.mxu1 %v4562_v7  ;;  %747 = vmatpush1.bf16.msra.mxu0 %v4562_v7 }
 0x112   :  { %691 = vmatprep.subr.bf16.mxu1 %v4566_v8  ;;  %748 = vmatprep.subr.bf16.mxu0 %v4566_v8 }
 0x115   :  { %692 = vmatpush1.bf16.msra.mxu1 %v4573_v9  ;;  %749 = vmatpush1.bf16.msra.mxu0 %v4573_v9 }
 0x116   :  { %693 = vmatprep.subr.bf16.mxu1 %v4576_v10  ;;  %750 = vmatprep.subr.bf16.mxu0 %v4576_v10 }
 0x119   :  { %694 = vmatpush1.bf16.msra.mxu1 %v4581_v11  ;;  %751 = vmatpush1.bf16.msra.mxu0 %v4581_v11 }
 0x11a   :  { %695 = vmatprep.subr.bf16.mxu1 %v4588_v13  ;;  %752 = vmatprep.subr.bf16.mxu0 %v4588_v13 }
 0x11d   :  { %696 = vmatpush1.bf16.msra.mxu1 %v4594_v14  ;;  %753 = vmatpush1.bf16.msra.mxu0 %v4594_v14 }
 0x11e   :  { %697 = vmatprep.subr.bf16.mxu1 %v4598_v16  ;;  %754 = vmatprep.subr.bf16.mxu0 %v4598_v16 }
 0x121   :  { %698 = vmatpush1.bf16.msra.mxu1 %v4604_v17  ;;  %755 = vmatpush1.bf16.msra.mxu0 %v4604_v17 }
 0x122   :  { %699 = vmatprep.subr.bf16.mxu1 %v4608_v18  ;;  %756 = vmatprep.subr.bf16.mxu0 %v4608_v18 }
 0x125   :  { %700 = vmatpush1.bf16.msra.mxu1 %v4617_v20  ;;  %757 = vmatpush1.bf16.msra.mxu0 %v4617_v20 }
 0x126   :  { %701 = vmatprep.subr.bf16.mxu1 %v4621_v21  ;;  %758 = vmatprep.subr.bf16.mxu0 %v4621_v21 }
 0x129   :  { %702 = vmatpush1.bf16.msra.mxu1 %v4627_v22  ;;  %759 = vmatpush1.bf16.msra.mxu0 %v4627_v22 }
 0x12a   :  { %3636 = vmatprep.subr.msk.bf16.mxu1 %vm295_vm1, %v4633_v24  ;;  %3638 = vmatprep.subr.msk.bf16.mxu0 %vm295_vm1, %v4633_v24 }
 0x12d   :  { %704 = vmatpush1.bf16.msra.mxu1 %v4648_v26  ;;  %761 = vmatpush1.bf16.msra.mxu0 %v4648_v26 }
 0x12e   :  { %800 = vmatprep.subr.bf16.mxu1 %v4548_v3  ;;  %857 = vmatprep.subr.bf16.mxu0 %v4548_v3  ;;  %v4902_v3 = vld [vmem:[#allocation2 + $0x4] ss:$8 sps:$4 sm:$0xff]  }
 0x130   :  { %720 = vmatmul.mubr.bf16.vlgmr.msra.gmra.mrb[12].mxu1 %v682_v56  ;;  %777 = vmatmul.mubr.bf16.vlgmr.msra.gmra.mrb[16].mxu0 %v739_v57 }
 0x131   :  { %801 = vmatpush1.bf16.msra.mxu1 %v4550_v4  ;;  %858 = vmatpush1.bf16.msra.mxu0 %v4550_v4  ;;  %v794_v4 = vsel %vm793_vm10, %v4844_v55, %v4832_v53 }
 0x132   :  { %802 = vmatprep.subr.bf16.mxu1 %v4554_v6  ;;  %859 = vmatprep.subr.bf16.mxu0 %v4554_v6  ;;  %v4909_v6 = vld [vmem:[#allocation2] ss:$8 sps:$4 sm:$0xff]  }
 0x133   :  { %3641 = vmatprep.mubr.msk.bf16.mxu1 %vm291_vm0, %v795_v58  ;;  %3643 = vmatprep.mubr.msk.bf16.mxu0 %vm291_vm0, %v850_v59 }
 0x135   :  { %803 = vmatpush1.bf16.msra.mxu1 %v4562_v7  ;;  %860 = vmatpush1.bf16.msra.mxu0 %v4562_v7  ;;  %v4913_v7 = vld [vmem:[#allocation2 + $0x14] ss:$8 sps:$4 sm:$0xff]  }
 0x136   :  { %804 = vmatprep.subr.bf16.mxu1 %v4566_v8  ;;  %861 = vmatprep.subr.bf16.mxu0 %v4566_v8  ;;  %v4920_v8 = vld [vmem:[#allocation2 + $0x10] ss:$8 sps:$4 sm:$0xff]  }
 0x139   :  { %805 = vmatpush1.bf16.msra.mxu1 %v4573_v9  ;;  %862 = vmatpush1.bf16.msra.mxu0 %v4573_v9  ;;  %v100_v9 = vld [vmem:[%s6454_s0 + $0x30] sm:$0xff] }
 0x13a   :  { %806 = vmatprep.subr.bf16.mxu1 %v4576_v10  ;;  %863 = vmatprep.subr.bf16.mxu0 %v4576_v10  ;;  %v4927_v10 = vld [vmem:[#allocation2 + $0x24] ss:$8 sps:$4 sm:$0xff]  }
 0x13d   :  { %807 = vmatpush1.bf16.msra.mxu1 %v4581_v11  ;;  %864 = vmatpush1.bf16.msra.mxu0 %v4581_v11  ;;  %v1553_v11 = vpack.c.bf16 %v100_v9, %v100_v9 }
 0x13e   :  { %808 = vmatprep.subr.bf16.mxu1 %v4588_v13  ;;  %865 = vmatprep.subr.bf16.mxu0 %v4588_v13  ;;  %v4936_v13 = vld [vmem:[#allocation2 + $0x34] ss:$8 sps:$4 sm:$0xff]  }
 0x13f   :  { %1557 = vrot.lane.b32.xlu1 %v1553_v11, %s4413_s22 }
 0x141   :  { %809 = vmatpush1.bf16.msra.mxu1 %v4594_v14  ;;  %866 = vmatpush1.bf16.msra.mxu0 %v4594_v14  ;;  %v4940_v14 = vld [vmem:[#allocation2 + $0x30] ss:$8 sps:$4 sm:$0xff]  }
 0x142   :  { %810 = vmatprep.subr.bf16.mxu1 %v4598_v16  ;;  %867 = vmatprep.subr.bf16.mxu0 %v4598_v16  ;;  %v4948_v16 = vld [vmem:[#allocation2 + $0x40] ss:$8 sps:$4 sm:$0xff]  }
 0x143   :  { %v4880_v60 = vpop.f32.mrb[0].mxu0 }
 0x144   :  { %v4884_v61 = vpop.f32.mrb[1].mxu0 }
 0x145   :  { %811 = vmatpush1.bf16.msra.mxu1 %v4604_v17  ;;  %868 = vmatpush1.bf16.msra.mxu0 %v4604_v17  ;;  %v340_v62 = vpop.f32.mrb[2].mxu0 }
 0x146   :  { %812 = vmatprep.subr.bf16.mxu1 %v4608_v18  ;;  %869 = vmatprep.subr.bf16.mxu0 %v4608_v18  ;;  %v341_v63 = vpop.f32.mrb[3].mxu0 }
 0x149   :  { %813 = vmatpush1.bf16.msra.mxu1 %v4617_v20  ;;  %870 = vmatpush1.bf16.msra.mxu0 %v4617_v20 }
 0x14a   :  { %814 = vmatprep.subr.bf16.mxu1 %v4621_v21  ;;  %871 = vmatprep.subr.bf16.mxu0 %v4621_v21 }
 0x14d   :  { %815 = vmatpush1.bf16.msra.mxu1 %v4627_v22  ;;  %872 = vmatpush1.bf16.msra.mxu0 %v4627_v22 }
 0x14e   :  { %3640 = vmatprep.subr.msk.bf16.mxu1 %vm295_vm1, %v4633_v24  ;;  %3642 = vmatprep.subr.msk.bf16.mxu0 %vm295_vm1, %v4633_v24 }
 0x151   :  { %817 = vmatpush1.bf16.msra.mxu1 %v4648_v26  ;;  %874 = vmatpush1.bf16.msra.mxu0 %v4648_v26 }
 0x152   :  { %908 = vmatprep.subr.bf16.mxu1 %v4902_v3  ;;  %965 = vmatprep.subr.bf16.mxu0 %v4902_v3 }
 0x154   :  { %833 = vmatmul.mubr.bf16.vlgmr.msra.gmra.mrb[16].mxu1 %v794_v4  ;;  %890 = vmatmul.mubr.bf16.vlgmr.msra.gmra.mrb[20].mxu0 %v852_v2 }
 0x155   :  { %909 = vmatpush1.bf16.msra.mxu1 %v4909_v6  ;;  %966 = vmatpush1.bf16.msra.mxu0 %v4909_v6 }
 0x156   :  { %910 = vmatprep.subr.bf16.mxu1 %v4913_v7  ;;  %967 = vmatprep.subr.bf16.mxu0 %v4913_v7 }
 0x157   :  { %3645 = vmatprep.mubr.msk.bf16.mxu1 %vm291_vm0, %v4898_v1  ;;  %3647 = vmatprep.mubr.msk.bf16.mxu0 %vm291_vm0, %v958_v5 }
 0x159   :  { %911 = vmatpush1.bf16.msra.mxu1 %v4920_v8  ;;  %968 = vmatpush1.bf16.msra.mxu0 %v4920_v8 }
 0x15a   :  { %912 = vmatprep.subr.bf16.mxu1 %v4927_v10  ;;  %969 = vmatprep.subr.bf16.mxu0 %v4927_v10 }
 0x15d   :  { %913 = vmatpush1.bf16.msra.mxu1 %v4932_v12  ;;  %970 = vmatpush1.bf16.msra.mxu0 %v4932_v12 }
 0x15e   :  { %914 = vmatprep.subr.bf16.mxu1 %v4936_v13  ;;  %971 = vmatprep.subr.bf16.mxu0 %v4936_v13 }
 0x161   :  { %915 = vmatpush1.bf16.msra.mxu1 %v4940_v14  ;;  %972 = vmatpush1.bf16.msra.mxu0 %v4940_v14 }
 0x162   :  { %916 = vmatprep.subr.bf16.mxu1 %v4944_v15  ;;  %973 = vmatprep.subr.bf16.mxu0 %v4944_v15 }
 0x165   :  { %917 = vmatpush1.bf16.msra.mxu1 %v4948_v16  ;;  %974 = vmatpush1.bf16.msra.mxu0 %v4948_v16 }
 0x166   :  { %918 = vmatprep.subr.bf16.mxu1 %v4952_v19  ;;  %975 = vmatprep.subr.bf16.mxu0 %v4952_v19 }
 0x169   :  { %919 = vmatpush1.bf16.msra.mxu1 %v4604_v17  ;;  %976 = vmatpush1.bf16.msra.mxu0 %v4604_v17  ;;  %v956_v17 = vpop.permute.xlu1 %955 }
 0x16a   :  { %920 = vmatprep.subr.bf16.mxu1 %v4608_v18  ;;  %977 = vmatprep.subr.bf16.mxu0 %v4608_v18  ;;  %v1009_v18 = vpop.permute.xlu0 %1008 }
 0x16d   :  { %921 = vmatpush1.bf16.msra.mxu1 %v4617_v20  ;;  %978 = vmatpush1.bf16.msra.mxu0 %v4617_v20  ;;  %v903_v20 = vsel %vm902_vm12, %v899_v23, %v4898_v1  ;;  %v1007_v27 = vpop.permute.xlu1 %1006 }
 0x16e   :  { %922 = vmatprep.subr.bf16.mxu1 %v4621_v21  ;;  %979 = vmatprep.subr.bf16.mxu0 %v4621_v21  ;;  %v960_v21 = vsel %vm959_vm13, %v956_v17, %v958_v5  ;;  %v1011_v39 = vsel %vm1010_vm14, %v1007_v27, %v1009_v18 }
 0x171   :  { %923 = vmatpush1.bf16.msra.mxu1 %v4627_v22  ;;  %980 = vmatpush1.bf16.msra.mxu0 %v4627_v22  ;;  %v1068_v22 = vpop.permute.xlu0 %1067  ;;  %v1066_v32 = vpop.permute.xlu1 %1065 }
 0x172   :  { %3644 = vmatprep.subr.msk.bf16.mxu1 %vm295_vm1, %v4633_v24  ;;  %3646 = vmatprep.subr.msk.bf16.mxu0 %vm295_vm1, %v4633_v24  ;;  %v4997_v24 = vld [vmem:[#allocation2 + $0x50] ss:$8 sps:$4 sm:$0xff]   ;;  %v1070_v42 = vsel %vm1069_vm15, %v1066_v32, %v1068_v22 }
 0x175   :  { %925 = vmatpush1.bf16.msra.mxu1 %v4648_v26  ;;  %982 = vmatpush1.bf16.msra.mxu0 %v4648_v26  ;;  %v5023_v33 = vpop.permute.xlu0 %1118  ;;  %v1117_v48 = vpop.permute.xlu1 %1116 }
 0x176   :  { %1016 = vmatprep.subr.bf16.mxu1 %v4902_v3  ;;  %1075 = vmatprep.subr.bf16.mxu0 %v4902_v3  ;;  %v1121_v58 = vsel %vm1120_vm2, %v1117_v48, %v5023_v33 }
 0x178   :  { %941 = vmatmul.mubr.bf16.vlgmr.msra.gmra.mrb[20].mxu1 %v903_v20  ;;  %998 = vmatmul.mubr.bf16.vlgmr.msra.gmra.mrb[24].mxu0 %v960_v21 }
 0x179   :  { %1017 = vmatpush1.bf16.msra.mxu1 %v4909_v6  ;;  %1076 = vmatpush1.bf16.msra.mxu0 %v4909_v6  ;;  %v1176_v47 = vpop.permute.xlu0 %1175  ;;  %v1174_v50 = vpop.permute.xlu1 %1173 }
 0x17a   :  { %1018 = vmatprep.subr.bf16.mxu1 %v4913_v7  ;;  %1077 = vmatprep.subr.bf16.mxu0 %v4913_v7 }
 0x17b   :  { %3649 = vmatprep.mubr.msk.bf16.mxu1 %vm291_vm0, %v1009_v18  ;;  %3651 = vmatprep.mubr.msk.bf16.mxu0 %vm291_vm0, %v1068_v22 }
 0x17d   :  { %1019 = vmatpush1.bf16.msra.mxu1 %v4920_v8  ;;  %1078 = vmatpush1.bf16.msra.mxu0 %v4920_v8  ;;  %v5064_v49 = vpop.permute.xlu0 %1226  ;;  %v5072_v51 = vpop.permute.xlu1 %1224 }
 0x17e   :  { %1020 = vmatprep.subr.bf16.mxu1 %v4927_v10  ;;  %1079 = vmatprep.subr.bf16.mxu0 %v4927_v10  ;;  %v1229_v21 = vsel %vm1228_vm5, %v5072_v51, %v5064_v49 }
 0x181   :  { %1021 = vmatpush1.bf16.msra.mxu1 %v4932_v12  ;;  %1080 = vmatpush1.bf16.msra.mxu0 %v4932_v12  ;;  %v1288_v52 = vpop.permute.xlu0 %1287  ;;  %v1286_v2 = vpop.permute.xlu1 %1285 }
 0x182   :  { %1022 = vmatprep.subr.bf16.mxu1 %v4936_v13  ;;  %1081 = vmatprep.subr.bf16.mxu0 %v4936_v13  ;;  %v1291_v4 = vsel %vm1289_vm4, %v1286_v2, %v1288_v52 }
 0x185   :  { %1023 = vmatpush1.bf16.msra.mxu1 %v4940_v14  ;;  %1082 = vmatpush1.bf16.msra.mxu0 %v4940_v14  ;;  %v1284_v5 = vpop.permute.xlu1 %1283 }
 0x186   :  { %1024 = vmatprep.subr.bf16.mxu1 %v4944_v15  ;;  %1083 = vmatprep.subr.bf16.mxu0 %v4944_v15  ;;  %v1290_v32 = vsel %vm1289_vm4, %v1284_v5, %v1286_v2 }
 0x189   :  { %1025 = vmatpush1.bf16.msra.mxu1 %v4948_v16  ;;  %1084 = vmatpush1.bf16.msra.mxu0 %v4948_v16  ;;  %v5129_v9 = vpop.permute.xlu1 %1339 }
 0x18a   :  { %1026 = vmatprep.subr.bf16.mxu1 %v4952_v19  ;;  %1085 = vmatprep.subr.bf16.mxu0 %v4952_v19 }
 0x18d   :  { %1027 = vmatpush1.bf16.msra.mxu1 %v4997_v24  ;;  %1086 = vmatpush1.bf16.msra.mxu0 %v4997_v24 }
 0x18e   :  { %1028 = vmatprep.subr.bf16.mxu1 %v5001_v25  ;;  %1087 = vmatprep.subr.bf16.mxu0 %v5001_v25 }
 0x191   :  { %1029 = vmatpush1.bf16.msra.mxu1 %v5005_v28  ;;  %1088 = vmatpush1.bf16.msra.mxu0 %v5005_v28 }
 0x192   :  { %1030 = vmatprep.subr.bf16.mxu1 %v5009_v29  ;;  %1089 = vmatprep.subr.bf16.mxu0 %v5009_v29 }
 0x195   :  { %1031 = vmatpush1.bf16.msra.mxu1 %v5013_v30  ;;  %1090 = vmatpush1.bf16.msra.mxu0 %v5013_v30 }
 0x196   :  { %3648 = vmatprep.subr.msk.bf16.mxu1 %vm295_vm1, %v5017_v31  ;;  %3650 = vmatprep.subr.msk.bf16.mxu0 %vm295_vm1, %v5017_v31 }
 0x197   :  { %v389_v34 = vpop.f32.mrb[0].mxu1  ;;  %v5025_v35 = vpop.f32.mrb[4].mxu0 }
 0x198   :  { %v396_v36 = vmax.f32 %v4880_v60, %v389_v34  ;;  %v391_v37 = vpop.f32.mrb[1].mxu1  ;;  %v5028_v38 = vpop.f32.mrb[5].mxu0 }
 0x199   :  { %v397_v40 = vmax.f32 %v4884_v61, %v391_v37  ;;  %1033 = vmatpush1.bf16.msra.mxu1 %v4648_v26  ;;  %1092 = vmatpush1.bf16.msra.mxu0 %v4648_v26  ;;  %v393_v41 = vpop.f32.mrb[2].mxu1  ;;  %v456_v43 = vpop.f32.mrb[6].mxu0  ;;  %v1178_v61 = vsel %vm1177_vm3, %v1174_v50, %v1176_v47 }
 0x19a   :  { %v394_v44 = vpop.f32.mrb[3].mxu1  ;;  %1126 = vmatprep.subr.bf16.mxu1 %v4902_v3  ;;  %1183 = vmatprep.subr.bf16.mxu0 %v4902_v3  ;;  %v457_v45 = vpop.f32.mrb[7].mxu0 }
 0x19b   :  { %v5035_v46 = vmax.f32 %v396_v36, %v397_v40  ;;  %v1397_v37 = vpop.permute.xlu1 %1396 }
 0x19c   :  { %1049 = vmatmul.mubr.bf16.vlgmr.msra.gmra.mrb[24].mxu1 %v1011_v39  ;;  %1108 = vmatmul.mubr.bf16.vlgmr.msra.gmra.mrb[28].mxu0 %v1070_v42 }
 0x19d   :  { %1127 = vmatpush1.bf16.msra.mxu1 %v4909_v6  ;;  %1184 = vmatpush1.bf16.msra.mxu0 %v4909_v6 }
 0x19e   :  { %1128 = vmatprep.subr.bf16.mxu1 %v4913_v7  ;;  %1185 = vmatprep.subr.bf16.mxu0 %v4913_v7 }
 0x19f   :  { %3653 = vmatprep.mubr.msk.bf16.mxu1 %vm291_vm0, %v5023_v33  ;;  %3655 = vmatprep.mubr.msk.bf16.mxu0 %vm291_vm0, %v1176_v47  ;;  %v5183_v40 = vpop.permute.xlu1 %1447 }
 0x1a1   :  { %1129 = vmatpush1.bf16.msra.mxu1 %v4920_v8  ;;  %1186 = vmatpush1.bf16.msra.mxu0 %v4920_v8 }
 0x1a2   :  { %1130 = vmatprep.subr.bf16.mxu1 %v4927_v10  ;;  %1187 = vmatprep.subr.bf16.mxu0 %v4927_v10 }
 0x1a5   :  { %1131 = vmatpush1.bf16.msra.mxu1 %v4932_v12  ;;  %1188 = vmatpush1.bf16.msra.mxu0 %v4932_v12 }
 0x1a6   :  { %1132 = vmatprep.subr.bf16.mxu1 %v4936_v13  ;;  %1189 = vmatprep.subr.bf16.mxu0 %v4936_v13 }
 0x1a9   :  { %1133 = vmatpush1.bf16.msra.mxu1 %v4940_v14  ;;  %1190 = vmatpush1.bf16.msra.mxu0 %v4940_v14 }
 0x1aa   :  { %1134 = vmatprep.subr.bf16.mxu1 %v4944_v15  ;;  %1191 = vmatprep.subr.bf16.mxu0 %v4944_v15 }
 0x1ad   :  { %1135 = vmatpush1.bf16.msra.mxu1 %v4948_v16  ;;  %1192 = vmatpush1.bf16.msra.mxu0 %v4948_v16 }
 0x1ae   :  { %1136 = vmatprep.subr.bf16.mxu1 %v4952_v19  ;;  %1193 = vmatprep.subr.bf16.mxu0 %v4952_v19 }
 0x1b1   :  { %1137 = vmatpush1.bf16.msra.mxu1 %v4997_v24  ;;  %1194 = vmatpush1.bf16.msra.mxu0 %v4997_v24 }
 0x1b2   :  { %1138 = vmatprep.subr.bf16.mxu1 %v5001_v25  ;;  %1195 = vmatprep.subr.bf16.mxu0 %v5001_v25 }
 0x1b5   :  { %1139 = vmatpush1.bf16.msra.mxu1 %v5005_v28  ;;  %1196 = vmatpush1.bf16.msra.mxu0 %v5005_v28 }
 0x1b6   :  { %1140 = vmatprep.subr.bf16.mxu1 %v5009_v29  ;;  %1197 = vmatprep.subr.bf16.mxu0 %v5009_v29 }
 0x1b9   :  { %1141 = vmatpush1.bf16.msra.mxu1 %v5013_v30  ;;  %1198 = vmatpush1.bf16.msra.mxu0 %v5013_v30 }
 0x1ba   :  { %3652 = vmatprep.subr.msk.bf16.mxu1 %vm295_vm1, %v5017_v31  ;;  %3654 = vmatprep.subr.msk.bf16.mxu0 %vm295_vm1, %v5017_v31 }
 0x1bb   :  { %v503_v53 = vpop.f32.mrb[4].mxu1  ;;  %v5078_v54 = vpop.f32.mrb[8].mxu0 }
 0x1bc   :  { %v510_v55 = vmax.f32 %v5025_v35, %v503_v53  ;;  %v505_v56 = vpop.f32.mrb[5].mxu1  ;;  %v5081_v57 = vpop.f32.mrb[9].mxu0 }
 0x1bd   :  { %v511_v59 = vmax.f32 %v5028_v38, %v505_v56  ;;  %v507_v60 = vpop.f32.mrb[6].mxu1  ;;  %1143 = vmatpush1.bf16.msra.mxu1 %v4648_v26  ;;  %1200 = vmatpush1.bf16.msra.mxu0 %v4648_v26  ;;  %v564_v62 = vpop.f32.mrb[10].mxu0 }
 0x1be   :  { %v508_v63 = vpop.f32.mrb[7].mxu1  ;;  %1234 = vmatprep.subr.bf16.mxu1 %v4902_v3  ;;  %1296 = vmatprep.subr.bf16.mxu0 %v4902_v3  ;;  %v565_v0 = vpop.f32.mrb[11].mxu0  ;;  %v5242_v60 = vld [vmem:[#allocation4 + $0x4] ss:$8 sps:$4 sm:$0xff]  }
 0x1bf   :  { %v5089_v1 = vmax.f32 %v510_v55, %v511_v59  ;;  %v1338_v38 = vpop.permute.xlu0 %1337  ;;  %v1505_v55 = vpop.permute.xlu1 %1504 }
 0x1c0   :  { %1159 = vmatmul.mubr.bf16.vlgmr.msra.gmra.mrb[28].mxu1 %v1121_v58  ;;  %1216 = vmatmul.mubr.bf16.vlgmr.msra.gmra.mrb[32].mxu0 %v1178_v61  ;;  %v1342_v47 = vsel %vm1341_vm6, %v1338_v38, %v5129_v9 }
 0x1c1   :  { %1235 = vmatpush1.bf16.msra.mxu1 %v4909_v6  ;;  %1297 = vmatpush1.bf16.msra.mxu0 %v4909_v6 }
 0x1c2   :  { %1236 = vmatprep.subr.bf16.mxu1 %v4913_v7  ;;  %1298 = vmatprep.subr.bf16.mxu0 %v4913_v7 }
 0x1c3   :  { %3657 = vmatprep.mubr.msk.bf16.mxu1 %vm291_vm0, %v5064_v49  ;;  %3659 = vmatprep.mubr.msk.bf16.mxu0 %vm291_vm0, %v1291_v4  ;;  %v1395_v39 = vpop.permute.xlu0 %1394 }
 0x1c4   :  { %v1399_v50 = vsel %vm1398_vm7, %v1395_v39, %v1397_v37 }
 0x1c5   :  { %1237 = vmatpush1.bf16.msra.mxu1 %v4920_v8  ;;  %1299 = vmatpush1.bf16.msra.mxu0 %v4920_v8 }
 0x1c6   :  { %1238 = vmatprep.subr.bf16.mxu1 %v4927_v10  ;;  %1300 = vmatprep.subr.bf16.mxu0 %v4927_v10 }
 0x1c7   :  { %v1446_v56 = vpop.permute.xlu0 %1445 }
 0x1c8   :  { %v1450_v4 = vsel %vm1449_vm8, %v1446_v56, %v5183_v40  ;;  %v5377_v56 = vld [vmem:[#allocation4 + $0xd4] ss:$8 sps:$4 sm:$0xff]  }
 0x1c9   :  { %1239 = vmatpush1.bf16.msra.mxu1 %v4932_v12  ;;  %1301 = vmatpush1.bf16.msra.mxu0 %v4932_v12  ;;  %6600 = vst [vmem:[#allocation22_spill] sm:$0xff] %v5377_v56 }
 0x1ca   :  { %1240 = vmatprep.subr.bf16.mxu1 %v4936_v13  ;;  %1302 = vmatprep.subr.bf16.mxu0 %v4936_v13 }
 0x1cb   :  { %v1503_v59 = vpop.permute.xlu0 %1502 }
 0x1cd   :  { %1241 = vmatpush1.bf16.msra.mxu1 %v4940_v14  ;;  %1303 = vmatpush1.bf16.msra.mxu0 %v4940_v14 }
 0x1ce   :  { %1242 = vmatprep.subr.bf16.mxu1 %v4944_v15  ;;  %1304 = vmatprep.subr.bf16.mxu0 %v4944_v15 }
 0x1d1   :  { %1243 = vmatpush1.bf16.msra.mxu1 %v4948_v16  ;;  %1305 = vmatpush1.bf16.msra.mxu0 %v4948_v16 }
 0x1d2   :  { %1244 = vmatprep.subr.bf16.mxu1 %v4952_v19  ;;  %1306 = vmatprep.subr.bf16.mxu0 %v4952_v19 }
 0x1d5   :  { %1245 = vmatpush1.bf16.msra.mxu1 %v4997_v24  ;;  %1307 = vmatpush1.bf16.msra.mxu0 %v4997_v24 }
 0x1d6   :  { %1246 = vmatprep.subr.bf16.mxu1 %v5001_v25  ;;  %1308 = vmatprep.subr.bf16.mxu0 %v5001_v25 }
 0x1d9   :  { %1247 = vmatpush1.bf16.msra.mxu1 %v5005_v28  ;;  %1309 = vmatpush1.bf16.msra.mxu0 %v5005_v28 }
 0x1da   :  { %1248 = vmatprep.subr.bf16.mxu1 %v5009_v29  ;;  %1310 = vmatprep.subr.bf16.mxu0 %v5009_v29 }
 0x1dd   :  { %1249 = vmatpush1.bf16.msra.mxu1 %v5013_v30  ;;  %1311 = vmatpush1.bf16.msra.mxu0 %v5013_v30 }
 0x1de   :  { %3656 = vmatprep.subr.msk.bf16.mxu1 %vm295_vm1, %v5017_v31  ;;  %3658 = vmatprep.subr.msk.bf16.mxu0 %vm295_vm1, %v5017_v31 }
 0x1df   :  { %v613_v11 = vpop.f32.mrb[8].mxu1  ;;  %v5131_v23 = vpop.f32.mrb[12].mxu0 }
 0x1e0   :  { %v620_v17 = vmax.f32 %v5078_v54, %v613_v11  ;;  %v615_v18 = vpop.f32.mrb[9].mxu1  ;;  %v5134_v20 = vpop.f32.mrb[13].mxu0  ;;  %v1507_v11 = vsel %vm1506_vm9, %v1503_v59, %v1505_v55  ;;  %v5385_v59 = vld [vmem:[#allocation4 + $0xe4] ss:$8 sps:$4 sm:$0xff]  }
 0x1e1   :  { %v621_v22 = vmax.f32 %v5081_v57, %v615_v18  ;;  %v617_v27 = vpop.f32.mrb[10].mxu1  ;;  %1251 = vmatpush1.bf16.msra.mxu1 %v4648_v26  ;;  %1313 = vmatpush1.bf16.msra.mxu0 %v4648_v26  ;;  %v674_v33 = vpop.f32.mrb[14].mxu0  ;;  %v5232_v57 = vld [vmem:[%s6460_s6] ss:$0 sm:$0xff]  ;;  %6602 = vst [vmem:[#allocation24_spill] sm:$0xff] %v5385_v59 }
 0x1e2   :  { %v618_v34 = vpop.f32.mrb[11].mxu1  ;;  %1347 = vmatprep.subr.bf16.mxu1 %v4902_v3  ;;  %1404 = vmatprep.subr.bf16.mxu0 %v4902_v3  ;;  %v675_v35 = vpop.f32.mrb[15].mxu0  ;;  %v513_v58 = vadd.f32 %v5232_v57, %v5089_v1  ;;  %v5267_v33 = vld [vmem:[#allocation4 + $0x10] ss:$8 sps:$4 sm:$0xff]  }
 0x1e3   :  { %v5144_v36 = vmax.f32 %v620_v17, %v621_v22  ;;  %v5259_v22 = vld [vmem:[#allocation4 + $0x14] ss:$8 sps:$4 sm:$0xff]  }
 0x1e4   :  { %1267 = vmatmul.mubr.bf16.vlgmr.msra.gmra.mrb[32].mxu1 %v1229_v21  ;;  %1329 = vmatmul.mubr.bf16.vlgmr.msra.gmra.mrb[36].mxu0 %v1290_v32  ;;  %v514_v1 = vmax.f32 %v513_v58, 0.0  ;;  %v5263_v32 = vpop.permute.xlu1 %1557  ;;  %v5282_v34 = vld [vmem:[#allocation4 + $0x34] ss:$8 sps:$4 sm:$0xff]   ;;  %v5381_v58 = vld [vmem:[#allocation4 + $0xd0] ss:$8 sps:$4 sm:$0xff]  }
 0x1e5   :  { %1348 = vmatpush1.bf16.msra.mxu1 %v4909_v6  ;;  %1405 = vmatpush1.bf16.msra.mxu0 %v4909_v6  ;;  %v623_v35 = vadd.f32 %v5232_v57, %v5144_v36  ;;  %6601 = vst [vmem:[#allocation23_spill] sm:$0xff] %v5381_v58 }
 0x1e6   :  { %1349 = vmatprep.subr.bf16.mxu1 %v4913_v7  ;;  %1406 = vmatprep.subr.bf16.mxu0 %v4913_v7  ;;  %v5261_v27 = vpack.c.bf16 %v514_v1, %v514_v1  ;;  %v5401_v1 = vld [vmem:[#allocation4 + $0xf0] ss:$8 sps:$4 sm:$0xff]  }
 0x1e7   :  { %3661 = vmatprep.mubr.msk.bf16.mxu1 %vm291_vm0, %v5129_v9  ;;  %3663 = vmatprep.mubr.msk.bf16.mxu0 %vm291_vm0, %v1397_v37  ;;  %6605 = vst [vmem:[#allocation27_spill] sm:$0xff] %v5401_v1 }
 0x1e9   :  { %1350 = vmatpush1.bf16.msra.mxu1 %v4920_v8  ;;  %1407 = vmatpush1.bf16.msra.mxu0 %v4920_v8 }
 0x1ea   :  { %1351 = vmatprep.subr.bf16.mxu1 %v4927_v10  ;;  %1408 = vmatprep.subr.bf16.mxu0 %v4927_v10 }
 0x1ed   :  { %1352 = vmatpush1.bf16.msra.mxu1 %v4932_v12  ;;  %1409 = vmatpush1.bf16.msra.mxu0 %v4932_v12 }
 0x1ee   :  { %1353 = vmatprep.subr.bf16.mxu1 %v4936_v13  ;;  %1410 = vmatprep.subr.bf16.mxu0 %v4936_v13 }
 0x1f1   :  { %1354 = vmatpush1.bf16.msra.mxu1 %v4940_v14  ;;  %1411 = vmatpush1.bf16.msra.mxu0 %v4940_v14 }
 0x1f2   :  { %1355 = vmatprep.subr.bf16.mxu1 %v4944_v15  ;;  %1412 = vmatprep.subr.bf16.mxu0 %v4944_v15 }
 0x1f5   :  { %1356 = vmatpush1.bf16.msra.mxu1 %v4948_v16  ;;  %1413 = vmatpush1.bf16.msra.mxu0 %v4948_v16 }
 0x1f6   :  { %1357 = vmatprep.subr.bf16.mxu1 %v4952_v19  ;;  %1414 = vmatprep.subr.bf16.mxu0 %v4952_v19 }
 0x1f9   :  { %1358 = vmatpush1.bf16.msra.mxu1 %v4997_v24  ;;  %1415 = vmatpush1.bf16.msra.mxu0 %v4997_v24 }
 0x1fa   :  { %1359 = vmatprep.subr.bf16.mxu1 %v5001_v25  ;;  %1416 = vmatprep.subr.bf16.mxu0 %v5001_v25 }
 0x1fd   :  { %1360 = vmatpush1.bf16.msra.mxu1 %v5005_v28  ;;  %1417 = vmatpush1.bf16.msra.mxu0 %v5005_v28 }
 0x1fe   :  { %1361 = vmatprep.subr.bf16.mxu1 %v5009_v29  ;;  %1418 = vmatprep.subr.bf16.mxu0 %v5009_v29 }
 0x201   :  { %1362 = vmatpush1.bf16.msra.mxu1 %v5013_v30  ;;  %1419 = vmatpush1.bf16.msra.mxu0 %v5013_v30 }
 0x202   :  { %3660 = vmatprep.subr.msk.bf16.mxu1 %vm295_vm1, %v5017_v31  ;;  %3662 = vmatprep.subr.msk.bf16.mxu0 %vm295_vm1, %v5017_v31 }
 0x203   :  { %v721_v41 = vpop.f32.mrb[12].mxu1  ;;  %v5185_v42 = vpop.f32.mrb[16].mxu0 }
 0x204   :  { %v728_v43 = vmax.f32 %v5131_v23, %v721_v41  ;;  %v723_v44 = vpop.f32.mrb[13].mxu1  ;;  %v5188_v45 = vpop.f32.mrb[17].mxu0  ;;  %v5253_v23 = vld [vmem:[#allocation4] ss:$8 sps:$4 sm:$0xff]  }
 0x205   :  { %v729_v48 = vmax.f32 %v5134_v20, %v723_v44  ;;  %v725_v49 = vpop.f32.mrb[14].mxu1  ;;  %1364 = vmatpush1.bf16.msra.mxu1 %v4648_v26  ;;  %1421 = vmatpush1.bf16.msra.mxu0 %v4648_v26  ;;  %v782_v51 = vpop.f32.mrb[18].mxu0 }
 0x206   :  { %v726_v52 = vpop.f32.mrb[15].mxu1  ;;  %1455 = vmatprep.subr.bf16.mxu1 %v4902_v3  ;;  %1512 = vmatprep.subr.bf16.mxu0 %v4902_v3  ;;  %v783_v53 = vpop.f32.mrb[19].mxu0  ;;  %v5360_v51 = vld [vmem:[#allocation4 + $0xb4] ss:$8 sps:$4 sm:$0xff]  }
 0x207   :  { %v5196_v54 = vmax.f32 %v728_v43, %v729_v48  ;;  %v5344_v43 = vld [vmem:[#allocation4 + $0x90] ss:$8 sps:$4 sm:$0xff]   ;;  %6596 = vst [vmem:[#allocation18_spill] sm:$0xff] %v5360_v51  ;;  %v5369_v53 = vld [vmem:[#allocation4 + $0xc4] ss:$8 sps:$4 sm:$0xff]  }
 0x208   :  { %1380 = vmatmul.mubr.bf16.vlgmr.msra.gmra.mrb[36].mxu1 %v1342_v47  ;;  %1437 = vmatmul.mubr.bf16.vlgmr.msra.gmra.mrb[40].mxu0 %v1399_v50  ;;  %6593 = vst [vmem:[#allocation15_spill] sm:$0xff] %v5344_v43  ;;  %v5348_v47 = vld [vmem:[#allocation4 + $0xa4] ss:$8 sps:$4 sm:$0xff]   ;;  %v5365_v52 = vld [vmem:[#allocation4 + $0xb0] ss:$8 sps:$4 sm:$0xff]   ;;  %6598 = vst [vmem:[#allocation20_spill] sm:$0xff] %v5369_v53 }
 0x209   :  { %1456 = vmatpush1.bf16.msra.mxu1 %v4909_v6  ;;  %1513 = vmatpush1.bf16.msra.mxu0 %v4909_v6  ;;  %6594 = vst [vmem:[#allocation16_spill] sm:$0xff] %v5348_v47  ;;  %6597 = vst [vmem:[#allocation19_spill] sm:$0xff] %v5365_v52 }
 0x20a   :  { %1457 = vmatprep.subr.bf16.mxu1 %v4913_v7  ;;  %1514 = vmatprep.subr.bf16.mxu0 %v4913_v7 }
 0x20b   :  { %3665 = vmatprep.mubr.msk.bf16.mxu1 %vm291_vm0, %v5183_v40  ;;  %3667 = vmatprep.mubr.msk.bf16.mxu0 %vm291_vm0, %v1505_v55  ;;  %v5373_v55 = vld [vmem:[#allocation4 + $0xc0] ss:$8 sps:$4 sm:$0xff]  }
 0x20c   :  { %6599 = vst [vmem:[#allocation21_spill] sm:$0xff] %v5373_v55 }
 0x20d   :  { %1458 = vmatpush1.bf16.msra.mxu1 %v4920_v8  ;;  %1515 = vmatpush1.bf16.msra.mxu0 %v4920_v8 }
 0x20e   :  { %1459 = vmatprep.subr.bf16.mxu1 %v4927_v10  ;;  %1516 = vmatprep.subr.bf16.mxu0 %v4927_v10 }
 0x211   :  { %1460 = vmatpush1.bf16.msra.mxu1 %v4932_v12  ;;  %1517 = vmatpush1.bf16.msra.mxu0 %v4932_v12 }
 0x212   :  { %1461 = vmatprep.subr.bf16.mxu1 %v4936_v13  ;;  %1518 = vmatprep.subr.bf16.mxu0 %v4936_v13 }
 0x215   :  { %1462 = vmatpush1.bf16.msra.mxu1 %v4940_v14  ;;  %1519 = vmatpush1.bf16.msra.mxu0 %v4940_v14 }
 0x216   :  { %1463 = vmatprep.subr.bf16.mxu1 %v4944_v15  ;;  %1520 = vmatprep.subr.bf16.mxu0 %v4944_v15 }
 0x219   :  { %1464 = vmatpush1.bf16.msra.mxu1 %v4948_v16  ;;  %1521 = vmatpush1.bf16.msra.mxu0 %v4948_v16 }
 0x21a   :  { %1465 = vmatprep.subr.bf16.mxu1 %v4952_v19  ;;  %1522 = vmatprep.subr.bf16.mxu0 %v4952_v19 }
 0x21d   :  { %1466 = vmatpush1.bf16.msra.mxu1 %v4997_v24  ;;  %1523 = vmatpush1.bf16.msra.mxu0 %v4997_v24 }
 0x21e   :  { %1467 = vmatprep.subr.bf16.mxu1 %v5001_v25  ;;  %1524 = vmatprep.subr.bf16.mxu0 %v5001_v25 }
 0x221   :  { %1468 = vmatpush1.bf16.msra.mxu1 %v5005_v28  ;;  %1525 = vmatpush1.bf16.msra.mxu0 %v5005_v28 }
 0x222   :  { %1469 = vmatprep.subr.bf16.mxu1 %v5009_v29  ;;  %1526 = vmatprep.subr.bf16.mxu0 %v5009_v29 }
 0x225   :  { %1470 = vmatpush1.bf16.msra.mxu1 %v5013_v30  ;;  %1527 = vmatpush1.bf16.msra.mxu0 %v5013_v30 }
 0x226   :  { %3664 = vmatprep.subr.msk.bf16.mxu1 %vm295_vm1, %v5017_v31  ;;  %3666 = vmatprep.subr.msk.bf16.mxu0 %vm295_vm1, %v5017_v31 }
 0x227   :  { %v834_v61 = vpop.f32.mrb[16].mxu1  ;;  %v5244_v62 = vpop.f32.mrb[20].mxu0 }
 0x228   :  { %v841_v63 = vmax.f32 %v5185_v42, %v834_v61  ;;  %v836_v0 = vpop.f32.mrb[17].mxu1  ;;  %v5247_v2 = vpop.f32.mrb[21].mxu0  ;;  %v5389_v61 = vld [vmem:[#allocation4 + $0xe0] ss:$8 sps:$4 sm:$0xff]  }
 0x229   :  { %v842_v5 = vmax.f32 %v5188_v45, %v836_v0  ;;  %v838_v9 = vpop.f32.mrb[18].mxu1  ;;  %1472 = vmatpush1.bf16.msra.mxu1 %v4648_v26  ;;  %1529 = vmatpush1.bf16.msra.mxu0 %v4648_v26  ;;  %v895_v17 = vpop.f32.mrb[22].mxu0  ;;  %6603 = vst [vmem:[#allocation25_spill] sm:$0xff] %v5389_v61  ;;  %v731_v0 = vadd.f32 %v5232_v57, %v5196_v54 }
 0x22a   :  { %v839_v18 = vpop.f32.mrb[19].mxu1  ;;  %1565 = vmatprep.subr.bf16.mxu1 %v4902_v3  ;;  %2012 = vmatprep.subr.bf16.mxu0 %v5242_v60  ;;  %v896_v20 = vpop.f32.mrb[23].mxu0  ;;  %v5271_v3 = vld [vmem:[#allocation4 + $0x24] ss:$8 sps:$4 sm:$0xff]   ;;  %v5413_v9 = vld [vmem:[#allocation4 + $0x114] ss:$8 sps:$4 sm:$0xff]  }
 0x22b   :  { %v5257_v21 = vmax.f32 %v841_v63, %v842_v5  ;;  %v5395_v63 = vld [vmem:[#allocation4 + $0xf4] ss:$8 sps:$4 sm:$0xff]   ;;  %v5409_v5 = vld [vmem:[#allocation4 + $0x100] ss:$8 sps:$4 sm:$0xff]   ;;  %6608 = vst [vmem:[#allocation30_spill] sm:$0xff] %v5413_v9 }
 0x22c   :  { %1488 = vmatmul.mubr.bf16.vlgmr.msra.gmra.mrb[40].mxu1 %v1450_v4  ;;  %1545 = vmatmul.mubr.bf16.vlgmr.msra.gmra.mrb[44].mxu0 %v1507_v11  ;;  %6604 = vst [vmem:[#allocation26_spill] sm:$0xff] %v5395_v63  ;;  %v732_v4 = vmax.f32 %v731_v0, 0.0  ;;  %6607 = vst [vmem:[#allocation29_spill] sm:$0xff] %v5409_v5  ;;  %v5419_v17 = vld [vmem:[#allocation4 + $0x110] ss:$8 sps:$4 sm:$0xff]  }
 0x22d   :  { %1566 = vmatpush1.bf16.msra.mxu1 %v4909_v6  ;;  %2013 = vmatpush1.bf16.msra.mxu0 %v5253_v23  ;;  %v5278_v6 = vld [vmem:[#allocation4 + $0x20] ss:$8 sps:$4 sm:$0xff]   ;;  %6609 = vst [vmem:[#allocation31_spill] sm:$0xff] %v5419_v17  ;;  %v5423_v18 = vld [vmem:[#allocation4 + $0x124] ss:$8 sps:$4 sm:$0xff]  }
 0x22e   :  { %2044 = vmatprep.mubr.bf16.mxu0 %v5261_v27  ;;  %1567 = vmatprep.subr.bf16.mxu1 %v4913_v7  ;;  %v5286_v7 = vld [vmem:[#allocation4 + $0x30] ss:$8 sps:$4 sm:$0xff]   ;;  %v5415_v11 = vpack.c.bf16 %v732_v4, %v732_v4  ;;  %6610 = vst [vmem:[#allocation32_spill] sm:$0xff] %v5423_v18  ;;  %v5467_v4 = vld [vmem:[#allocation4 + $0x160] ss:$8 sps:$4 sm:$0xff]  }
 0x22f   :  { %2014 = vmatprep.subr.bf16.mxu0 %v5259_v22  ;;  %3669 = vmatprep.mubr.msk.bf16.mxu1 %vm291_vm0, %v5263_v32  ;;  %vm1559_vm0 = vcmask 1014784   ;;  %v5459_v0 = vld [vmem:[#allocation4 + $0x150] ss:$8 sps:$4 sm:$0xff]   ;;  %6620 = vst [vmem:[#allocation42_spill] sm:$0xff] %v5467_v4 }
 0x230   :  { %6618 = vst [vmem:[#allocation40_spill] sm:$0xff] %v5459_v0 }
 0x231   :  { %1568 = vmatpush1.bf16.msra.mxu1 %v4920_v8  ;;  %2015 = vmatpush1.bf16.msra.mxu0 %v5267_v33  ;;  %v5290_v8 = vld [vmem:[#allocation4 + $0x44] ss:$8 sps:$4 sm:$0xff]  }
 0x232   :  { %1569 = vmatprep.subr.bf16.mxu1 %v4927_v10  ;;  %2016 = vmatprep.subr.bf16.mxu0 %v5271_v3  ;;  %v5294_v10 = vld [vmem:[#allocation4 + $0x40] ss:$8 sps:$4 sm:$0xff]  }
 0x235   :  { %1570 = vmatpush1.bf16.msra.mxu1 %v4932_v12  ;;  %2017 = vmatpush1.bf16.msra.mxu0 %v5278_v6  ;;  %v5298_v12 = vld [vmem:[#allocation4 + $0x54] ss:$8 sps:$4 sm:$0xff]  }
 0x236   :  { %1571 = vmatprep.subr.bf16.mxu1 %v4936_v13  ;;  %2018 = vmatprep.subr.bf16.mxu0 %v5282_v34  ;;  %v5302_v13 = vld [vmem:[#allocation4 + $0x50] ss:$8 sps:$4 sm:$0xff]  }
 0x239   :  { %1572 = vmatpush1.bf16.msra.mxu1 %v4940_v14  ;;  %2019 = vmatpush1.bf16.msra.mxu0 %v5286_v7  ;;  %v5306_v14 = vld [vmem:[#allocation4 + $0x64] ss:$8 sps:$4 sm:$0xff]  }
 0x23a   :  { %1573 = vmatprep.subr.bf16.mxu1 %v4944_v15  ;;  %2020 = vmatprep.subr.bf16.mxu0 %v5290_v8  ;;  %v5310_v15 = vld [vmem:[#allocation4 + $0x60] ss:$8 sps:$4 sm:$0xff]  }
 0x23d   :  { %1574 = vmatpush1.bf16.msra.mxu1 %v4948_v16  ;;  %2021 = vmatpush1.bf16.msra.mxu0 %v5294_v10  ;;  %v5314_v16 = vld [vmem:[#allocation4 + $0x74] ss:$8 sps:$4 sm:$0xff]  }
 0x23e   :  { %1575 = vmatprep.subr.bf16.mxu1 %v4952_v19  ;;  %2022 = vmatprep.subr.bf16.mxu0 %v5298_v12  ;;  %v5318_v19 = vld [vmem:[#allocation4 + $0x70] ss:$8 sps:$4 sm:$0xff]  }
 0x241   :  { %1576 = vmatpush1.bf16.msra.mxu1 %v4997_v24  ;;  %2023 = vmatpush1.bf16.msra.mxu0 %v5302_v13  ;;  %v5322_v24 = vld [vmem:[#allocation4 + $0x84] ss:$8 sps:$4 sm:$0xff]  }
 0x242   :  { %1577 = vmatprep.subr.bf16.mxu1 %v5001_v25  ;;  %2024 = vmatprep.subr.bf16.mxu0 %v5306_v14  ;;  %6590 = vst [vmem:[#allocation12_spill] sm:$0xff] %v5322_v24  ;;  %v5328_v25 = vld [vmem:[#allocation4 + $0x80] ss:$8 sps:$4 sm:$0xff]  }
 0x243   :  { %6591 = vst [vmem:[#allocation13_spill] sm:$0xff] %v5328_v25 }
 0x245   :  { %1578 = vmatpush1.bf16.msra.mxu1 %v5005_v28  ;;  %2025 = vmatpush1.bf16.msra.mxu0 %v5310_v15  ;;  %v1556_v28 = vpop.permute.xlu0 %1555 }
 0x246   :  { %1579 = vmatprep.subr.bf16.mxu1 %v5009_v29  ;;  %2026 = vmatprep.subr.bf16.mxu0 %v5314_v16  ;;  %v5333_v29 = vld [vmem:[#allocation4 + $0x94] ss:$8 sps:$4 sm:$0xff]  }
 0x247   :  { %6592 = vst [vmem:[#allocation14_spill] sm:$0xff] %v5333_v29 }
 0x249   :  { %1580 = vmatpush1.bf16.msra.mxu1 %v5013_v30  ;;  %2027 = vmatpush1.bf16.msra.mxu0 %v5318_v19  ;;  %v624_v30 = vmax.f32 %v623_v35, 0.0 }
 0x24a   :  { %3668 = vmatprep.subr.msk.bf16.mxu1 %vm295_vm1, %v5017_v31  ;;  %2028 = vmatprep.subr.bf16.mxu0 %v5322_v24  ;;  %v1560_v31 = vsel %vm1559_vm0, %v1556_v28, %v5263_v32  ;;  %vm4416_vm1 = vmmov 0  }
 0x24b   :  { %v942_v37 = vpop.f32.mrb[20].mxu1  ;;  %v5335_v38 = vpop.f32.mrb[24].mxu0  ;;  %v5352_v50 = vpack.c.bf16 %v624_v30, %v624_v30  ;;  %v5433_v30 = vld [vmem:[#allocation4 + $0x120] ss:$8 sps:$4 sm:$0xff]  }
 0x24c   :  { %v949_v36 = vmax.f32 %v5244_v62, %v942_v37  ;;  %v944_v39 = vpop.f32.mrb[21].mxu1  ;;  %v5338_v40 = vpop.f32.mrb[25].mxu0  ;;  %v405_v62 = vadd.f32 %v5232_v57, %v5035_v46  ;;  %v5405_v46 = vld [vmem:[#allocation4 + $0x104] ss:$8 sps:$4 sm:$0xff]   ;;  %6611 = vst [vmem:[#allocation33_spill] sm:$0xff] %v5433_v30 }
 0x24d   :  { %v950_v41 = vmax.f32 %v5247_v2, %v944_v39  ;;  %v946_v42 = vpop.f32.mrb[22].mxu1  ;;  %1582 = vmatpush1.bf16.msra.mxu1 %v4648_v26  ;;  %2029 = vmatpush1.bf16.msra.mxu0 %v5328_v25  ;;  %v1003_v44 = vpop.f32.mrb[26].mxu0  ;;  %v5356_v26 = vld [vmem:[#allocation4 + $0xa0] ss:$8 sps:$4 sm:$0xff]   ;;  %6606 = vst [vmem:[#allocation28_spill] sm:$0xff] %v5405_v46 }
 0x24e   :  { %v947_v45 = vpop.f32.mrb[23].mxu1  ;;  %2030 = vmatprep.subr.bf16.mxu0 %v5333_v29  ;;  %2135 = vmatprep.subr.bf16.mxu1 %v5242_v60  ;;  %v1004_v48 = vpop.f32.mrb[27].mxu0  ;;  %6595 = vst [vmem:[#allocation17_spill] sm:$0xff] %v5356_v26  ;;  %v406_v2 = vmax.f32 %v405_v62, 0.0  ;;  %v5455_v62 = vld [vmem:[#allocation4 + $0x154] ss:$8 sps:$4 sm:$0xff]  }
 0x24f   :  { %v5350_v49 = vmax.f32 %v949_v36, %v950_v41  ;;  %v5447_v45 = vld [vmem:[#allocation4 + $0x144] ss:$8 sps:$4 sm:$0xff]   ;;  %v5451_v48 = vld [vmem:[#allocation4 + $0x140] ss:$8 sps:$4 sm:$0xff]   ;;  %6617 = vst [vmem:[#allocation39_spill] sm:$0xff] %v5455_v62 }
 0x250   :  { %1598 = vmatmul.mubr.bf16.vlgmr.msra.gmra.mrb[44].mxu1 %v1560_v31  ;;  %v407_v54 = vpack.c.bf16 %v406_v2, %v406_v2  ;;  %v5437_v31 = vld [vmem:[#allocation4 + $0x134] ss:$8 sps:$4 sm:$0xff]   ;;  %6615 = vst [vmem:[#allocation37_spill] sm:$0xff] %v5447_v45  ;;  %6616 = vst [vmem:[#allocation38_spill] sm:$0xff] %v5451_v48  ;;  %v5463_v2 = vld [vmem:[#allocation4 + $0x164] ss:$8 sps:$4 sm:$0xff]  }
 0x251   :  { %2031 = vmatpush1.bf16.msra.mxu0 %v5344_v43  ;;  %2136 = vmatpush1.bf16.msra.mxu1 %v5253_v23  ;;  %6612 = vst [vmem:[#allocation34_spill] sm:$0xff] %v5437_v31  ;;  %6619 = vst [vmem:[#allocation41_spill] sm:$0xff] %v5463_v2 }
 0x252   :  { %2167 = vmatprep.mubr.bf16.mxu1 %v5352_v50  ;;  %2032 = vmatprep.subr.bf16.mxu0 %v5348_v47 }
 0x253   :  { %2137 = vmatprep.subr.bf16.mxu1 %v5259_v22 }
 0x255   :  { %2033 = vmatpush1.bf16.msra.mxu0 %v5356_v26  ;;  %2138 = vmatpush1.bf16.msra.mxu1 %v5267_v33 }
 0x256   :  { %2034 = vmatprep.subr.bf16.mxu0 %v5360_v51  ;;  %2139 = vmatprep.subr.bf16.mxu1 %v5271_v3 }
 0x259   :  { %2035 = vmatpush1.bf16.msra.mxu0 %v5365_v52  ;;  %2140 = vmatpush1.bf16.msra.mxu1 %v5278_v6 }
 0x25a   :  { %2036 = vmatprep.subr.bf16.mxu0 %v5369_v53  ;;  %2141 = vmatprep.subr.bf16.mxu1 %v5282_v34 }
 0x25d   :  { %2037 = vmatpush1.bf16.msra.mxu0 %v5373_v55  ;;  %2142 = vmatpush1.bf16.msra.mxu1 %v5286_v7 }
 0x25e   :  { %2038 = vmatprep.subr.bf16.mxu0 %v5377_v56  ;;  %2143 = vmatprep.subr.bf16.mxu1 %v5290_v8 }
 0x261   :  { %2039 = vmatpush1.bf16.msra.mxu0 %v5381_v58  ;;  %2144 = vmatpush1.bf16.msra.mxu1 %v5294_v10 }
 0x262   :  { %2040 = vmatprep.subr.bf16.mxu0 %v5385_v59  ;;  %2145 = vmatprep.subr.bf16.mxu1 %v5298_v12 }
 0x265   :  { %2041 = vmatpush1.bf16.msra.mxu0 %v5389_v61  ;;  %2146 = vmatpush1.bf16.msra.mxu1 %v5302_v13 }
 0x266   :  { %2042 = vmatprep.subr.bf16.mxu0 %v5395_v63  ;;  %2147 = vmatprep.subr.bf16.mxu1 %v5306_v14 }
 0x269   :  { %2043 = vmatpush1.bf16.msra.mxu0 %v5401_v1  ;;  %2148 = vmatpush1.bf16.msra.mxu1 %v5310_v15 }
 0x26a   :  { %2053 = vmatprep.subr.bf16.mxu0 %v5405_v46  ;;  %2149 = vmatprep.subr.bf16.mxu1 %v5314_v16 }
 0x26c   :  { %2045 = vmatmul.mubr.bf16.vlgmr.msra.gmra.mrb[48].mxu0 %v407_v54  ;;  %v5471_v54 = vld [vmem:[#allocation4 + $0x174] ss:$8 sps:$4 sm:$0xff]  }
 0x26d   :  { %2054 = vmatpush1.bf16.msra.mxu0 %v5409_v5  ;;  %2085 = vmatprep.mubr.bf16.mxu0 %v5415_v11  ;;  %6621 = vst [vmem:[#allocation43_spill] sm:$0xff] %v5471_v54 }
 0x26e   :  { %2150 = vmatpush1.bf16.msra.mxu1 %v5318_v19  ;;  %2055 = vmatprep.subr.bf16.mxu0 %v5413_v9 }
 0x26f   :  { %v1050_v20 = vpop.f32.mrb[24].mxu1  ;;  %2151 = vmatprep.subr.bf16.mxu1 %v5322_v24  ;;  %v5426_v32 = vpop.f32.mrb[28].mxu0 }
 0x270   :  { %v1057_v35 = vmax.f32 %v5335_v38, %v1050_v20  ;;  %v1052_v28 = vpop.f32.mrb[25].mxu1  ;;  %v5429_v37 = vpop.f32.mrb[29].mxu0  ;;  %v5475_v20 = vld [vmem:[#allocation4 + $0x170] ss:$8 sps:$4 sm:$0xff]  }
 0x271   :  { %v1058_v36 = vmax.f32 %v5338_v40, %v1052_v28  ;;  %v1054_v39 = vpop.f32.mrb[26].mxu1  ;;  %2056 = vmatpush1.bf16.msra.mxu0 %v5419_v17  ;;  %v1113_v41 = vpop.f32.mrb[30].mxu0  ;;  %v5443_v40 = vld [vmem:[#allocation4 + $0x130] ss:$8 sps:$4 sm:$0xff]   ;;  %6622 = vst [vmem:[#allocation44_spill] sm:$0xff] %v5475_v20  ;;  %v844_v28 = vadd.f32 %v5232_v57, %v5257_v21 }
 0x272   :  { %2152 = vmatpush1.bf16.msra.mxu1 %v5328_v25  ;;  %v1055_v42 = vpop.f32.mrb[27].mxu1  ;;  %2057 = vmatprep.subr.bf16.mxu0 %v5423_v18  ;;  %v1114_v44 = vpop.f32.mrb[31].mxu0  ;;  %6614 = vst [vmem:[#allocation36_spill] sm:$0xff] %v5443_v40  ;;  %v5489_v39 = vld [vmem:[#allocation4 + $0x194] ss:$8 sps:$4 sm:$0xff]  }
 0x273   :  { %v5439_v38 = vmax.f32 %v1057_v35, %v1058_v36  ;;  %2153 = vmatprep.subr.bf16.mxu1 %v5333_v29  ;;  %v5479_v35 = vld [vmem:[#allocation4 + $0x184] ss:$8 sps:$4 sm:$0xff]   ;;  %v5485_v36 = vld [vmem:[#allocation4 + $0x180] ss:$8 sps:$4 sm:$0xff]   ;;  %6625 = vst [vmem:[#allocation47_spill] sm:$0xff] %v5489_v39  ;;  %v845_v41 = vmax.f32 %v844_v28, 0.0 }
 0x274   :  { %6623 = vst [vmem:[#allocation45_spill] sm:$0xff] %v5479_v35  ;;  %6624 = vst [vmem:[#allocation46_spill] sm:$0xff] %v5485_v36  ;;  %v5493_v42 = vld [vmem:[#allocation4 + $0x190] ss:$8 sps:$4 sm:$0xff]   ;;  %v5498_v21 = vld [vmem:[#allocation4 + $0x1a4] ss:$8 sps:$4 sm:$0xff]  }
 0x275   :  { %6613 = vst [vmem:[#allocation35_spill] sm:$0xff] %v5439_v38  ;;  %2058 = vmatpush1.bf16.msra.mxu0 %v5433_v30  ;;  %6626 = vst [vmem:[#allocation48_spill] sm:$0xff] %v5493_v42  ;;  %v5500_v44 = vpack.c.bf16 %v845_v41, %v845_v41  ;;  %v5504_v38 = vld [vmem:[#allocation4 + $0x1a0] ss:$8 sps:$4 sm:$0xff]   ;;  %v5508_v28 = vld [vmem:[#allocation4 + $0x1b4] ss:$8 sps:$4 sm:$0xff]  }
 0x276   :  { %2154 = vmatpush1.bf16.msra.mxu1 %v5344_v43  ;;  %2059 = vmatprep.subr.bf16.mxu0 %v5437_v31  ;;  %6627 = vst [vmem:[#allocation49_spill] sm:$0xff] %v5498_v21 }
 0x277   :  { %2155 = vmatprep.subr.bf16.mxu1 %v5348_v47 }
 0x279   :  { %2060 = vmatpush1.bf16.msra.mxu0 %v5443_v40 }
 0x27a   :  { %2156 = vmatpush1.bf16.msra.mxu1 %v5356_v26  ;;  %2061 = vmatprep.subr.bf16.mxu0 %v5447_v45 }
 0x27b   :  { %2157 = vmatprep.subr.bf16.mxu1 %v5360_v51 }
 0x27d   :  { %2062 = vmatpush1.bf16.msra.mxu0 %v5451_v48 }
 0x27e   :  { %2158 = vmatpush1.bf16.msra.mxu1 %v5365_v52  ;;  %2063 = vmatprep.subr.bf16.mxu0 %v5455_v62 }
 0x27f   :  { %2159 = vmatprep.subr.bf16.mxu1 %v5369_v53 }
 0x281   :  { %2064 = vmatpush1.bf16.msra.mxu0 %v5459_v0 }
 0x282   :  { %2160 = vmatpush1.bf16.msra.mxu1 %v5373_v55  ;;  %2065 = vmatprep.subr.bf16.mxu0 %v5463_v2 }
 0x283   :  { %2161 = vmatprep.subr.bf16.mxu1 %v5377_v56 }
 0x285   :  { %2066 = vmatpush1.bf16.msra.mxu0 %v5467_v4 }
 0x286   :  { %2162 = vmatpush1.bf16.msra.mxu1 %v5381_v58  ;;  %2067 = vmatprep.subr.bf16.mxu0 %v5471_v54 }
 0x287   :  { %2163 = vmatprep.subr.bf16.mxu1 %v5385_v59 }
 0x289   :  { %2068 = vmatpush1.bf16.msra.mxu0 %v5475_v20 }
 0x28a   :  { %2164 = vmatpush1.bf16.msra.mxu1 %v5389_v61  ;;  %2069 = vmatprep.subr.bf16.mxu0 %v5479_v35 }
 0x28b   :  { %2165 = vmatprep.subr.bf16.mxu1 %v5395_v63 }
 0x28d   :  { %2070 = vmatpush1.bf16.msra.mxu0 %v5485_v36 }
 0x28e   :  { %2166 = vmatpush1.bf16.msra.mxu1 %v5401_v1  ;;  %2071 = vmatprep.subr.bf16.mxu0 %v5489_v39 }
 0x28f   :  { %2176 = vmatprep.subr.bf16.mxu1 %v5405_v46 }
 0x291   :  { %2168 = vmatmul.mubr.bf16.vlgmr.msra.gmra.mrb[48].mxu1 %v5261_v27  ;;  %2072 = vmatpush1.bf16.msra.mxu0 %v5493_v42 }
 0x292   :  { %2177 = vmatpush1.bf16.msra.mxu1 %v5409_v5  ;;  %2208 = vmatprep.mubr.bf16.mxu1 %v5500_v44  ;;  %v5519_v5 = vld [vmem:[#allocation4 + $0x1b0] ss:$8 sps:$4 sm:$0xff]  }
 0x293   :  { %v1160_v1 = vpop.f32.mrb[28].mxu1  ;;  %2073 = vmatprep.subr.bf16.mxu0 %v5498_v21  ;;  %2178 = vmatprep.subr.bf16.mxu1 %v5413_v9  ;;  %v5512_v46 = vpop.f32.mrb[32].mxu0  ;;  %v5523_v9 = vld [vmem:[#allocation4 + $0x1c4] ss:$8 sps:$4 sm:$0xff]  }
 0x294   :  { %v1167_v41 = vmax.f32 %v5426_v32, %v1160_v1  ;;  %v1162_v27 = vpop.f32.mrb[29].mxu1  ;;  %v5515_v63 = vpop.f32.mrb[33].mxu0  ;;  %6628 = vst [vmem:[#allocation50_spill] sm:$0xff] %v5523_v9  ;;  %v5549_v32 = vld [vmem:[#allocation4 + $0x1f4] ss:$8 sps:$4 sm:$0xff]  }
 0x295   :  { %v1168_v61 = vmax.f32 %v5429_v37, %v1162_v27  ;;  %v1164_v59 = vpop.f32.mrb[30].mxu1  ;;  %2074 = vmatpush1.bf16.msra.mxu0 %v5504_v38  ;;  %v1221_v58 = vpop.f32.mrb[34].mxu0  ;;  %6633 = vst [vmem:[#allocation55_spill] sm:$0xff] %v5549_v32  ;;  %v5553_v37 = vld [vmem:[#allocation4 + $0x1f0] ss:$8 sps:$4 sm:$0xff]  }
 0x296   :  { %2179 = vmatpush1.bf16.msra.mxu1 %v5419_v17  ;;  %v1165_v56 = vpop.f32.mrb[31].mxu1  ;;  %2075 = vmatprep.subr.bf16.mxu0 %v5508_v28  ;;  %v1222_v55 = vpop.f32.mrb[35].mxu0  ;;  %v5529_v59 = vld [vmem:[#allocation4 + $0x1c0] ss:$8 sps:$4 sm:$0xff]   ;;  %v5533_v58 = vld [vmem:[#allocation4 + $0x1d4] ss:$8 sps:$4 sm:$0xff]  }
 0x297   :  { %v5525_v1 = vmax.f32 %v1167_v41, %v1168_v61  ;;  %2180 = vmatprep.subr.bf16.mxu1 %v5423_v18  ;;  %6630 = vst [vmem:[#allocation52_spill] sm:$0xff] %v5533_v58  ;;  %v5537_v56 = vld [vmem:[#allocation4 + $0x1d0] ss:$8 sps:$4 sm:$0xff]   ;;  %v5541_v55 = vld [vmem:[#allocation4 + $0x1e4] ss:$8 sps:$4 sm:$0xff]   ;;  %6634 = vst [vmem:[#allocation56_spill] sm:$0xff] %v5553_v37 }
 0x298   :  { %6631 = vst [vmem:[#allocation53_spill] sm:$0xff] %v5541_v55  ;;  %v5545_v61 = vld [vmem:[#allocation4 + $0x1e0] ss:$8 sps:$4 sm:$0xff]   ;;  %v5557_v41 = vld [vmem:[#allocation4 + $0x204] ss:$8 sps:$4 sm:$0xff]  }
 0x299   :  { %6629 = vst [vmem:[#allocation51_spill] sm:$0xff] %v5525_v1  ;;  %2076 = vmatpush1.bf16.msra.mxu0 %v5519_v5  ;;  %6632 = vst [vmem:[#allocation54_spill] sm:$0xff] %v5545_v61  ;;  %v5561_v27 = vld [vmem:[#allocation4 + $0x200] ss:$8 sps:$4 sm:$0xff]   ;;  %v5565_v1 = vld [vmem:[#allocation4 + $0x214] ss:$8 sps:$4 sm:$0xff]  }
 0x29a   :  { %2181 = vmatpush1.bf16.msra.mxu1 %v5433_v30  ;;  %2077 = vmatprep.subr.bf16.mxu0 %v5523_v9  ;;  %6635 = vst [vmem:[#allocation57_spill] sm:$0xff] %v5557_v41  ;;  %6636 = vst [vmem:[#allocation58_spill] sm:$0xff] %v5561_v27 }
 0x29b   :  { %2182 = vmatprep.subr.bf16.mxu1 %v5437_v31  ;;  %6637 = vst [vmem:[#allocation59_spill] sm:$0xff] %v5565_v1 }
 0x29d   :  { %2078 = vmatpush1.bf16.msra.mxu0 %v5529_v59 }
 0x29e   :  { %2183 = vmatpush1.bf16.msra.mxu1 %v5443_v40  ;;  %2079 = vmatprep.subr.bf16.mxu0 %v5533_v58 }
 0x29f   :  { %2184 = vmatprep.subr.bf16.mxu1 %v5447_v45 }
 0x2a1   :  { %2080 = vmatpush1.bf16.msra.mxu0 %v5537_v56 }
 0x2a2   :  { %2185 = vmatpush1.bf16.msra.mxu1 %v5451_v48  ;;  %2081 = vmatprep.subr.bf16.mxu0 %v5541_v55 }
 0x2a3   :  { %2186 = vmatprep.subr.bf16.mxu1 %v5455_v62  ;;  %v6496_v62 = vmov 0  }
 0x2a5   :  { %2082 = vmatpush1.bf16.msra.mxu0 %v5545_v61 }
 0x2a6   :  { %2187 = vmatpush1.bf16.msra.mxu1 %v5459_v0  ;;  %2083 = vmatprep.subr.bf16.mxu0 %v5549_v32  ;;  %v5570_v0 = vld [vmem:[#allocation4 + $0x210] ss:$8 sps:$4 sm:$0xff]  }
 0x2a7   :  { %2188 = vmatprep.subr.bf16.mxu1 %v5463_v2  ;;  %6638 = vst [vmem:[#allocation60_spill] sm:$0xff] %v5570_v0  ;;  %v5583_v2 = vld [vmem:[#allocation4 + $0x234] ss:$8 sps:$4 sm:$0xff]  }
 0x2a9   :  { %2084 = vmatpush1.bf16.msra.mxu0 %v5553_v37 }
 0x2aa   :  { %2189 = vmatpush1.bf16.msra.mxu1 %v5467_v4  ;;  %2094 = vmatprep.subr.bf16.mxu0 %v5557_v41  ;;  %v5575_v4 = vld [vmem:[#allocation4 + $0x224] ss:$8 sps:$4 sm:$0xff]  }
 0x2ab   :  { %2190 = vmatprep.subr.bf16.mxu1 %v5471_v54  ;;  %6639 = vst [vmem:[#allocation61_spill] sm:$0xff] %v5575_v4  ;;  %v5579_v54 = vld [vmem:[#allocation4 + $0x220] ss:$8 sps:$4 sm:$0xff]  }
 0x2ac   :  { %2086 = vmatmul.mubr.bf16.vlgmr.msra.gmra.mrb[48].mxu0 %v5352_v50  ;;  %6640 = vst [vmem:[#allocation62_spill] sm:$0xff] %v5579_v54 }
 0x2ad   :  { %2095 = vmatpush1.bf16.msra.mxu0 %v5561_v27  ;;  %2126 = vmatprep.mubr.bf16.mxu0 %v6496_v62  ;;  %v5587_v62 = vld [vmem:[#allocation4 + $0x230] ss:$8 sps:$4 sm:$0xff]  }
 0x2ae   :  { %2191 = vmatpush1.bf16.msra.mxu1 %v5475_v20  ;;  %2096 = vmatprep.subr.bf16.mxu0 %v5565_v1 }
 0x2af   :  { %2192 = vmatprep.subr.bf16.mxu1 %v5479_v35  ;;  %v5591_v35 = vld [vmem:[#allocation4 + $0x244] ss:$8 sps:$4 sm:$0xff]  }
 0x2b0   :  { %6641 = vst [vmem:[#allocation63_spill] sm:$0xff] %v5591_v35 }
 0x2b1   :  { %2097 = vmatpush1.bf16.msra.mxu0 %v5570_v0 }
 0x2b2   :  { %2193 = vmatpush1.bf16.msra.mxu1 %v5485_v36  ;;  %2098 = vmatprep.subr.bf16.mxu0 %v5575_v4 }
 0x2b3   :  { %2194 = vmatprep.subr.bf16.mxu1 %v5489_v39 }
 0x2b5   :  { %2099 = vmatpush1.bf16.msra.mxu0 %v5579_v54 }
 0x2b6   :  { %2195 = vmatpush1.bf16.msra.mxu1 %v5493_v42  ;;  %2100 = vmatprep.subr.bf16.mxu0 %v5583_v2  ;;  %v5601_v42 = vld [vmem:[#allocation4 + $0x240] ss:$8 sps:$4 sm:$0xff]  }
 0x2b7   :  { %v1268_v20 = vpop.f32.mrb[32].mxu1  ;;  %2196 = vmatprep.subr.bf16.mxu1 %v5498_v21  ;;  %v5594_v36 = vpop.f32.mrb[36].mxu0  ;;  %v5605_v21 = vld [vmem:[#allocation4 + $0x254] ss:$8 sps:$4 sm:$0xff]  }
 0x2b8   :  { %v1275_v48 = vmax.f32 %v5512_v46, %v1268_v20  ;;  %v1270_v45 = vpop.f32.mrb[33].mxu1  ;;  %v5597_v40 = vpop.f32.mrb[37].mxu0  ;;  %6642 = vst [vmem:[#allocation64_spill] sm:$0xff] %v5605_v21 }
 0x2b9   :  { %v1276_v39 = vmax.f32 %v5515_v63, %v1270_v45  ;;  %v1272_v31 = vpop.f32.mrb[34].mxu1  ;;  %2101 = vmatpush1.bf16.msra.mxu0 %v5587_v62  ;;  %v1334_v30 = vpop.f32.mrb[38].mxu0  ;;  %v5611_v63 = vld [vmem:[#allocation4 + $0x250] ss:$8 sps:$4 sm:$0xff]   ;;  %v6645_v45 = vmov 0  }
 0x2ba   :  { %2197 = vmatpush1.bf16.msra.mxu1 %v5504_v38  ;;  %v1273_v18 = vpop.f32.mrb[35].mxu1  ;;  %2102 = vmatprep.subr.bf16.mxu0 %v5591_v35  ;;  %v1335_v17 = vpop.f32.mrb[39].mxu0  ;;  %6644 = vst [vmem:[#allocation66_spill] sm:$0xff] %v5611_v63  ;;  %v5615_v30 = vld [vmem:[#allocation4 + $0x264] ss:$8 sps:$4 sm:$0xff]  }
 0x2bb   :  { %v5607_v46 = vmax.f32 %v1275_v48, %v1276_v39  ;;  %2198 = vmatprep.subr.bf16.mxu1 %v5508_v28  ;;  %v5619_v18 = vld [vmem:[#allocation4 + $0x260] ss:$8 sps:$4 sm:$0xff]   ;;  %v5623_v17 = vld [vmem:[#allocation4 + $0x274] ss:$8 sps:$4 sm:$0xff]   ;;  %v5627_v31 = vld [vmem:[#allocation4 + $0x270] ss:$8 sps:$4 sm:$0xff]  }
 0x2bd   :  { %6643 = vst [vmem:[#allocation65_spill] sm:$0xff] %v5607_v46  ;;  %2103 = vmatpush1.bf16.msra.mxu0 %v5601_v42 }
 0x2be   :  { %2199 = vmatpush1.bf16.msra.mxu1 %v5519_v5  ;;  %2104 = vmatprep.subr.bf16.mxu0 %v5605_v21 }
 0x2bf   :  { %2200 = vmatprep.subr.bf16.mxu1 %v5523_v9 }
 0x2c1   :  { %2105 = vmatpush1.bf16.msra.mxu0 %v5611_v63 }
 0x2c2   :  { %2201 = vmatpush1.bf16.msra.mxu1 %v5529_v59  ;;  %2106 = vmatprep.subr.bf16.mxu0 %v5615_v30 }
 0x2c3   :  { %2202 = vmatprep.subr.bf16.mxu1 %v5533_v58 }
 0x2c5   :  { %2107 = vmatpush1.bf16.msra.mxu0 %v5619_v18 }
 0x2c6   :  { %2203 = vmatpush1.bf16.msra.mxu1 %v5537_v56  ;;  %2108 = vmatprep.subr.bf16.mxu0 %v5623_v17 }
 0x2c7   :  { %2204 = vmatprep.subr.bf16.mxu1 %v5541_v55 }
 0x2c9   :  { %2109 = vmatpush1.bf16.msra.mxu0 %v5627_v31 }
 0x2ca   :  { %2205 = vmatpush1.bf16.msra.mxu1 %v5545_v61  ;;  %2270 = vmatprep.subr.bf16.mxu0 %v5242_v60 }
 0x2cb   :  { %2206 = vmatprep.subr.bf16.mxu1 %v5549_v32 }
 0x2cc   :  { %2127 = vmatmul.mubr.bf16.vlgmr.msra.gmra.mrb[48].mxu0 %v5500_v44 }
 0x2cd   :  { %2271 = vmatpush1.bf16.msra.mxu0 %v5253_v23  ;;  %2302 = vmatprep.mubr.bf16.mxu0 %v5415_v11 }
 0x2ce   :  { %2207 = vmatpush1.bf16.msra.mxu1 %v5553_v37  ;;  %2272 = vmatprep.subr.bf16.mxu0 %v5259_v22 }
 0x2cf   :  { %2217 = vmatprep.subr.bf16.mxu1 %v5557_v41 }
 0x2d1   :  { %2209 = vmatmul.mubr.bf16.vlgmr.msra.gmra.mrb[48].mxu1 %v5415_v11  ;;  %2273 = vmatpush1.bf16.msra.mxu0 %v5267_v33 }
 0x2d2   :  { %2218 = vmatpush1.bf16.msra.mxu1 %v5561_v27  ;;  %2274 = vmatprep.subr.bf16.mxu0 %v5271_v3 }
 0x2d3   :  { %2219 = vmatprep.subr.bf16.mxu1 %v5565_v1  ;;  %2249 = vmatprep.mubr.bf16.mxu1 %v6645_v45 }
 0x2d5   :  { %2275 = vmatpush1.bf16.msra.mxu0 %v5278_v6 }
 0x2d6   :  { %2220 = vmatpush1.bf16.msra.mxu1 %v5570_v0  ;;  %2276 = vmatprep.subr.bf16.mxu0 %v5282_v34 }
 0x2d7   :  { %2221 = vmatprep.subr.bf16.mxu1 %v5575_v4 }
 0x2d9   :  { %2277 = vmatpush1.bf16.msra.mxu0 %v5286_v7 }
 0x2da   :  { %2222 = vmatpush1.bf16.msra.mxu1 %v5579_v54  ;;  %2278 = vmatprep.subr.bf16.mxu0 %v5290_v8 }
 0x2db   :  { %v1381_v48 = vpop.f32.mrb[36].mxu1  ;;  %2223 = vmatprep.subr.bf16.mxu1 %v5583_v2  ;;  %v5656_v20 = vpop.f32.mrb[40].mxu0 }
 0x2dc   :  { %v1388_v39 = vmax.f32 %v5594_v36, %v1381_v48  ;;  %v1383_v46 = vpop.f32.mrb[37].mxu1  ;;  %v1440_v1 = vpop.f32.mrb[41].mxu0 }
 0x2dd   :  { %v1389_v0 = vmax.f32 %v5597_v40, %v1383_v46  ;;  %v1385_v45 = vpop.f32.mrb[38].mxu1  ;;  %2279 = vmatpush1.bf16.msra.mxu0 %v5294_v10  ;;  %v1442_v4 = vpop.f32.mrb[42].mxu0  ;;  %v952_v40 = vadd.f32 %v5232_v57, %v5350_v49 }
 0x2de   :  { %2224 = vmatpush1.bf16.msra.mxu1 %v5587_v62  ;;  %v1386_v54 = vpop.f32.mrb[39].mxu1  ;;  %2280 = vmatprep.subr.bf16.mxu0 %v5298_v12  ;;  %v1443_v27 = vpop.f32.mrb[43].mxu0  ;;  %v6650_v45 = vld [vmem:[#allocation24_spill] sm:$0xff] }
 0x2df   :  { %v5663_v41 = vmax.f32 %v1388_v39, %v1389_v0  ;;  %2225 = vmatprep.subr.bf16.mxu1 %v5591_v35  ;;  %v953_v0 = vmax.f32 %v952_v40, 0.0  ;;  %v6649_v27 = vld [vmem:[#allocation23_spill] sm:$0xff]  ;;  %v6656_v39 = vld [vmem:[#allocation29_spill] sm:$0xff]  ;;  %v6657_v40 = vld [vmem:[#allocation30_spill] sm:$0xff] }
 0x2e1   :  { %6646 = vst [vmem:[#allocation67_spill] sm:$0xff] %v5663_v41  ;;  %2281 = vmatpush1.bf16.msra.mxu0 %v5302_v13  ;;  %v5683_v4 = vpack.c.bf16 %v953_v0, %v953_v0  ;;  %v6658_v0 = vld [vmem:[#allocation31_spill] sm:$0xff] }
 0x2e2   :  { %2226 = vmatpush1.bf16.msra.mxu1 %v5601_v42  ;;  %2282 = vmatprep.subr.bf16.mxu0 %v5306_v14 }
 0x2e3   :  { %2227 = vmatprep.subr.bf16.mxu1 %v5605_v21 }
 0x2e5   :  { %2283 = vmatpush1.bf16.msra.mxu0 %v5310_v15 }
 0x2e6   :  { %2228 = vmatpush1.bf16.msra.mxu1 %v5611_v63  ;;  %2284 = vmatprep.subr.bf16.mxu0 %v5314_v16 }
 0x2e7   :  { %2229 = vmatprep.subr.bf16.mxu1 %v5615_v30 }
 0x2e9   :  { %2285 = vmatpush1.bf16.msra.mxu0 %v5318_v19 }
 0x2ea   :  { %2230 = vmatpush1.bf16.msra.mxu1 %v5619_v18  ;;  %2286 = vmatprep.subr.bf16.mxu0 %v5322_v24 }
 0x2eb   :  { %2231 = vmatprep.subr.bf16.mxu1 %v5623_v17 }
 0x2ed   :  { %2287 = vmatpush1.bf16.msra.mxu0 %v5328_v25 }
 0x2ee   :  { %2232 = vmatpush1.bf16.msra.mxu1 %v5627_v31  ;;  %2288 = vmatprep.subr.bf16.mxu0 %v5333_v29 }
 0x2ef   :  { %2393 = vmatprep.subr.bf16.mxu1 %v5242_v60  ;;  %v6647_v60 = vld [vmem:[#allocation21_spill] sm:$0xff] }
 0x2f1   :  { %2250 = vmatmul.mubr.bf16.vlgmr.msra.gmra.mrb[48].mxu1 %v5683_v4  ;;  %2289 = vmatpush1.bf16.msra.mxu0 %v5344_v43 }
 0x2f2   :  { %2394 = vmatpush1.bf16.msra.mxu1 %v5253_v23  ;;  %2425 = vmatprep.mubr.bf16.mxu1 %v5500_v44  ;;  %v6648_v23 = vld [vmem:[#allocation22_spill] sm:$0xff] }
 0x2f3   :  { %2290 = vmatprep.subr.bf16.mxu0 %v5348_v47  ;;  %2395 = vmatprep.subr.bf16.mxu1 %v5259_v22 }
 0x2f5   :  { %2291 = vmatpush1.bf16.msra.mxu0 %v5356_v26 }
 0x2f6   :  { %2396 = vmatpush1.bf16.msra.mxu1 %v5267_v33  ;;  %2292 = vmatprep.subr.bf16.mxu0 %v5360_v51 }
 0x2f7   :  { %2397 = vmatprep.subr.bf16.mxu1 %v5271_v3 }
 0x2f9   :  { %2293 = vmatpush1.bf16.msra.mxu0 %v5365_v52 }
 0x2fa   :  { %2398 = vmatpush1.bf16.msra.mxu1 %v5278_v6  ;;  %2294 = vmatprep.subr.bf16.mxu0 %v5369_v53 }
 0x2fb   :  { %2399 = vmatprep.subr.bf16.mxu1 %v5282_v34 }
 0x2fd   :  { %2295 = vmatpush1.bf16.msra.mxu0 %v6647_v60 }
 0x2fe   :  { %2400 = vmatpush1.bf16.msra.mxu1 %v5286_v7  ;;  %2296 = vmatprep.subr.bf16.mxu0 %v6648_v23 }
 0x2ff   :  { %v1489_v22 = vpop.f32.mrb[40].mxu1  ;;  %2401 = vmatprep.subr.bf16.mxu1 %v5290_v8  ;;  %v1546_v33 = vpop.f32.mrb[44].mxu0  ;;  %v6652_v8 = vld [vmem:[#allocation25_spill] sm:$0xff] }
 0x300   :  { %v1496_v3 = vmax.f32 %v5656_v20, %v1489_v22  ;;  %v1491_v49 = vpop.f32.mrb[41].mxu1  ;;  %v1548_v54 = vpop.f32.mrb[45].mxu0  ;;  %v6653_v20 = vld [vmem:[#allocation26_spill] sm:$0xff]  ;;  %v6659_v22 = vld [vmem:[#allocation32_spill] sm:$0xff] }
 0x301   :  { %v1497_v36 = vmax.f32 %v1440_v1, %v1491_v49  ;;  %v1493_v6 = vpop.f32.mrb[42].mxu1  ;;  %2297 = vmatpush1.bf16.msra.mxu0 %v6649_v27  ;;  %v1550_v46 = vpop.f32.mrb[46].mxu0  ;;  %v6654_v1 = vld [vmem:[#allocation27_spill] sm:$0xff]  ;;  %v6662_v49 = vld [vmem:[#allocation36_spill] sm:$0xff] }
 0x302   :  { %2402 = vmatpush1.bf16.msra.mxu1 %v5294_v10  ;;  %v1494_v34 = vpop.f32.mrb[43].mxu1  ;;  %2298 = vmatprep.subr.bf16.mxu0 %v6650_v45  ;;  %v1551_v7 = vpop.f32.mrb[47].mxu0  ;;  %v6655_v10 = vld [vmem:[#allocation28_spill] sm:$0xff]  ;;  %v6664_v6 = vld [vmem:[#allocation38_spill] sm:$0xff]  ;;  %v6665_v46 = vld [vmem:[#allocation39_spill] sm:$0xff] }
 0x303   :  { %v5708_v48 = vmax.f32 %v1496_v3, %v1497_v36  ;;  %2403 = vmatprep.subr.bf16.mxu1 %v5298_v12  ;;  %v6660_v3 = vld [vmem:[#allocation33_spill] sm:$0xff]  ;;  %v6666_v34 = vld [vmem:[#allocation40_spill] sm:$0xff] }
 0x304   :  { %v6663_v36 = vld [vmem:[#allocation37_spill] sm:$0xff] }
 0x305   :  { %6651 = vst [vmem:[#allocation22_spill] sm:$0xff] %v5708_v48  ;;  %2299 = vmatpush1.bf16.msra.mxu0 %v6652_v8  ;;  %v6667_v7 = vld [vmem:[#allocation41_spill] sm:$0xff] }
 0x306   :  { %2404 = vmatpush1.bf16.msra.mxu1 %v5302_v13  ;;  %2300 = vmatprep.subr.bf16.mxu0 %v6653_v20 }
 0x307   :  { %2405 = vmatprep.subr.bf16.mxu1 %v5306_v14 }
 0x309   :  { %2301 = vmatpush1.bf16.msra.mxu0 %v6654_v1 }
 0x30a   :  { %2406 = vmatpush1.bf16.msra.mxu1 %v5310_v15  ;;  %2311 = vmatprep.subr.bf16.mxu0 %v6655_v10 }
 0x30b   :  { %2407 = vmatprep.subr.bf16.mxu1 %v5314_v16 }
 0x30c   :  { %2303 = vmatmul.mubr.bf16.vlgmr.msra.gmra.mrb[52].mxu0 %v5352_v50  ;;  %v6661_v50 = vld [vmem:[#allocation34_spill] sm:$0xff] }
 0x30d   :  { %2312 = vmatpush1.bf16.msra.mxu0 %v6656_v39  ;;  %2343 = vmatprep.mubr.bf16.mxu0 %v5683_v4 }
 0x30e   :  { %2408 = vmatpush1.bf16.msra.mxu1 %v5318_v19  ;;  %2313 = vmatprep.subr.bf16.mxu0 %v6657_v40 }
 0x30f   :  { %2409 = vmatprep.subr.bf16.mxu1 %v5322_v24  ;;  %v6672_v24 = vld [vmem:[#allocation44_spill] sm:$0xff] }
 0x311   :  { %2314 = vmatpush1.bf16.msra.mxu0 %v6658_v0 }
 0x312   :  { %2410 = vmatpush1.bf16.msra.mxu1 %v5328_v25  ;;  %2315 = vmatprep.subr.bf16.mxu0 %v6659_v22 }
 0x313   :  { %2411 = vmatprep.subr.bf16.mxu1 %v5333_v29  ;;  %v6669_v29 = vld [vmem:[#allocation43_spill] sm:$0xff] }
 0x315   :  { %2316 = vmatpush1.bf16.msra.mxu0 %v6660_v3 }
 0x316   :  { %2412 = vmatpush1.bf16.msra.mxu1 %v5344_v43  ;;  %2317 = vmatprep.subr.bf16.mxu0 %v6661_v50  ;;  %v6668_v43 = vld [vmem:[#allocation42_spill] sm:$0xff] }
 0x317   :  { %2413 = vmatprep.subr.bf16.mxu1 %v5348_v47 }
 0x319   :  { %2318 = vmatpush1.bf16.msra.mxu0 %v6662_v49 }
 0x31a   :  { %2414 = vmatpush1.bf16.msra.mxu1 %v5356_v26  ;;  %2319 = vmatprep.subr.bf16.mxu0 %v6663_v36 }
 0x31b   :  { %2415 = vmatprep.subr.bf16.mxu1 %v5360_v51 }
 0x31d   :  { %2320 = vmatpush1.bf16.msra.mxu0 %v6664_v6 }
 0x31e   :  { %2416 = vmatpush1.bf16.msra.mxu1 %v5365_v52  ;;  %2321 = vmatprep.subr.bf16.mxu0 %v6665_v46 }
 0x31f   :  { %2417 = vmatprep.subr.bf16.mxu1 %v5369_v53 }
 0x321   :  { %2322 = vmatpush1.bf16.msra.mxu0 %v6666_v34 }
 0x322   :  { %2418 = vmatpush1.bf16.msra.mxu1 %v6647_v60  ;;  %2323 = vmatprep.subr.bf16.mxu0 %v6667_v7  ;;  %v6671_v60 = vld [vmem:[#allocation35_spill] sm:$0xff] }
 0x323   :  { %v1599_v48 = vpop.f32.mrb[44].mxu1  ;;  %2419 = vmatprep.subr.bf16.mxu1 %v6648_v23  ;;  %v1060_v25 = vadd.f32 %v5232_v57, %v6671_v60  ;;  %v6676_v57 = vld [vmem:[#allocation48_spill] sm:$0xff]  ;;  %v6680_v60 = vmov 0  }
 0x324   :  { %v1606_v41 = vmax.f32 %v1546_v33, %v1599_v48  ;;  %v1601_v26 = vpop.f32.mrb[45].mxu1  ;;  %v6674_v33 = vld [vmem:[#allocation46_spill] sm:$0xff]  ;;  %v6682_v48 = vld [vmem:[#allocation60_spill] sm:$0xff] }
 0x325   :  { %v1607_v51 = vmax.f32 %v1548_v54, %v1601_v26  ;;  %v1603_v47 = vpop.f32.mrb[46].mxu1  ;;  %2324 = vmatpush1.bf16.msra.mxu0 %v6668_v43  ;;  %v6673_v26 = vld [vmem:[#allocation45_spill] sm:$0xff]  ;;  %v6681_v54 = vld [vmem:[#allocation59_spill] sm:$0xff] }
 0x326   :  { %2420 = vmatpush1.bf16.msra.mxu1 %v6649_v27  ;;  %v1604_v52 = vpop.f32.mrb[47].mxu1  ;;  %2325 = vmatprep.subr.bf16.mxu0 %v6669_v29  ;;  %v1061_v47 = vmax.f32 %v1060_v25, 0.0  ;;  %v6678_v25 = vld [vmem:[#allocation57_spill] sm:$0xff] }
 0x327   :  { %v5748_v53 = vmax.f32 %v1606_v41, %v1607_v51  ;;  %2421 = vmatprep.subr.bf16.mxu1 %v6650_v45  ;;  %v6675_v51 = vld [vmem:[#allocation47_spill] sm:$0xff]  ;;  %v6677_v41 = vld [vmem:[#allocation49_spill] sm:$0xff] }
 0x328   :  { %v5761_v52 = vpack.c.bf16 %v1061_v47, %v1061_v47  ;;  %v6683_v47 = vld [vmem:[#allocation61_spill] sm:$0xff] }
 0x329   :  { %6670 = vst [vmem:[#allocation23_spill] sm:$0xff] %v5748_v53  ;;  %2326 = vmatpush1.bf16.msra.mxu0 %v6672_v24  ;;  %v6684_v53 = vld [vmem:[#allocation62_spill] sm:$0xff] }
 0x32a   :  { %2422 = vmatpush1.bf16.msra.mxu1 %v6652_v8  ;;  %2327 = vmatprep.subr.bf16.mxu0 %v6673_v26 }
 0x32b   :  { %2423 = vmatprep.subr.bf16.mxu1 %v6653_v20 }
 0x32d   :  { %2328 = vmatpush1.bf16.msra.mxu0 %v6674_v33 }
 0x32e   :  { %2424 = vmatpush1.bf16.msra.mxu1 %v6654_v1  ;;  %2329 = vmatprep.subr.bf16.mxu0 %v6675_v51 }
 0x32f   :  { %2434 = vmatprep.subr.bf16.mxu1 %v6655_v10 }
 0x331   :  { %2426 = vmatmul.mubr.bf16.vlgmr.msra.gmra.mrb[52].mxu1 %v5415_v11  ;;  %2330 = vmatpush1.bf16.msra.mxu0 %v6676_v57  ;;  %v6679_v11 = vld [vmem:[#allocation58_spill] sm:$0xff] }
 0x332   :  { %2435 = vmatpush1.bf16.msra.mxu1 %v6656_v39  ;;  %2466 = vmatprep.mubr.bf16.mxu1 %v5761_v52 }
 0x333   :  { %2331 = vmatprep.subr.bf16.mxu0 %v6677_v41  ;;  %2436 = vmatprep.subr.bf16.mxu1 %v6657_v40 }
 0x335   :  { %2332 = vmatpush1.bf16.msra.mxu0 %v5504_v38 }
 0x336   :  { %2437 = vmatpush1.bf16.msra.mxu1 %v6658_v0  ;;  %2333 = vmatprep.subr.bf16.mxu0 %v5508_v28 }
 0x337   :  { %2438 = vmatprep.subr.bf16.mxu1 %v6659_v22 }
 0x339   :  { %2334 = vmatpush1.bf16.msra.mxu0 %v5519_v5 }
 0x33a   :  { %2439 = vmatpush1.bf16.msra.mxu1 %v6660_v3  ;;  %2335 = vmatprep.subr.bf16.mxu0 %v5523_v9 }
 0x33b   :  { %2440 = vmatprep.subr.bf16.mxu1 %v6661_v50 }
 0x33d   :  { %2336 = vmatpush1.bf16.msra.mxu0 %v5529_v59 }
 0x33e   :  { %2441 = vmatpush1.bf16.msra.mxu1 %v6662_v49  ;;  %2337 = vmatprep.subr.bf16.mxu0 %v5533_v58 }
 0x33f   :  { %2442 = vmatprep.subr.bf16.mxu1 %v6663_v36 }
 0x341   :  { %2338 = vmatpush1.bf16.msra.mxu0 %v5537_v56 }
 0x342   :  { %2443 = vmatpush1.bf16.msra.mxu1 %v6664_v6  ;;  %2339 = vmatprep.subr.bf16.mxu0 %v5541_v55 }
 0x343   :  { %2444 = vmatprep.subr.bf16.mxu1 %v6665_v46 }
 0x345   :  { %2340 = vmatpush1.bf16.msra.mxu0 %v5545_v61 }
 0x346   :  { %2445 = vmatpush1.bf16.msra.mxu1 %v6666_v34  ;;  %2341 = vmatprep.subr.bf16.mxu0 %v5549_v32 }
 0x347   :  { %2446 = vmatprep.subr.bf16.mxu1 %v6667_v7 }
 0x349   :  { %2342 = vmatpush1.bf16.msra.mxu0 %v5553_v37 }
 0x34a   :  { %2447 = vmatpush1.bf16.msra.mxu1 %v6668_v43  ;;  %2352 = vmatprep.subr.bf16.mxu0 %v6678_v25 }
 0x34b   :  { %2448 = vmatprep.subr.bf16.mxu1 %v6669_v29 }
 0x34c   :  { %2344 = vmatmul.mubr.bf16.vlgmr.msra.gmra.mrb[52].mxu0 %v5500_v44 }
 0x34d   :  { %2353 = vmatpush1.bf16.msra.mxu0 %v6679_v11  ;;  %2384 = vmatprep.mubr.bf16.mxu0 %v6680_v60 }
 0x34e   :  { %2449 = vmatpush1.bf16.msra.mxu1 %v6672_v24  ;;  %2354 = vmatprep.subr.bf16.mxu0 %v6681_v54 }
 0x34f   :  { %2450 = vmatprep.subr.bf16.mxu1 %v6673_v26 }
 0x351   :  { %2355 = vmatpush1.bf16.msra.mxu0 %v6682_v48 }
 0x352   :  { %2451 = vmatpush1.bf16.msra.mxu1 %v6674_v33  ;;  %2356 = vmatprep.subr.bf16.mxu0 %v6683_v47 }
 0x353   :  { %2452 = vmatprep.subr.bf16.mxu1 %v6675_v51 }
 0x355   :  { %2357 = vmatpush1.bf16.msra.mxu0 %v6684_v53 }
 0x356   :  { %2453 = vmatpush1.bf16.msra.mxu1 %v6676_v57  ;;  %2358 = vmatprep.subr.bf16.mxu0 %v5583_v2 }
 0x357   :  { %2454 = vmatprep.subr.bf16.mxu1 %v6677_v41 }
 0x359   :  { %2359 = vmatpush1.bf16.msra.mxu0 %v5587_v62 }
 0x35a   :  { %2455 = vmatpush1.bf16.msra.mxu1 %v5504_v38  ;;  %2360 = vmatprep.subr.bf16.mxu0 %v5591_v35 }
 0x35b   :  { %2456 = vmatprep.subr.bf16.mxu1 %v5508_v28 }
 0x35d   :  { %2361 = vmatpush1.bf16.msra.mxu0 %v5601_v42 }
 0x35e   :  { %2457 = vmatpush1.bf16.msra.mxu1 %v5519_v5  ;;  %2362 = vmatprep.subr.bf16.mxu0 %v5605_v21 }
 0x35f   :  { %2458 = vmatprep.subr.bf16.mxu1 %v5523_v9  ;;  %v5825_v9 = vld [vmem:[#allocation4 + $0x4] ss:$8 sps:$4 sm:$0xff]  }
 0x361   :  { %2363 = vmatpush1.bf16.msra.mxu0 %v5611_v63 }
 0x362   :  { %2459 = vmatpush1.bf16.msra.mxu1 %v5529_v59  ;;  %2364 = vmatprep.subr.bf16.mxu0 %v5615_v30 }
 0x363   :  { %2460 = vmatprep.subr.bf16.mxu1 %v5533_v58  ;;  %v5830_v58 = vld [vmem:[#allocation4] ss:$8 sps:$4 sm:$0xff]  }
 0x365   :  { %2365 = vmatpush1.bf16.msra.mxu0 %v5619_v18 }
 0x366   :  { %2461 = vmatpush1.bf16.msra.mxu1 %v5537_v56  ;;  %2366 = vmatprep.subr.bf16.mxu0 %v5623_v17 }
 0x367   :  { %2462 = vmatprep.subr.bf16.mxu1 %v5541_v55  ;;  %v5835_v55 = vld [vmem:[#allocation4 + $0x14] ss:$8 sps:$4 sm:$0xff]  }
 0x369   :  { %2367 = vmatpush1.bf16.msra.mxu0 %v5627_v31 }
 0x36a   :  { %2463 = vmatpush1.bf16.msra.mxu1 %v5545_v61  ;;  %2522 = vmatprep.subr.bf16.mxu0 %v5825_v9  ;;  %v5840_v61 = vld [vmem:[#allocation4 + $0x10] ss:$8 sps:$4 sm:$0xff]  }
 0x36b   :  { %2464 = vmatprep.subr.bf16.mxu1 %v5549_v32  ;;  %v5844_v32 = vld [vmem:[#allocation4 + $0x24] ss:$8 sps:$4 sm:$0xff]  }
 0x36c   :  { %2385 = vmatmul.mubr.bf16.vlgmr.msra.gmra.mrb[52].mxu0 %v5761_v52 }
 0x36d   :  { %2523 = vmatpush1.bf16.msra.mxu0 %v5830_v58  ;;  %2554 = vmatprep.mubr.bf16.mxu0 %v5683_v4 }
 0x36e   :  { %2465 = vmatpush1.bf16.msra.mxu1 %v5553_v37  ;;  %2524 = vmatprep.subr.bf16.mxu0 %v5835_v55  ;;  %v5849_v37 = vld [vmem:[#allocation4 + $0x20] ss:$8 sps:$4 sm:$0xff]  }
 0x36f   :  { %2475 = vmatprep.subr.bf16.mxu1 %v6678_v25  ;;  %v5853_v25 = vld [vmem:[#allocation4 + $0x34] ss:$8 sps:$4 sm:$0xff]  }
 0x371   :  { %2467 = vmatmul.mubr.bf16.vlgmr.msra.gmra.mrb[52].mxu1 %v5683_v4  ;;  %2525 = vmatpush1.bf16.msra.mxu0 %v5840_v61 }
 0x372   :  { %2476 = vmatpush1.bf16.msra.mxu1 %v6679_v11  ;;  %2526 = vmatprep.subr.bf16.mxu0 %v5844_v32  ;;  %v5857_v11 = vld [vmem:[#allocation4 + $0x30] ss:$8 sps:$4 sm:$0xff]  }
 0x373   :  { %2477 = vmatprep.subr.bf16.mxu1 %v6681_v54  ;;  %2507 = vmatprep.mubr.bf16.mxu1 %v6680_v60  ;;  %v5861_v54 = vld [vmem:[#allocation4 + $0x44] ss:$8 sps:$4 sm:$0xff]   ;;  %v5865_v60 = vld [vmem:[#allocation4 + $0x40] ss:$8 sps:$4 sm:$0xff]  }
 0x375   :  { %2527 = vmatpush1.bf16.msra.mxu0 %v5849_v37 }
 0x376   :  { %2478 = vmatpush1.bf16.msra.mxu1 %v6682_v48  ;;  %2528 = vmatprep.subr.bf16.mxu0 %v5853_v25 }
 0x377   :  { %2479 = vmatprep.subr.bf16.mxu1 %v6683_v47 }
 0x379   :  { %2529 = vmatpush1.bf16.msra.mxu0 %v5857_v11 }
 0x37a   :  { %2480 = vmatpush1.bf16.msra.mxu1 %v6684_v53  ;;  %2530 = vmatprep.subr.bf16.mxu0 %v5861_v54 }
 0x37b   :  { %2481 = vmatprep.subr.bf16.mxu1 %v5583_v2 }
 0x37d   :  { %2531 = vmatpush1.bf16.msra.mxu0 %v5865_v60 }
 0x37e   :  { %2482 = vmatpush1.bf16.msra.mxu1 %v5587_v62  ;;  %2532 = vmatprep.subr.bf16.mxu0 %v5298_v12  ;;  %v5881_v12 = vld [vmem:[%s6460_s6] ss:$0 sm:$0xff] }
 0x37f   :  { %2483 = vmatprep.subr.bf16.mxu1 %v5591_v35  ;;  %v6685_v35 = vld [vmem:[#allocation51_spill] sm:$0xff] }
 0x381   :  { %2533 = vmatpush1.bf16.msra.mxu0 %v5302_v13  ;;  %v1170_v13 = vadd.f32 %v5881_v12, %v6685_v35  ;;  %v6690_v35 = vld [vmem:[#allocation16_spill] sm:$0xff] }
 0x382   :  { %2484 = vmatpush1.bf16.msra.mxu1 %v5601_v42  ;;  %2534 = vmatprep.subr.bf16.mxu0 %v5306_v14  ;;  %v6686_v14 = vld [vmem:[#allocation12_spill] sm:$0xff] }
 0x383   :  { %2485 = vmatprep.subr.bf16.mxu1 %v5605_v21 }
 0x385   :  { %2535 = vmatpush1.bf16.msra.mxu0 %v5310_v15  ;;  %v1171_v15 = vmax.f32 %v1170_v13, 0.0  ;;  %v6691_v13 = vld [vmem:[#allocation17_spill] sm:$0xff] }
 0x386   :  { %2486 = vmatpush1.bf16.msra.mxu1 %v5611_v63  ;;  %2536 = vmatprep.subr.bf16.mxu0 %v5314_v16  ;;  %v6687_v16 = vld [vmem:[#allocation13_spill] sm:$0xff]  ;;  %v6688_v63 = vld [vmem:[#allocation14_spill] sm:$0xff] }
 0x387   :  { %2487 = vmatprep.subr.bf16.mxu1 %v5615_v30  ;;  %v5893_v21 = vpack.c.bf16 %v1171_v15, %v1171_v15  ;;  %v6694_v15 = vld [vmem:[#allocation20_spill] sm:$0xff] }
 0x389   :  { %2537 = vmatpush1.bf16.msra.mxu0 %v5318_v19  ;;  %v6689_v19 = vld [vmem:[#allocation15_spill] sm:$0xff] }
 0x38a   :  { %2488 = vmatpush1.bf16.msra.mxu1 %v5619_v18  ;;  %2538 = vmatprep.subr.bf16.mxu0 %v6686_v14  ;;  %v6693_v14 = vld [vmem:[#allocation19_spill] sm:$0xff] }
 0x38b   :  { %2489 = vmatprep.subr.bf16.mxu1 %v5623_v17 }
 0x38d   :  { %2539 = vmatpush1.bf16.msra.mxu0 %v6687_v16  ;;  %v6695_v16 = vld [vmem:[#allocation21_spill] sm:$0xff] }
 0x38e   :  { %2490 = vmatpush1.bf16.msra.mxu1 %v5627_v31  ;;  %2540 = vmatprep.subr.bf16.mxu0 %v6688_v63  ;;  %v6692_v63 = vld [vmem:[#allocation18_spill] sm:$0xff] }
 0x38f   :  { %2645 = vmatprep.subr.bf16.mxu1 %v5825_v9 }
 0x391   :  { %2508 = vmatmul.mubr.bf16.vlgmr.msra.gmra.mrb[52].mxu1 %v5893_v21  ;;  %2541 = vmatpush1.bf16.msra.mxu0 %v6689_v19 }
 0x392   :  { %2646 = vmatpush1.bf16.msra.mxu1 %v5830_v58  ;;  %2677 = vmatprep.mubr.bf16.mxu1 %v5761_v52 }
 0x393   :  { %2542 = vmatprep.subr.bf16.mxu0 %v6690_v35  ;;  %2647 = vmatprep.subr.bf16.mxu1 %v5835_v55 }
 0x395   :  { %2543 = vmatpush1.bf16.msra.mxu0 %v6691_v13 }
 0x396   :  { %2648 = vmatpush1.bf16.msra.mxu1 %v5840_v61  ;;  %2544 = vmatprep.subr.bf16.mxu0 %v6692_v63 }
 0x397   :  { %2649 = vmatprep.subr.bf16.mxu1 %v5844_v32 }
 0x399   :  { %2545 = vmatpush1.bf16.msra.mxu0 %v6693_v14  ;;  %v5921_v14 = vld [vmem:[#allocation4 + $0x54] ss:$8 sps:$4 sm:$0xff]  }
 0x39a   :  { %2650 = vmatpush1.bf16.msra.mxu1 %v5849_v37  ;;  %2546 = vmatprep.subr.bf16.mxu0 %v6694_v15  ;;  %v5929_v15 = vld [vmem:[#allocation4 + $0x64] ss:$8 sps:$4 sm:$0xff]  }
 0x39b   :  { %2651 = vmatprep.subr.bf16.mxu1 %v5853_v25 }
 0x39d   :  { %2547 = vmatpush1.bf16.msra.mxu0 %v6695_v16  ;;  %v5979_v16 = vld [vmem:[#allocation4 + $0xc4] ss:$8 sps:$4 sm:$0xff]  }
 0x39e   :  { %2652 = vmatpush1.bf16.msra.mxu1 %v5857_v11  ;;  %2548 = vmatprep.subr.bf16.mxu0 %v6648_v23  ;;  %v5925_v23 = vld [vmem:[#allocation4 + $0x50] ss:$8 sps:$4 sm:$0xff]   ;;  %6702 = vst [vmem:[#allocation30_spill] sm:$0xff] %v5979_v16 }
 0x39f   :  { %v5913_v19 = vpop.f32.mrb[48].mxu0  ;;  %2653 = vmatprep.subr.bf16.mxu1 %v5861_v54 }
 0x3a0   :  { %v5916_v35 = vpop.f32.mrb[49].mxu0 }
 0x3a1   :  { %v2132_v13 = vpop.f32.mrb[50].mxu0  ;;  %2549 = vmatpush1.bf16.msra.mxu0 %v6649_v27  ;;  %v5933_v27 = vld [vmem:[#allocation4 + $0x60] ss:$8 sps:$4 sm:$0xff]  }
 0x3a2   :  { %2654 = vmatpush1.bf16.msra.mxu1 %v5865_v60  ;;  %v2133_v63 = vpop.f32.mrb[51].mxu0  ;;  %2550 = vmatprep.subr.bf16.mxu0 %v6650_v45  ;;  %v5937_v45 = vld [vmem:[#allocation4 + $0x74] ss:$8 sps:$4 sm:$0xff]   ;;  %v5983_v13 = vld [vmem:[#allocation4 + $0xc0] ss:$8 sps:$4 sm:$0xff]  }
 0x3a3   :  { %2655 = vmatprep.subr.bf16.mxu1 %v5921_v14  ;;  %6703 = vst [vmem:[#allocation31_spill] sm:$0xff] %v5983_v13  ;;  %v5987_v63 = vld [vmem:[#allocation4 + $0xd4] ss:$8 sps:$4 sm:$0xff]  }
 0x3a4   :  { %6704 = vst [vmem:[#allocation32_spill] sm:$0xff] %v5987_v63 }
 0x3a5   :  { %2551 = vmatpush1.bf16.msra.mxu0 %v6652_v8  ;;  %v5943_v8 = vld [vmem:[#allocation4 + $0x70] ss:$8 sps:$4 sm:$0xff]  }
 0x3a6   :  { %2656 = vmatpush1.bf16.msra.mxu1 %v5925_v23  ;;  %2552 = vmatprep.subr.bf16.mxu0 %v6653_v20  ;;  %v5947_v20 = vld [vmem:[#allocation4 + $0x84] ss:$8 sps:$4 sm:$0xff]  }
 0x3a7   :  { %2657 = vmatprep.subr.bf16.mxu1 %v5929_v15 }
 0x3a9   :  { %2553 = vmatpush1.bf16.msra.mxu0 %v6654_v1  ;;  %v5951_v1 = vld [vmem:[#allocation4 + $0x80] ss:$8 sps:$4 sm:$0xff]  }
 0x3aa   :  { %2658 = vmatpush1.bf16.msra.mxu1 %v5933_v27  ;;  %2563 = vmatprep.subr.bf16.mxu0 %v6655_v10  ;;  %v5959_v10 = vld [vmem:[#allocation4 + $0x90] ss:$8 sps:$4 sm:$0xff]  }
 0x3ab   :  { %2659 = vmatprep.subr.bf16.mxu1 %v5937_v45  ;;  %6697 = vst [vmem:[#allocation25_spill] sm:$0xff] %v5959_v10 }
 0x3ac   :  { %2555 = vmatmul.mubr.bf16.vlgmr.msra.gmra.mrb[56].mxu0 %v5500_v44  ;;  %v5955_v44 = vld [vmem:[#allocation4 + $0x94] ss:$8 sps:$4 sm:$0xff]  }
 0x3ad   :  { %2564 = vmatpush1.bf16.msra.mxu0 %v6656_v39  ;;  %2595 = vmatprep.mubr.bf16.mxu0 %v5893_v21  ;;  %6696 = vst [vmem:[#allocation24_spill] sm:$0xff] %v5955_v44  ;;  %v5963_v39 = vld [vmem:[#allocation4 + $0xa4] ss:$8 sps:$4 sm:$0xff]  }
 0x3ae   :  { %2660 = vmatpush1.bf16.msra.mxu1 %v5943_v8  ;;  %2565 = vmatprep.subr.bf16.mxu0 %v6657_v40  ;;  %6698 = vst [vmem:[#allocation26_spill] sm:$0xff] %v5963_v39  ;;  %v5967_v40 = vld [vmem:[#allocation4 + $0xa0] ss:$8 sps:$4 sm:$0xff]  }
 0x3af   :  { %2661 = vmatprep.subr.bf16.mxu1 %v5947_v20  ;;  %6699 = vst [vmem:[#allocation27_spill] sm:$0xff] %v5967_v40 }
 0x3b1   :  { %2566 = vmatpush1.bf16.msra.mxu0 %v6658_v0  ;;  %v5971_v0 = vld [vmem:[#allocation4 + $0xb4] ss:$8 sps:$4 sm:$0xff]  }
 0x3b2   :  { %2662 = vmatpush1.bf16.msra.mxu1 %v5951_v1  ;;  %2567 = vmatprep.subr.bf16.mxu0 %v6659_v22  ;;  %6700 = vst [vmem:[#allocation28_spill] sm:$0xff] %v5971_v0  ;;  %v5975_v22 = vld [vmem:[#allocation4 + $0xb0] ss:$8 sps:$4 sm:$0xff]  }
 0x3b3   :  { %2663 = vmatprep.subr.bf16.mxu1 %v5955_v44  ;;  %6701 = vst [vmem:[#allocation29_spill] sm:$0xff] %v5975_v22  ;;  %v5997_v44 = vld [vmem:[#allocation4 + $0xe4] ss:$8 sps:$4 sm:$0xff]  }
 0x3b5   :  { %2568 = vmatpush1.bf16.msra.mxu0 %v6660_v3 }
 0x3b6   :  { %2664 = vmatpush1.bf16.msra.mxu1 %v5959_v10  ;;  %2569 = vmatprep.subr.bf16.mxu0 %v6661_v50  ;;  %v5993_v10 = vld [vmem:[#allocation4 + $0xd0] ss:$8 sps:$4 sm:$0xff]  }
 0x3b7   :  { %2665 = vmatprep.subr.bf16.mxu1 %v5963_v39 }
 0x3b9   :  { %2570 = vmatpush1.bf16.msra.mxu0 %v6662_v49 }
 0x3ba   :  { %2666 = vmatpush1.bf16.msra.mxu1 %v5967_v40  ;;  %2571 = vmatprep.subr.bf16.mxu0 %v6663_v36 }
 0x3bb   :  { %2667 = vmatprep.subr.bf16.mxu1 %v5971_v0 }
 0x3bd   :  { %2572 = vmatpush1.bf16.msra.mxu0 %v6664_v6 }
 0x3be   :  { %2668 = vmatpush1.bf16.msra.mxu1 %v5975_v22  ;;  %2573 = vmatprep.subr.bf16.mxu0 %v6665_v46 }
 0x3bf   :  { %2669 = vmatprep.subr.bf16.mxu1 %v5979_v16 }
 0x3c1   :  { %2574 = vmatpush1.bf16.msra.mxu0 %v6666_v34 }
 0x3c2   :  { %2670 = vmatpush1.bf16.msra.mxu1 %v5983_v13  ;;  %2575 = vmatprep.subr.bf16.mxu0 %v6667_v7 }
 0x3c3   :  { %2671 = vmatprep.subr.bf16.mxu1 %v5987_v63  ;;  %v6705_v63 = vld [vmem:[#allocation65_spill] sm:$0xff] }
 0x3c4   :  { %v2251_v0 = vpop.f32.mrb[48].mxu1 }
 0x3c5   :  { %v2258_v22 = vmax.f32 %v5913_v19, %v2251_v0  ;;  %v2253_v40 = vpop.f32.mrb[49].mxu1  ;;  %2576 = vmatpush1.bf16.msra.mxu0 %v6668_v43  ;;  %v1278_v19 = vadd.f32 %v5881_v12, %v6705_v63  ;;  %v6024_v63 = vld [vmem:[#allocation4 + $0x100] ss:$8 sps:$4 sm:$0xff]  }
 0x3c6   :  { %v2259_v16 = vmax.f32 %v5916_v35, %v2253_v40  ;;  %v2255_v39 = vpop.f32.mrb[50].mxu1  ;;  %2672 = vmatpush1.bf16.msra.mxu1 %v5993_v10  ;;  %2577 = vmatprep.subr.bf16.mxu0 %v6669_v29  ;;  %v6005_v35 = vld [vmem:[#allocation4 + $0xe0] ss:$8 sps:$4 sm:$0xff]  }
 0x3c7   :  { %v2256_v13 = vpop.f32.mrb[51].mxu1  ;;  %2673 = vmatprep.subr.bf16.mxu1 %v5997_v44  ;;  %v6009_v39 = vld [vmem:[#allocation4 + $0xf4] ss:$8 sps:$4 sm:$0xff]   ;;  %v1279_v40 = vmax.f32 %v1278_v19, 0.0 }
 0x3c8   :  { %v6002_v0 = vmax.f32 %v2258_v22, %v2259_v16  ;;  %v6013_v13 = vld [vmem:[#allocation4 + $0xf0] ss:$8 sps:$4 sm:$0xff]   ;;  %v6017_v22 = vld [vmem:[#allocation4 + $0x104] ss:$8 sps:$4 sm:$0xff]   ;;  %v6029_v19 = vld [vmem:[#allocation4 + $0x114] ss:$8 sps:$4 sm:$0xff]  }
 0x3c9   :  { %2578 = vmatpush1.bf16.msra.mxu0 %v6672_v24  ;;  %v6020_v16 = vpack.c.bf16 %v1279_v40, %v1279_v40  ;;  %6707 = vst [vmem:[#allocation34_spill] sm:$0xff] %v6029_v19  ;;  %v6033_v40 = vld [vmem:[#allocation4 + $0x110] ss:$8 sps:$4 sm:$0xff]  }
 0x3ca   :  { %6706 = vst [vmem:[#allocation33_spill] sm:$0xff] %v6002_v0  ;;  %2674 = vmatpush1.bf16.msra.mxu1 %v6005_v35  ;;  %2579 = vmatprep.subr.bf16.mxu0 %v6673_v26  ;;  %v6709_v0 = vld [vmem:[#allocation50_spill] sm:$0xff] }
 0x3cb   :  { %2675 = vmatprep.subr.bf16.mxu1 %v6009_v39 }
 0x3cd   :  { %2580 = vmatpush1.bf16.msra.mxu0 %v6674_v33 }
 0x3ce   :  { %2676 = vmatpush1.bf16.msra.mxu1 %v6013_v13  ;;  %2581 = vmatprep.subr.bf16.mxu0 %v6675_v51 }
 0x3cf   :  { %2686 = vmatprep.subr.bf16.mxu1 %v6017_v22 }
 0x3d1   :  { %2678 = vmatmul.mubr.bf16.vlgmr.msra.gmra.mrb[56].mxu1 %v5683_v4  ;;  %2582 = vmatpush1.bf16.msra.mxu0 %v6676_v57  ;;  %v6037_v4 = vld [vmem:[#allocation4 + $0x124] ss:$8 sps:$4 sm:$0xff]  }
 0x3d2   :  { %2687 = vmatpush1.bf16.msra.mxu1 %v6024_v63  ;;  %2718 = vmatprep.mubr.bf16.mxu1 %v6020_v16  ;;  %6708 = vst [vmem:[#allocation36_spill] sm:$0xff] %v6037_v4 }
 0x3d3   :  { %2583 = vmatprep.subr.bf16.mxu0 %v6677_v41  ;;  %2688 = vmatprep.subr.bf16.mxu1 %v6029_v19  ;;  %v6710_v19 = vld [vmem:[#allocation52_spill] sm:$0xff] }
 0x3d5   :  { %2584 = vmatpush1.bf16.msra.mxu0 %v5504_v38 }
 0x3d6   :  { %2689 = vmatpush1.bf16.msra.mxu1 %v6033_v40  ;;  %2585 = vmatprep.subr.bf16.mxu0 %v5508_v28 }
 0x3d7   :  { %2690 = vmatprep.subr.bf16.mxu1 %v6037_v4  ;;  %v6711_v4 = vld [vmem:[#allocation53_spill] sm:$0xff] }
 0x3d9   :  { %2586 = vmatpush1.bf16.msra.mxu0 %v5519_v5 }
 0x3da   :  { %2691 = vmatpush1.bf16.msra.mxu1 %v6660_v3  ;;  %2587 = vmatprep.subr.bf16.mxu0 %v6709_v0  ;;  %v6712_v3 = vld [vmem:[#allocation54_spill] sm:$0xff] }
 0x3db   :  { %2692 = vmatprep.subr.bf16.mxu1 %v6661_v50  ;;  %v6713_v50 = vld [vmem:[#allocation55_spill] sm:$0xff] }
 0x3dd   :  { %2588 = vmatpush1.bf16.msra.mxu0 %v5529_v59 }
 0x3de   :  { %2693 = vmatpush1.bf16.msra.mxu1 %v6662_v49  ;;  %2589 = vmatprep.subr.bf16.mxu0 %v6710_v19  ;;  %v6714_v49 = vld [vmem:[#allocation56_spill] sm:$0xff] }
 0x3df   :  { %2694 = vmatprep.subr.bf16.mxu1 %v6663_v36  ;;  %v6715_v36 = vld [vmem:[#allocation57_spill] sm:$0xff] }
 0x3e1   :  { %2590 = vmatpush1.bf16.msra.mxu0 %v5537_v56 }
 0x3e2   :  { %2695 = vmatpush1.bf16.msra.mxu1 %v6664_v6  ;;  %2591 = vmatprep.subr.bf16.mxu0 %v6711_v4  ;;  %v6716_v6 = vld [vmem:[#allocation58_spill] sm:$0xff] }
 0x3e3   :  { %2696 = vmatprep.subr.bf16.mxu1 %v6665_v46  ;;  %v6717_v46 = vmov 0  }
 0x3e5   :  { %2592 = vmatpush1.bf16.msra.mxu0 %v6712_v3 }
 0x3e6   :  { %2697 = vmatpush1.bf16.msra.mxu1 %v6666_v34  ;;  %2593 = vmatprep.subr.bf16.mxu0 %v6713_v50  ;;  %v6718_v34 = vld [vmem:[#allocation59_spill] sm:$0xff] }
 0x3e7   :  { %2698 = vmatprep.subr.bf16.mxu1 %v6667_v7  ;;  %v6182_v7 = vld [vmem:[#allocation4 + $0x120] ss:$8 sps:$4 sm:$0xff]  }
 0x3e9   :  { %2594 = vmatpush1.bf16.msra.mxu0 %v6714_v49 }
 0x3ea   :  { %2699 = vmatpush1.bf16.msra.mxu1 %v6668_v43  ;;  %2604 = vmatprep.subr.bf16.mxu0 %v6715_v36  ;;  %v6721_v43 = vld [vmem:[#allocation66_spill] sm:$0xff] }
 0x3eb   :  { %2700 = vmatprep.subr.bf16.mxu1 %v6669_v29  ;;  %v6720_v29 = vld [vmem:[#allocation64_spill] sm:$0xff] }
 0x3ec   :  { %2596 = vmatmul.mubr.bf16.vlgmr.msra.gmra.mrb[56].mxu0 %v5761_v52 }
 0x3ed   :  { %2605 = vmatpush1.bf16.msra.mxu0 %v6716_v6  ;;  %2636 = vmatprep.mubr.bf16.mxu0 %v6717_v46 }
 0x3ee   :  { %2701 = vmatpush1.bf16.msra.mxu1 %v6672_v24  ;;  %2606 = vmatprep.subr.bf16.mxu0 %v6718_v34  ;;  %v6719_v24 = vld [vmem:[#allocation63_spill] sm:$0xff] }
 0x3ef   :  { %2702 = vmatprep.subr.bf16.mxu1 %v6673_v26  ;;  %v6186_v26 = vld [vmem:[#allocation4 + $0x134] ss:$8 sps:$4 sm:$0xff]  }
 0x3f1   :  { %2607 = vmatpush1.bf16.msra.mxu0 %v6682_v48 }
 0x3f2   :  { %2703 = vmatpush1.bf16.msra.mxu1 %v6674_v33  ;;  %2608 = vmatprep.subr.bf16.mxu0 %v6683_v47  ;;  %v6190_v33 = vld [vmem:[#allocation4 + $0x130] ss:$8 sps:$4 sm:$0xff]  }
 0x3f3   :  { %2704 = vmatprep.subr.bf16.mxu1 %v6675_v51  ;;  %v6194_v51 = vld [vmem:[#allocation4 + $0x144] ss:$8 sps:$4 sm:$0xff]  }
 0x3f5   :  { %2609 = vmatpush1.bf16.msra.mxu0 %v6684_v53 }
 0x3f6   :  { %2705 = vmatpush1.bf16.msra.mxu1 %v6676_v57  ;;  %2610 = vmatprep.subr.bf16.mxu0 %v5583_v2  ;;  %v6202_v57 = vld [vmem:[#allocation4 + $0x154] ss:$8 sps:$4 sm:$0xff]  }
 0x3f7   :  { %2706 = vmatprep.subr.bf16.mxu1 %v6677_v41  ;;  %v6206_v41 = vld [vmem:[#allocation4 + $0x150] ss:$8 sps:$4 sm:$0xff]  }
 0x3f9   :  { %2611 = vmatpush1.bf16.msra.mxu0 %v5587_v62 }
 0x3fa   :  { %2707 = vmatpush1.bf16.msra.mxu1 %v5504_v38  ;;  %2612 = vmatprep.subr.bf16.mxu0 %v6719_v24 }
 0x3fb   :  { %2708 = vmatprep.subr.bf16.mxu1 %v5508_v28  ;;  %v6725_v28 = vld [vmem:[#allocation26_spill] sm:$0xff] }
 0x3fd   :  { %2613 = vmatpush1.bf16.msra.mxu0 %v5601_v42 }
 0x3fe   :  { %2709 = vmatpush1.bf16.msra.mxu1 %v5519_v5  ;;  %2614 = vmatprep.subr.bf16.mxu0 %v6720_v29 }
 0x3ff   :  { %2710 = vmatprep.subr.bf16.mxu1 %v6709_v0 }
 0x401   :  { %2615 = vmatpush1.bf16.msra.mxu0 %v6721_v43 }
 0x402   :  { %2711 = vmatpush1.bf16.msra.mxu1 %v5529_v59  ;;  %2616 = vmatprep.subr.bf16.mxu0 %v5615_v30  ;;  %v6726_v59 = vld [vmem:[#allocation27_spill] sm:$0xff] }
 0x403   :  { %2712 = vmatprep.subr.bf16.mxu1 %v6710_v19  ;;  %v4262_v19 = vld [vmem:[#allocation4 + $0x194] ss:$8 sps:$4 sm:$0xff]  }
 0x405   :  { %2617 = vmatpush1.bf16.msra.mxu0 %v5619_v18 }
 0x406   :  { %2713 = vmatpush1.bf16.msra.mxu1 %v5537_v56  ;;  %2618 = vmatprep.subr.bf16.mxu0 %v5623_v17  ;;  %v6727_v56 = vld [vmem:[#allocation28_spill] sm:$0xff] }
 0x407   :  { %2714 = vmatprep.subr.bf16.mxu1 %v6711_v4  ;;  %v4263_v4 = vld [vmem:[#allocation4 + $0x190] ss:$8 sps:$4 sm:$0xff]  }
 0x409   :  { %2619 = vmatpush1.bf16.msra.mxu0 %v5627_v31 }
 0x40a   :  { %2715 = vmatpush1.bf16.msra.mxu1 %v6712_v3  ;;  %2774 = vmatprep.subr.bf16.mxu0 %v5825_v9  ;;  %v4270_v3 = vld [vmem:[#allocation4 + $0x1d4] ss:$8 sps:$4 sm:$0xff]  }
 0x40b   :  { %2716 = vmatprep.subr.bf16.mxu1 %v6713_v50  ;;  %v4272_v50 = vld [vmem:[#allocation4 + $0x1e4] ss:$8 sps:$4 sm:$0xff]  }
 0x40c   :  { %2637 = vmatmul.mubr.bf16.vlgmr.msra.gmra.mrb[56].mxu0 %v6020_v16 }
 0x40d   :  { %2775 = vmatpush1.bf16.msra.mxu0 %v5830_v58  ;;  %2806 = vmatprep.mubr.bf16.mxu0 %v5893_v21 }
 0x40e   :  { %2717 = vmatpush1.bf16.msra.mxu1 %v6714_v49  ;;  %2776 = vmatprep.subr.bf16.mxu0 %v5835_v55  ;;  %v4273_v49 = vld [vmem:[#allocation4 + $0x1e0] ss:$8 sps:$4 sm:$0xff]  }
 0x40f   :  { %2727 = vmatprep.subr.bf16.mxu1 %v6715_v36  ;;  %v4274_v36 = vld [vmem:[#allocation4 + $0x1f4] ss:$8 sps:$4 sm:$0xff]  }
 0x411   :  { %2719 = vmatmul.mubr.bf16.vlgmr.msra.gmra.mrb[56].mxu1 %v5893_v21  ;;  %2777 = vmatpush1.bf16.msra.mxu0 %v5840_v61 }
 0x412   :  { %2728 = vmatpush1.bf16.msra.mxu1 %v6716_v6  ;;  %2778 = vmatprep.subr.bf16.mxu0 %v5844_v32  ;;  %v6245_v6 = vld [vmem:[#allocation4 + $0x1f0] ss:$8 sps:$4 sm:$0xff]  }
 0x413   :  { %2729 = vmatprep.subr.bf16.mxu1 %v6718_v34  ;;  %2759 = vmatprep.mubr.bf16.mxu1 %v6717_v46  ;;  %v6249_v34 = vld [vmem:[#allocation4 + $0x204] ss:$8 sps:$4 sm:$0xff]  }
 0x415   :  { %2779 = vmatpush1.bf16.msra.mxu0 %v5849_v37 }
 0x416   :  { %2730 = vmatpush1.bf16.msra.mxu1 %v6682_v48  ;;  %2780 = vmatprep.subr.bf16.mxu0 %v5853_v25  ;;  %v6215_v48 = vld [vmem:[#allocation4 + $0x160] ss:$8 sps:$4 sm:$0xff]  }
 0x417   :  { %2731 = vmatprep.subr.bf16.mxu1 %v6683_v47 }
 0x419   :  { %2781 = vmatpush1.bf16.msra.mxu0 %v5857_v11 }
 0x41a   :  { %2732 = vmatpush1.bf16.msra.mxu1 %v6684_v53  ;;  %2782 = vmatprep.subr.bf16.mxu0 %v5861_v54  ;;  %v6722_v53 = vld [vmem:[#allocation67_spill] sm:$0xff] }
 0x41b   :  { %2733 = vmatprep.subr.bf16.mxu1 %v5583_v2  ;;  %v1391_v5 = vadd.f32 %v5881_v12, %v6722_v53  ;;  %v6263_v53 = vld [vmem:[#allocation4 + $0x224] ss:$8 sps:$4 sm:$0xff]  }
 0x41d   :  { %2783 = vmatpush1.bf16.msra.mxu0 %v5865_v60  ;;  %v1392_v38 = vmax.f32 %v1391_v5, 0.0  ;;  %v6269_v5 = vld [vmem:[#allocation4 + $0x234] ss:$8 sps:$4 sm:$0xff]  }
 0x41e   :  { %2734 = vmatpush1.bf16.msra.mxu1 %v5587_v62  ;;  %2784 = vmatprep.subr.bf16.mxu0 %v5921_v14  ;;  %v6723_v62 = vld [vmem:[#allocation24_spill] sm:$0xff] }
 0x41f   :  { %2735 = vmatprep.subr.bf16.mxu1 %v6719_v24  ;;  %v6135_v2 = vpack.c.bf16 %v1392_v38, %v1392_v38  ;;  %v6253_v24 = vld [vmem:[#allocation4 + $0x200] ss:$8 sps:$4 sm:$0xff]   ;;  %v6272_v38 = vld [vmem:[#allocation4 + $0x230] ss:$8 sps:$4 sm:$0xff]  }
 0x421   :  { %2785 = vmatpush1.bf16.msra.mxu0 %v5925_v23 }
 0x422   :  { %2736 = vmatpush1.bf16.msra.mxu1 %v5601_v42  ;;  %2786 = vmatprep.subr.bf16.mxu0 %v5929_v15  ;;  %v6724_v42 = vld [vmem:[#allocation25_spill] sm:$0xff] }
 0x423   :  { %2737 = vmatprep.subr.bf16.mxu1 %v6720_v29  ;;  %v6257_v29 = vld [vmem:[#allocation4 + $0x214] ss:$8 sps:$4 sm:$0xff]  }
 0x425   :  { %2787 = vmatpush1.bf16.msra.mxu0 %v5933_v27 }
 0x426   :  { %2738 = vmatpush1.bf16.msra.mxu1 %v6721_v43  ;;  %2788 = vmatprep.subr.bf16.mxu0 %v5937_v45  ;;  %v6260_v43 = vld [vmem:[#allocation4 + $0x210] ss:$8 sps:$4 sm:$0xff]  }
 0x427   :  { %2739 = vmatprep.subr.bf16.mxu1 %v5615_v30  ;;  %v6729_v30 = vld [vmem:[#allocation30_spill] sm:$0xff] }
 0x429   :  { %2789 = vmatpush1.bf16.msra.mxu0 %v5943_v8 }
 0x42a   :  { %2740 = vmatpush1.bf16.msra.mxu1 %v5619_v18  ;;  %2790 = vmatprep.subr.bf16.mxu0 %v5947_v20 }
 0x42b   :  { %2741 = vmatprep.subr.bf16.mxu1 %v5623_v17  ;;  %v6732_v17 = vld [vmem:[#allocation34_spill] sm:$0xff] }
 0x42d   :  { %2791 = vmatpush1.bf16.msra.mxu0 %v5951_v1 }
 0x42e   :  { %2742 = vmatpush1.bf16.msra.mxu1 %v5627_v31  ;;  %2792 = vmatprep.subr.bf16.mxu0 %v6723_v62  ;;  %v6733_v31 = vld [vmem:[#allocation36_spill] sm:$0xff] }
 0x42f   :  { %2897 = vmatprep.subr.bf16.mxu1 %v5825_v9  ;;  %v6728_v9 = vld [vmem:[#allocation29_spill] sm:$0xff] }
 0x431   :  { %2760 = vmatmul.mubr.bf16.vlgmr.msra.gmra.mrb[56].mxu1 %v6135_v2  ;;  %2793 = vmatpush1.bf16.msra.mxu0 %v6724_v42 }
 0x432   :  { %2898 = vmatpush1.bf16.msra.mxu1 %v5830_v58  ;;  %2929 = vmatprep.mubr.bf16.mxu1 %v6020_v16  ;;  %v6730_v58 = vld [vmem:[#allocation31_spill] sm:$0xff] }
 0x433   :  { %2794 = vmatprep.subr.bf16.mxu0 %v6725_v28  ;;  %2899 = vmatprep.subr.bf16.mxu1 %v5835_v55  ;;  %v6731_v55 = vld [vmem:[#allocation32_spill] sm:$0xff] }
 0x435   :  { %2795 = vmatpush1.bf16.msra.mxu0 %v6726_v59 }
 0x436   :  { %2900 = vmatpush1.bf16.msra.mxu1 %v5840_v61  ;;  %2796 = vmatprep.subr.bf16.mxu0 %v6727_v56 }
 0x437   :  { %2901 = vmatprep.subr.bf16.mxu1 %v5844_v32 }
 0x439   :  { %2797 = vmatpush1.bf16.msra.mxu0 %v6728_v9 }
 0x43a   :  { %2902 = vmatpush1.bf16.msra.mxu1 %v5849_v37  ;;  %2798 = vmatprep.subr.bf16.mxu0 %v6729_v30 }
 0x43b   :  { %2903 = vmatprep.subr.bf16.mxu1 %v5853_v25  ;;  %v6210_v25 = vld [vmem:[#allocation4 + $0x164] ss:$8 sps:$4 sm:$0xff]  }
 0x43d   :  { %2799 = vmatpush1.bf16.msra.mxu0 %v6730_v58 }
 0x43e   :  { %2904 = vmatpush1.bf16.msra.mxu1 %v5857_v11  ;;  %2800 = vmatprep.subr.bf16.mxu0 %v6731_v55 }
 0x43f   :  { %v6155_v18 = vpop.f32.mrb[52].mxu0  ;;  %2905 = vmatprep.subr.bf16.mxu1 %v5861_v54 }
 0x440   :  { %v6158_v61 = vpop.f32.mrb[53].mxu0 }
 0x441   :  { %v2390_v32 = vpop.f32.mrb[54].mxu0  ;;  %2801 = vmatpush1.bf16.msra.mxu0 %v5993_v10 }
 0x442   :  { %2906 = vmatpush1.bf16.msra.mxu1 %v5865_v60  ;;  %v2391_v37 = vpop.f32.mrb[55].mxu0  ;;  %2802 = vmatprep.subr.bf16.mxu0 %v5997_v44  ;;  %v4291_v32 = vld [vmem:[#allocation4 + $0x270] ss:$8 sps:$4 sm:$0xff]  }
 0x443   :  { %2907 = vmatprep.subr.bf16.mxu1 %v5921_v14  ;;  %v4147_v37 = vld [vmem:[%s6457_s3] sm:$0xff]  }
 0x445   :  { %2803 = vmatpush1.bf16.msra.mxu0 %v6005_v35 }
 0x446   :  { %2908 = vmatpush1.bf16.msra.mxu1 %v5925_v23  ;;  %2804 = vmatprep.subr.bf16.mxu0 %v6009_v39  ;;  %v4258_v23 = vld [vmem:[#allocation4 + $0x174] ss:$8 sps:$4 sm:$0xff]  }
 0x447   :  { %2909 = vmatprep.subr.bf16.mxu1 %v5929_v15 }
 0x449   :  { %2805 = vmatpush1.bf16.msra.mxu0 %v6013_v13 }
 0x44a   :  { %2910 = vmatpush1.bf16.msra.mxu1 %v5933_v27  ;;  %2815 = vmatprep.subr.bf16.mxu0 %v6017_v22  ;;  %v6734_v27 = vld [vmem:[#allocation22_spill] sm:$0xff] }
 0x44b   :  { %2911 = vmatprep.subr.bf16.mxu1 %v5937_v45  ;;  %v1499_v45 = vadd.f32 %v5881_v12, %v6734_v27 }
 0x44c   :  { %2807 = vmatmul.mubr.bf16.vlgmr.msra.gmra.mrb[60].mxu0 %v5761_v52  ;;  %v6198_v52 = vld [vmem:[#allocation4 + $0x140] ss:$8 sps:$4 sm:$0xff]  }
 0x44d   :  { %2816 = vmatpush1.bf16.msra.mxu0 %v6024_v63  ;;  %2847 = vmatprep.mubr.bf16.mxu0 %v6135_v2  ;;  %v1500_v0 = vmax.f32 %v1499_v45, 0.0 }
 0x44e   :  { %2912 = vmatpush1.bf16.msra.mxu1 %v5943_v8  ;;  %2817 = vmatprep.subr.bf16.mxu0 %v6732_v17 }
 0x44f   :  { %2913 = vmatprep.subr.bf16.mxu1 %v5947_v20  ;;  %v4259_v20 = vld [vmem:[#allocation4 + $0x170] ss:$8 sps:$4 sm:$0xff]  }
 0x451   :  { %2818 = vmatpush1.bf16.msra.mxu0 %v6033_v40 }
 0x452   :  { %2914 = vmatpush1.bf16.msra.mxu1 %v5951_v1  ;;  %2819 = vmatprep.subr.bf16.mxu0 %v6733_v31  ;;  %v4260_v1 = vld [vmem:[#allocation4 + $0x184] ss:$8 sps:$4 sm:$0xff]  }
 0x453   :  { %2915 = vmatprep.subr.bf16.mxu1 %v6723_v62  ;;  %v6275_v62 = vld [vmem:[#allocation4 + $0x244] ss:$8 sps:$4 sm:$0xff]  }
 0x455   :  { %2820 = vmatpush1.bf16.msra.mxu0 %v6182_v7 }
 0x456   :  { %2916 = vmatpush1.bf16.msra.mxu1 %v6724_v42  ;;  %2821 = vmatprep.subr.bf16.mxu0 %v6186_v26  ;;  %v6278_v42 = vld [vmem:[#allocation4 + $0x240] ss:$8 sps:$4 sm:$0xff]  }
 0x457   :  { %2917 = vmatprep.subr.bf16.mxu1 %v6725_v28  ;;  %v6281_v28 = vld [vmem:[#allocation4 + $0x254] ss:$8 sps:$4 sm:$0xff]  }
 0x459   :  { %2822 = vmatpush1.bf16.msra.mxu0 %v6190_v33 }
 0x45a   :  { %2918 = vmatpush1.bf16.msra.mxu1 %v6726_v59  ;;  %2823 = vmatprep.subr.bf16.mxu0 %v6194_v51  ;;  %v6284_v59 = vld [vmem:[#allocation4 + $0x250] ss:$8 sps:$4 sm:$0xff]  }
 0x45b   :  { %2919 = vmatprep.subr.bf16.mxu1 %v6727_v56  ;;  %v6290_v56 = vld [vmem:[%s6461_s7] ss:$0 sm:$0xff] }
 0x45d   :  { %2824 = vmatpush1.bf16.msra.mxu0 %v6198_v52 }
 0x45e   :  { %2920 = vmatpush1.bf16.msra.mxu1 %v6728_v9  ;;  %2825 = vmatprep.subr.bf16.mxu0 %v6202_v57  ;;  %v6292_v9 = vld [vmem:[#allocation4 + $0x264] ss:$8 sps:$4 sm:$0xff]  }
 0x45f   :  { %2921 = vmatprep.subr.bf16.mxu1 %v6729_v30 }
 0x461   :  { %2826 = vmatpush1.bf16.msra.mxu0 %v6206_v41 }
 0x462   :  { %2922 = vmatpush1.bf16.msra.mxu1 %v6730_v58  ;;  %2827 = vmatprep.subr.bf16.mxu0 %v6210_v25  ;;  %v6297_v58 = vld [vmem:[#allocation4 + $0x260] ss:$8 sps:$4 sm:$0xff]  }
 0x463   :  { %2923 = vmatprep.subr.bf16.mxu1 %v6731_v55  ;;  %v6300_v55 = vld [vmem:[#allocation4 + $0x274] ss:$8 sps:$4 sm:$0xff]  }
 0x464   :  { %v2509_v11 = vpop.f32.mrb[52].mxu1 }
 0x465   :  { %v2516_v60 = vmax.f32 %v6155_v18, %v2509_v11  ;;  %v2511_v54 = vpop.f32.mrb[53].mxu1  ;;  %2828 = vmatpush1.bf16.msra.mxu0 %v6215_v48  ;;  %v4146_v18 = vld [vmem:[%s6457_s3 + $0x40] sm:$0xff]   ;;  %v4159_v11 = vld [vmem:[%s6457_s3 + $0x30] sm:$0xff]  }
 0x466   :  { %v2517_v47 = vmax.f32 %v6158_v61, %v2511_v54  ;;  %v2513_v14 = vpop.f32.mrb[54].mxu1  ;;  %2924 = vmatpush1.bf16.msra.mxu1 %v5993_v10  ;;  %2829 = vmatprep.subr.bf16.mxu0 %v4258_v23  ;;  %v4261_v10 = vld [vmem:[#allocation4 + $0x180] ss:$8 sps:$4 sm:$0xff]  }
 0x467   :  { %v2514_v15 = vpop.f32.mrb[55].mxu1  ;;  %2925 = vmatprep.subr.bf16.mxu1 %v5997_v44  ;;  %v6229_v44 = vpack.c.bf16 %v1500_v0, %v1500_v0 }
 0x468   :  { %v6223_v8 = vmax.f32 %v2516_v60, %v2517_v47  ;;  %v6735_v60 = vld [vmem:[#allocation33_spill] sm:$0xff] }
 0x469   :  { %2830 = vmatpush1.bf16.msra.mxu0 %v4259_v20  ;;  %v2267_v54 = vadd.f32 %v6290_v56, %v6735_v60  ;;  %v4161_v47 = vld [vmem:[%s6457_s3 + $0x38] sm:$0xff]  }
 0x46a   :  { %2926 = vmatpush1.bf16.msra.mxu1 %v6005_v35  ;;  %2831 = vmatprep.subr.bf16.mxu0 %v4260_v1  ;;  %v4264_v35 = vld [vmem:[#allocation4 + $0x1a4] ss:$8 sps:$4 sm:$0xff]   ;;  %v2519_v30 = vadd.f32 %v6290_v56, %v6223_v8 }
 0x46b   :  { %2927 = vmatprep.subr.bf16.mxu1 %v6009_v39  ;;  %v4265_v39 = vld [vmem:[#allocation4 + $0x1a0] ss:$8 sps:$4 sm:$0xff]   ;;  %v2268_v14 = vmax.f32 %v2267_v54, 0.0 }
 0x46c   :  { %v2520_v61 = vmax.f32 %v2519_v30, 0.0  ;;  %v4183_v30 = vld [vmem:[#allocation6 + $0x28] sm:$0xff]  }
 0x46d   :  { %2832 = vmatpush1.bf16.msra.mxu0 %v4261_v10  ;;  %v2269_v27 = vpack.c.bf16 %v2268_v14, %v2268_v14  ;;  %v4185_v14 = vld [vmem:[#allocation6 + $0x38] sm:$0xff]  }
 0x46e   :  { %2928 = vmatpush1.bf16.msra.mxu1 %v6013_v13  ;;  %2833 = vmatprep.subr.bf16.mxu0 %v4262_v19  ;;  %v4266_v13 = vld [vmem:[#allocation4 + $0x1b4] ss:$8 sps:$4 sm:$0xff]  }
 0x46f   :  { %2938 = vmatprep.subr.bf16.mxu1 %v6017_v22  ;;  %v4267_v22 = vld [vmem:[#allocation4 + $0x1b0] ss:$8 sps:$4 sm:$0xff]  }
 0x471   :  { %2930 = vmatmul.mubr.bf16.vlgmr.msra.gmra.mrb[60].mxu1 %v5893_v21  ;;  %2834 = vmatpush1.bf16.msra.mxu0 %v4263_v4  ;;  %v4268_v21 = vld [vmem:[#allocation4 + $0x1c4] ss:$8 sps:$4 sm:$0xff]  }
 0x472   :  { %2939 = vmatpush1.bf16.msra.mxu1 %v6024_v63  ;;  %2970 = vmatprep.mubr.bf16.mxu1 %v6229_v44  ;;  %v4269_v63 = vld [vmem:[#allocation4 + $0x1c0] ss:$8 sps:$4 sm:$0xff]  }
 0x473   :  { %2835 = vmatprep.subr.bf16.mxu0 %v4264_v35  ;;  %2940 = vmatprep.subr.bf16.mxu1 %v6732_v17  ;;  %v4148_v17 = vld [vmem:[%s6457_s3 + $0x48] sm:$0xff]  }
 0x475   :  { %2836 = vmatpush1.bf16.msra.mxu0 %v4265_v39 }
 0x476   :  { %2941 = vmatpush1.bf16.msra.mxu1 %v6033_v40  ;;  %2837 = vmatprep.subr.bf16.mxu0 %v4266_v13  ;;  %v4271_v40 = vld [vmem:[#allocation4 + $0x1d0] ss:$8 sps:$4 sm:$0xff]  }
 0x477   :  { %2942 = vmatprep.subr.bf16.mxu1 %v6733_v31  ;;  %v2521_v31 = vpack.c.bf16 %v2520_v61, %v2520_v61 }
 0x479   :  { %2838 = vmatpush1.bf16.msra.mxu0 %v4267_v22 }
 0x47a   :  { %2943 = vmatpush1.bf16.msra.mxu1 %v6182_v7  ;;  %2839 = vmatprep.subr.bf16.mxu0 %v4268_v21  ;;  %v4149_v7 = vld [vmem:[%s6457_s3 + $0x8] sm:$0xff]  }
 0x47b   :  { %2944 = vmatprep.subr.bf16.mxu1 %v6186_v26  ;;  %v4150_v26 = vld [vmem:[%s6457_s3 + $0x50] sm:$0xff]  }
 0x47d   :  { %2840 = vmatpush1.bf16.msra.mxu0 %v4269_v63 }
 0x47e   :  { %2945 = vmatpush1.bf16.msra.mxu1 %v6190_v33  ;;  %2841 = vmatprep.subr.bf16.mxu0 %v4270_v3  ;;  %v4151_v33 = vld [vmem:[%s6457_s3 + $0x10] sm:$0xff]  }
 0x47f   :  { %2946 = vmatprep.subr.bf16.mxu1 %v6194_v51  ;;  %v4152_v51 = vld [vmem:[%s6457_s3 + $0x58] sm:$0xff]  }
 0x481   :  { %2842 = vmatpush1.bf16.msra.mxu0 %v4271_v40 }
 0x482   :  { %2947 = vmatpush1.bf16.msra.mxu1 %v6198_v52  ;;  %2843 = vmatprep.subr.bf16.mxu0 %v4272_v50  ;;  %v4154_v52 = vld [vmem:[%s6457_s3 + $0x60] sm:$0xff]  }
 0x483   :  { %2948 = vmatprep.subr.bf16.mxu1 %v6202_v57  ;;  %v4155_v57 = vld [vmem:[%s6457_s3 + $0x20] sm:$0xff]  }
 0x485   :  { %2844 = vmatpush1.bf16.msra.mxu0 %v4273_v49 }
 0x486   :  { %2949 = vmatpush1.bf16.msra.mxu1 %v6206_v41  ;;  %2845 = vmatprep.subr.bf16.mxu0 %v4274_v36  ;;  %v4157_v41 = vld [vmem:[%s6457_s3 + $0x28] sm:$0xff]  }
 0x487   :  { %2950 = vmatprep.subr.bf16.mxu1 %v6210_v25  ;;  %v4158_v25 = vld [vmem:[%s6457_s3 + $0x70] sm:$0xff]  }
 0x489   :  { %2846 = vmatpush1.bf16.msra.mxu0 %v6245_v6 }
 0x48a   :  { %2951 = vmatpush1.bf16.msra.mxu1 %v6215_v48  ;;  %2856 = vmatprep.subr.bf16.mxu0 %v6249_v34  ;;  %v4160_v48 = vld [vmem:[%s6457_s3 + $0x78] sm:$0xff]  }
 0x48b   :  { %2952 = vmatprep.subr.bf16.mxu1 %v4258_v23  ;;  %v6736_v23 = vld [vmem:[#allocation23_spill] sm:$0xff] }
 0x48c   :  { %2848 = vmatmul.mubr.bf16.vlgmr.msra.gmra.mrb[60].mxu0 %v6020_v16  ;;  %v6266_v16 = vld [vmem:[#allocation4 + $0x220] ss:$8 sps:$4 sm:$0xff]   ;;  %v1609_v15 = vadd.f32 %v5881_v12, %v6736_v23  ;;  %v4162_v12 = vld [vmem:[%s6457_s3 + $0xc0] sm:$0xff]  }
 0x48d   :  { %2857 = vmatpush1.bf16.msra.mxu0 %v6253_v24  ;;  %2888 = vmatprep.mubr.bf16.mxu0 %v6717_v46  ;;  %v4186_v23 = vld [vmem:[#allocation7] sm:$0xff]  }
 0x48e   :  { %2953 = vmatpush1.bf16.msra.mxu1 %v4259_v20  ;;  %2858 = vmatprep.subr.bf16.mxu0 %v6257_v29  ;;  %v1610_v45 = vmax.f32 %v1609_v15, 0.0  ;;  %v4188_v15 = vld [vmem:[#allocation7 + $0x10] sm:$0xff]  }
 0x48f   :  { %2954 = vmatprep.subr.bf16.mxu1 %v4260_v1 }
 0x490   :  { %v1611_v8 = vpack.c.bf16 %v1610_v45, %v1610_v45  ;;  %v4190_v45 = vld [vmem:[#allocation7 + $0x20] sm:$0xff]  }
 0x491   :  { %2859 = vmatpush1.bf16.msra.mxu0 %v6260_v43 }
 0x492   :  { %2955 = vmatpush1.bf16.msra.mxu1 %v4261_v10  ;;  %2860 = vmatprep.subr.bf16.mxu0 %v6263_v53 }
 0x493   :  { %2956 = vmatprep.subr.bf16.mxu1 %v4262_v19  ;;  %v4163_v19 = vld [vmem:[%s6457_s3 + $0x80] sm:$0xff]  }
 0x495   :  { %2861 = vmatpush1.bf16.msra.mxu0 %v6266_v16 }
 0x496   :  { %2957 = vmatpush1.bf16.msra.mxu1 %v4263_v4  ;;  %2862 = vmatprep.subr.bf16.mxu0 %v6269_v5 }
 0x497   :  { %2958 = vmatprep.subr.bf16.mxu1 %v4264_v35 }
 0x499   :  { %2863 = vmatpush1.bf16.msra.mxu0 %v6272_v38 }
 0x49a   :  { %2959 = vmatpush1.bf16.msra.mxu1 %v4265_v39  ;;  %2864 = vmatprep.subr.bf16.mxu0 %v6275_v62 }
 0x49b   :  { %2960 = vmatprep.subr.bf16.mxu1 %v4266_v13  ;;  %v4165_v13 = vld [vmem:[%s6457_s3 + $0x88] sm:$0xff]  }
 0x49d   :  { %2865 = vmatpush1.bf16.msra.mxu0 %v6278_v42 }
 0x49e   :  { %2961 = vmatpush1.bf16.msra.mxu1 %v4267_v22  ;;  %2866 = vmatprep.subr.bf16.mxu0 %v6281_v28 }
 0x49f   :  { %2962 = vmatprep.subr.bf16.mxu1 %v4268_v21 }
 0x4a1   :  { %2867 = vmatpush1.bf16.msra.mxu0 %v6284_v59 }
 0x4a2   :  { %2963 = vmatpush1.bf16.msra.mxu1 %v4269_v63  ;;  %2868 = vmatprep.subr.bf16.mxu0 %v6292_v9  ;;  %v4166_v63 = vld [vmem:[%s6457_s3 + $0xd0] sm:$0xff]  }
 0x4a3   :  { %2964 = vmatprep.subr.bf16.mxu1 %v4270_v3 }
 0x4a5   :  { %2869 = vmatpush1.bf16.msra.mxu0 %v6297_v58 }
 0x4a6   :  { %2965 = vmatpush1.bf16.msra.mxu1 %v4271_v40  ;;  %2870 = vmatprep.subr.bf16.mxu0 %v6300_v55 }
 0x4a7   :  { %2966 = vmatprep.subr.bf16.mxu1 %v4272_v50  ;;  %v4167_v50 = vld [vmem:[%s6457_s3 + $0x90] sm:$0xff]  }
 0x4a9   :  { %2871 = vmatpush1.bf16.msra.mxu0 %v4291_v32 }
 0x4aa   :  { %2967 = vmatpush1.bf16.msra.mxu1 %v4273_v49  ;;  %3802 = vmatprep.subr.bf16.mxu0 %v4146_v18  ;;  %v4168_v49 = vld [vmem:[%s6457_s3 + $0xd8] sm:$0xff]  }
 0x4ab   :  { %2968 = vmatprep.subr.bf16.mxu1 %v4274_v36  ;;  %v4169_v36 = vld [vmem:[%s6457_s3 + $0x98] sm:$0xff]  }
 0x4ac   :  { %2889 = vmatmul.mubr.bf16.vlgmr.msra.gmra.mrb[60].mxu0 %v6229_v44  ;;  %v4164_v44 = vld [vmem:[%s6457_s3 + $0xc8] sm:$0xff]  }
 0x4ad   :  { %3803 = vmatpush3.bf16.msra.mxu0 %v4147_v37  ;;  %3321 = vmatprep.mubr.bf16.mxu0 %v2521_v31 }
 0x4ae   :  { %2969 = vmatpush1.bf16.msra.mxu1 %v6245_v6  ;;  %3804 = vmatprep.subr.bf16.mxu0 %v4148_v17  ;;  %v4170_v6 = vld [vmem:[%s6457_s3 + $0xe0] sm:$0xff]  }
 0x4af   :  { %2979 = vmatprep.subr.bf16.mxu1 %v6249_v34  ;;  %v4171_v34 = vld [vmem:[%s6457_s3 + $0xa0] sm:$0xff]  }
 0x4b1   :  { %2971 = vmatmul.mubr.bf16.vlgmr.msra.gmra.mrb[60].mxu1 %v6135_v2  ;;  %3805 = vmatpush3.bf16.msra.mxu0 %v4149_v7  ;;  %v4153_v2 = vld [vmem:[%s6457_s3 + $0x18] sm:$0xff]  }
 0x4b2   :  { %2980 = vmatpush1.bf16.msra.mxu1 %v6253_v24  ;;  %3806 = vmatprep.subr.bf16.mxu0 %v4150_v26  ;;  %v4172_v24 = vld [vmem:[%s6457_s3 + $0xe8] sm:$0xff]  }
 0x4b3   :  { %2981 = vmatprep.subr.bf16.mxu1 %v6257_v29  ;;  %3011 = vmatprep.mubr.bf16.mxu1 %v6717_v46  ;;  %v4156_v46 = vld [vmem:[%s6457_s3 + $0x68] sm:$0xff]  }
 0x4b4   :  { %v4173_v29 = vld [vmem:[%s6457_s3 + $0xa8] sm:$0xff]  }
 0x4b5   :  { %3807 = vmatpush3.bf16.msra.mxu0 %v4151_v33 }
 0x4b6   :  { %2982 = vmatpush1.bf16.msra.mxu1 %v6260_v43  ;;  %3808 = vmatprep.subr.bf16.mxu0 %v4152_v51  ;;  %v4174_v43 = vld [vmem:[%s6457_s3 + $0xf0] sm:$0xff]  }
 0x4b7   :  { %2983 = vmatprep.subr.bf16.mxu1 %v6263_v53  ;;  %v4175_v53 = vld [vmem:[%s6457_s3 + $0xb0] sm:$0xff]  }
 0x4b9   :  { %3809 = vmatpush3.bf16.msra.mxu0 %v4153_v2 }
 0x4ba   :  { %2984 = vmatpush1.bf16.msra.mxu1 %v6266_v16  ;;  %3810 = vmatprep.subr.bf16.mxu0 %v4154_v52  ;;  %v4176_v16 = vld [vmem:[%s6457_s3 + $0xf8] sm:$0xff]  }
 0x4bb   :  { %2985 = vmatprep.subr.bf16.mxu1 %v6269_v5  ;;  %v4177_v5 = vld [vmem:[%s6457_s3 + $0xb8] sm:$0xff]  }
 0x4bd   :  { %3811 = vmatpush3.bf16.msra.mxu0 %v4155_v57 }
 0x4be   :  { %2986 = vmatpush1.bf16.msra.mxu1 %v6272_v38  ;;  %3812 = vmatprep.subr.bf16.mxu0 %v4156_v46  ;;  %v4178_v38 = vld [vmem:[#allocation6] sm:$0xff]  }
 0x4bf   :  { %2987 = vmatprep.subr.bf16.mxu1 %v6275_v62  ;;  %v4415_v62 = vmov 0.0  }
 0x4c1   :  { %3813 = vmatpush3.bf16.msra.mxu0 %v4157_v41 }
 0x4c2   :  { %2988 = vmatpush1.bf16.msra.mxu1 %v6278_v42  ;;  %3814 = vmatprep.subr.bf16.mxu0 %v4158_v25  ;;  %v4179_v42 = vld [vmem:[#allocation6 + $0x8] sm:$0xff]  }
 0x4c3   :  { %2989 = vmatprep.subr.bf16.mxu1 %v6281_v28  ;;  %v4180_v28 = vld [vmem:[#allocation6 + $0x10] sm:$0xff]  }
 0x4c5   :  { %3815 = vmatpush3.bf16.msra.mxu0 %v4159_v11 }
 0x4c6   :  { %2990 = vmatpush1.bf16.msra.mxu1 %v6284_v59  ;;  %3816 = vmatprep.subr.bf16.mxu0 %v4160_v48  ;;  %v4181_v59 = vld [vmem:[#allocation6 + $0x18] sm:$0xff]  }
 0x4c7   :  { %2991 = vmatprep.subr.bf16.mxu1 %v6292_v9  ;;  %v4182_v9 = vld [vmem:[#allocation6 + $0x20] sm:$0xff]  }
 0x4c9   :  { %3817 = vmatpush3.bf16.msra.mxu0 %v4161_v47  ;;  %v4184_v47 = vld [vmem:[#allocation6 + $0x30] sm:$0xff]  }
 0x4ca   :  { %2992 = vmatpush1.bf16.msra.mxu1 %v6297_v58  ;;  %3864 = vmatprep.subr.bf16.mxu0 %v4415_v62 }
 0x4cb   :  { %2993 = vmatprep.subr.bf16.mxu1 %v6300_v55 }
 0x4cc   :  { %3322 = vmatmul.mubr.bf16.vlgmr.msra.gmra.mrb[64].mxu0 %v2269_v27  ;;  %v4189_v27 = vld [vmem:[#allocation7 + $0x18] sm:$0xff]  }
 0x4cd   :  { %3865 = vmatpush3.bf16.msra.mxu0 %v4178_v38  ;;  %3880 = vmatprep.mubr.msk.bf16.mxu0 %vm4416_vm1, %v4415_v62 }
 0x4ce   :  { %2994 = vmatpush1.bf16.msra.mxu1 %v4291_v32  ;;  %3866 = vmatprep.subr.bf16.mxu0 %v4415_v62 }
 0x4cf   :  { %3824 = vmatprep.subr.bf16.mxu1 %v4162_v12 }
 0x4d1   :  { %3012 = vmatmul.mubr.bf16.vlgmr.msra.gmra.mrb[60].mxu1 %v1611_v8  ;;  %3867 = vmatpush3.bf16.msra.mxu0 %v4179_v42  ;;  %v4191_v8 = vld [vmem:[#allocation7 + $0x28] sm:$0xff]  }
 0x4d2   :  { %3825 = vmatpush3.bf16.msra.mxu1 %v4163_v19  ;;  %3868 = vmatprep.subr.bf16.mxu0 %v4415_v62 }
 0x4d3   :  { %3826 = vmatprep.subr.bf16.mxu1 %v4164_v44 }
 0x4d5   :  { %3869 = vmatpush3.bf16.msra.mxu0 %v4180_v28 }
 0x4d6   :  { %3827 = vmatpush3.bf16.msra.mxu1 %v4165_v13  ;;  %3870 = vmatprep.subr.bf16.mxu0 %v4415_v62  ;;  %v4192_v13 = vld [vmem:[#allocation7 + $0x30] sm:$0xff]  }
 0x4d7   :  { %3828 = vmatprep.subr.bf16.mxu1 %v4166_v63 }
 0x4d9   :  { %3871 = vmatpush3.bf16.msra.mxu0 %v4181_v59 }
 0x4da   :  { %3829 = vmatpush3.bf16.msra.mxu1 %v4167_v50  ;;  %3872 = vmatprep.subr.bf16.mxu0 %v4415_v62 }
 0x4db   :  { %3830 = vmatprep.subr.bf16.mxu1 %v4168_v49 }
 0x4dd   :  { %3873 = vmatpush3.bf16.msra.mxu0 %v4182_v9 }
 0x4de   :  { %3831 = vmatpush3.bf16.msra.mxu1 %v4169_v36  ;;  %3874 = vmatprep.subr.bf16.mxu0 %v4415_v62 }
 0x4df   :  { %v2638_v20 = vpop.f32.mrb[56].mxu0  ;;  %3832 = vmatprep.subr.bf16.mxu1 %v4170_v6 }
 0x4e0   :  { %v2640_v1 = vpop.f32.mrb[57].mxu0 }
 0x4e1   :  { %v2642_v0 = vpop.f32.mrb[58].mxu0  ;;  %3875 = vmatpush3.bf16.msra.mxu0 %v4183_v30 }
 0x4e2   :  { %v2643_v10 = vpop.f32.mrb[59].mxu0  ;;  %3833 = vmatpush3.bf16.msra.mxu1 %v4171_v34  ;;  %3876 = vmatprep.subr.bf16.mxu0 %v4415_v62  ;;  %v3793_v34 = vld [vmem:[%s6464_s10] ss:$0 sm:$0xff] }
 0x4e3   :  { %3834 = vmatprep.subr.bf16.mxu1 %v4172_v24 }
 0x4e5   :  { %3877 = vmatpush3.bf16.msra.mxu0 %v4184_v47 }
 0x4e6   :  { %3835 = vmatpush3.bf16.msra.mxu1 %v4173_v29  ;;  %3878 = vmatprep.subr.bf16.mxu0 %v4415_v62 }
 0x4e7   :  { %3836 = vmatprep.subr.bf16.mxu1 %v4174_v43 }
 0x4e9   :  { %3879 = vmatpush3.bf16.msra.mxu0 %v4185_v14 }
 0x4ea   :  { %3837 = vmatpush3.bf16.msra.mxu1 %v4175_v53 }
 0x4eb   :  { %3838 = vmatprep.subr.bf16.mxu1 %v4176_v16 }
 0x4ee   :  { %3839 = vmatpush3.bf16.msra.mxu1 %v4177_v5 }
 0x4ef   :  { %3884 = vmatprep.subr.bf16.mxu1 %v4415_v62 }
 0x504   :  { %v2761_v4 = vpop.f32.mrb[56].mxu1 }
 0x505   :  { %v2768_v35 = vmax.f32 %v2638_v20, %v2761_v4  ;;  %v2763_v39 = vpop.f32.mrb[57].mxu1  ;;  %v3751_v20 = vld [vmem:[%s6462_s8] ss:$0 sm:$0xff] }
 0x506   :  { %v2769_v22 = vmax.f32 %v2640_v1, %v2763_v39  ;;  %v2765_v21 = vpop.f32.mrb[58].mxu1 }
 0x507   :  { %v2766_v3 = vpop.f32.mrb[59].mxu1  ;;  %v3784_v21 = vld [vmem:[%s6463_s9] ss:$0 sm:$0xff] }
 0x508   :  { %v2770_v40 = vmax.f32 %v2768_v35, %v2769_v22  ;;  %v4193_v22 = vld [vmem:[#allocation7 + $0x38] sm:$0xff]  }
 0x50a   :  { %v2771_v57 = vadd.f32 %v6290_v56, %v2770_v40 }
 0x50c   :  { %v2772_v11 = vmax.f32 %v2771_v57, 0.0 }
 0x50e   :  { %v2773_v48 = vpack.c.bf16 %v2772_v11, %v2772_v11 }
 0x57f   :  { %v2890_v58 = vpop.f32.mrb[60].mxu0 }
 0x580   :  { %v2892_v55 = vpop.f32.mrb[61].mxu0 }
 0x581   :  { %v2894_v18 = vpop.f32.mrb[62].mxu0 }
 0x582   :  { %v2895_v61 = vpop.f32.mrb[63].mxu0 }
 0x59f   :  { %v3818_v32 = vpop.f32.mrb[64].mxu0 }
 0x5a0   :  { %v3819_v37 = vpop.f32.mrb[65].mxu0 }
 0x5a1   :  { %v3820_v17 = vadd.f32 %v3819_v37, %v3818_v32  ;;  %v3821_v31 = vpop.f32.mrb[66].mxu0 }
 0x5a2   :  { %v3822_v7 = vpop.f32.mrb[67].mxu0 }
 0x5a3   :  { %v3324_v10 = vadd.f32 %v3820_v17, %v3751_v20 }
 0x5a4   :  { %v3013_v26 = vpop.f32.mrb[60].mxu1 }
 0x5a5   :  { %v3020_v33 = vmax.f32 %v2890_v58, %v3013_v26  ;;  %v3015_v51 = vpop.f32.mrb[61].mxu1 }
 0x5a6   :  { %v3021_v2 = vmax.f32 %v2892_v55, %v3015_v51  ;;  %v3017_v52 = vpop.f32.mrb[62].mxu1 }
 0x5a7   :  { %v3018_v46 = vpop.f32.mrb[63].mxu1 }
 0x5a8   :  { %v3022_v41 = vmax.f32 %v3020_v33, %v3021_v2 }
 0x5aa   :  { %v3023_v25 = vadd.f32 %v6290_v56, %v3022_v41  ;;  %v4187_v56 = vld [vmem:[#allocation7 + $0x8] sm:$0xff]  }
 0x5ac   :  { %v3024_v60 = vmax.f32 %v3023_v25, 0.0 }
 0x5ae   :  { %v3025_v54 = vpack.c.bf16 %v3024_v60, %v3024_v60 }
 0x5b0   :  { %3361 = vmatprep.mubr.bf16.mxu1 %v3025_v54 }
 0x5b1   :  { %3362 = vmatmul.mubr.bf16.vlgmr.msra.gmra.mrb[64].mxu1 %v2773_v48 }
 0x5b2   :  { %3900 = vmatprep.mubr.msk.bf16.mxu1 %vm4416_vm1, %v4415_v62  ;;  %3885 = vmatpush3.bf16.msra.mxu1 %v4186_v23 }
 0x5b3   :  { %3886 = vmatprep.subr.bf16.mxu1 %v4415_v62 }
 0x5b6   :  { %3887 = vmatpush3.bf16.msra.mxu1 %v4187_v56 }
 0x5b7   :  { %3888 = vmatprep.subr.bf16.mxu1 %v4415_v62 }
 0x5ba   :  { %3889 = vmatpush3.bf16.msra.mxu1 %v4188_v15 }
 0x5bb   :  { %3890 = vmatprep.subr.bf16.mxu1 %v4415_v62 }
 0x5be   :  { %3891 = vmatpush3.bf16.msra.mxu1 %v4189_v27 }
 0x5bf   :  { %3892 = vmatprep.subr.bf16.mxu1 %v4415_v62 }
 0x5c2   :  { %3893 = vmatpush3.bf16.msra.mxu1 %v4190_v45 }
 0x5c3   :  { %3894 = vmatprep.subr.bf16.mxu1 %v4415_v62 }
 0x5c6   :  { %3895 = vmatpush3.bf16.msra.mxu1 %v4191_v8 }
 0x5c7   :  { %3896 = vmatprep.subr.bf16.mxu1 %v4415_v62 }
 0x5ca   :  { %3897 = vmatpush3.bf16.msra.mxu1 %v4192_v13 }
 0x5cb   :  { %3898 = vmatprep.subr.bf16.mxu1 %v4415_v62 }
 0x5ce   :  { %3899 = vmatpush3.bf16.msra.mxu1 %v4193_v22 }
 0x684   :  { %v3840_v1 = vpop.f32.mrb[64].mxu1 }
 0x685   :  { %v3841_v0 = vpop.f32.mrb[65].mxu1 }
 0x686   :  { %v3842_v12 = vadd.f32 %v3841_v0, %v3840_v1  ;;  %v3843_v19 = vpop.f32.mrb[66].mxu1 }
 0x687   :  { %v3844_v44 = vpop.f32.mrb[67].mxu1 }
 0x688   :  { %v3364_v4 = vadd.f32 %v3842_v12, %v3324_v10 }
 0x68a   :  { %v3369_v35 = vmax.f32 %v3364_v4, 0.0 }
 0x68c   :  { %v3370_v39 = vpack.c.bf16 %v3369_v35, %v3369_v35 }
 0x68e   :  { %3881 = vmatmul.mubr.bf16.vlgmr.msra.gmra.mrb[68].mxu0 %v3370_v39 }
 0x761   :  { %v3476_v63 = vpop.f32.mrb[68].mxu0 }
 0x762   :  { %v3477_v3 = vadd.f32 %v3784_v21, %v3476_v63  ;;  %v3882_v40 = vpop.f32.mrb[69].mxu0 }
 0x763   :  { %v3479_v50 = vpop.f32.mrb[70].mxu0 }
 0x764   :  { %v3482_v49 = vmax.f32 %v3477_v3, 0.0  ;;  %v3883_v36 = vpop.f32.mrb[71].mxu0 }
 0x766   :  { %v3483_v6 = vpack.c.bf16 %v3482_v49, %v3482_v49 }
 0x768   :  { %3901 = vmatmul.mubr.bf16.vlgmr.msra.gmra.mrb[68].mxu1 %v3483_v6 }
 0x83b   :  { %v3589_v24 = vpop.f32.mrb[68].mxu1 }
 0x83c   :  { %v3590_v29 = vadd.f32 %v3793_v34, %v3589_v24  ;;  %v3902_v43 = vpop.f32.mrb[69].mxu1 }
 0x83d   :  { %v3592_v53 = vpop.f32.mrb[70].mxu1 }
 0x83e   :  { %3595 = vst [vmem:[%s6465_s11] sm:$0xff] %v3590_v29  ;;  %v3903_v16 = vpop.f32.mrb[71].mxu1 }
 0x83f   :  { %3600 = vsyncpa [#allocation3], 1 }
 0x840   :  { %3601 = vsyncpa [#allocation5], 1 }
 0x841   :  { %3602 = vsyncpa [#allocation8], 1 }

</bundles_post_ra>
